<compile_context>
chip_gen: v7x
topology: tpu7x:2x2x1
jax: 0.10.0
libtpu: 0.0.40
codegen_flags: <defaults>
</compile_context>

<pallas_src>
import functools

import jax
import jax.numpy as jnp
from jax.experimental import pallas as pl
from jax.experimental.pallas import tpu as pltpu

# ----------------------------- small config ---------------------------------
BATCH = 2
CHANNELS = 4          # input_shape[0]
IMG = 16              # input_shape[-1]
PATCH = 4             # patch_size (small analogue of 16)
HIDDEN = 32           # hidden_size
NUM_LAYERS = 2        # num_hidden_layers
NUM_HEADS = 4         # num_attention_heads
HEAD_DIM = HIDDEN // NUM_HEADS
INTERMEDIATE = 64     # intermediate_size
NUM_LABELS = 2
LN_EPS = 1e-12        # transformers.ViTConfig default layer_norm_eps
LANE_PAD = 128        # pad tiny classifier output dim to a full lane width

NUM_PATCHES = (IMG // PATCH) ** 2   # 16
SEQ = NUM_PATCHES + 1               # 17

VMEM = pltpu.MemorySpace.VMEM


# ------------------------------ helpers --------------------------------------
def _layernorm_f32(x, gamma, beta, eps):
    """Row-wise LayerNorm in f32. x: (M, D); gamma/beta: (1, D)."""
    mu = jnp.mean(x, axis=-1, keepdims=True)
    var = jnp.mean(jnp.square(x - mu), axis=-1, keepdims=True)
    return (x - mu) * jax.lax.rsqrt(var + eps) * gamma + beta


# ------------------------------ fused Pallas kernel --------------------------
def _vit_fused_kernel(patches_ref, bias_ref, patch_w_ref, patch_b_ref,
                      cls_ref, pos_ref,
                      ln1_g_ref, ln1_b_ref, wqkv_ref, bqkv_ref,
                      o_w_ref, o_b_ref,
                      ln2_g_ref, ln2_b_ref, fc1_w_ref, fc1_b_ref,
                      fc2_w_ref, fc2_b_ref,
                      lnf_g_ref, lnf_b_ref, head_w_ref, head_b_ref,
                      out_ref, *,
                      batch, seq, num_patches, num_layers, num_heads,
                      head_dim, eps):
    """Entire ViT forward for the whole batch, resident in VMEM."""
    d_model = patch_w_ref.shape[1]
    bs = batch * seq

    # ---- 1) patch embedding: im2col matmul + [CLS] prepend + pos-emb -------
    p = patches_ref[...].astype(jnp.float32)                    # (B*NP, C*P*P)
    emb = jnp.dot(p, patch_w_ref[...],
                  preferred_element_type=jnp.float32) + patch_b_ref[...]
    pos_cls = pos_ref[0:1, :]                                    # (1, D)
    pos_patch = pos_ref[1:seq, :]                                # (NP, D)
    cls_row = cls_ref[...] + pos_cls                             # (1, D)
    pieces = []
    for b in range(batch):
        pieces.append(cls_row)
        pieces.append(emb[b * num_patches:(b + 1) * num_patches, :] + pos_patch)
    h = jnp.concatenate(pieces, axis=0)                          # (B*S, D)

    # Block-diagonal additive attention bias (0 within a sample, -1e30 across
    # samples) so batched attention needs no per-sample loop.
    bias = bias_ref[...]                                         # (B*S, B*S)

    # ---- 2) transformer layers (statically unrolled) ------------------------
    for li in range(num_layers):
        # --- pre-LN MHSA + residual ---
        xn = _layernorm_f32(h, ln1_g_ref[li], ln1_b_ref[li], eps)
        # Fused QKV; 1/sqrt(head_dim) pre-folded into the Q weight/bias.
        qkv = jnp.dot(xn, wqkv_ref[li],
                      preferred_element_type=jnp.float32) + bqkv_ref[li]
        o_w = o_w_ref[li]                                        # (D, D)
        acc = jnp.zeros((bs, d_model), jnp.float32)
        for hh in range(num_heads):
            lo = hh * head_dim
            qh = qkv[:, lo:lo + head_dim]                        # (BS, hd)
            kh = qkv[:, d_model + lo:d_model + lo + head_dim]
            vh = qkv[:, 2 * d_model + lo:2 * d_model + lo + head_dim]
            s = jax.lax.dot_general(qh, kh, (((1,), (1,)), ((), ())),
                                    preferred_element_type=jnp.float32)
            s = s + bias                                         # (BS, BS)
            s = s - jnp.max(s, axis=-1, keepdims=True)
            pexp = jnp.exp(s)
            pexp = pexp * pl.reciprocal(
                jnp.sum(pexp, axis=-1, keepdims=True), approx=True)
            ctx = jnp.dot(pexp, vh, preferred_element_type=jnp.float32)
            # Per-head slice of the O-projection folds the head-merge in.
            acc = acc + jnp.dot(ctx, o_w[lo:lo + head_dim, :],
                                preferred_element_type=jnp.float32)
        h = h + acc + o_b_ref[li]

        # --- pre-LN MLP + residual ---
        xn2 = _layernorm_f32(h, ln2_g_ref[li], ln2_b_ref[li], eps)
        inter = jnp.dot(xn2, fc1_w_ref[li],
                        preferred_element_type=jnp.float32) + fc1_b_ref[li]
        # TODO(synk): HF ViT uses exact (erf) GELU; tanh approximation used
        # here for guaranteed Mosaic lowering (numerically ~1e-3 close).
        inter = jax.nn.gelu(inter, approximate=True)
        h = h + jnp.dot(inter, fc2_w_ref[li],
                        preferred_element_type=jnp.float32) + fc2_b_ref[li]

    # ---- 3) final LN on CLS tokens + classifier ------------------------------
    cls_rows = jnp.concatenate(
        [h[b * seq:b * seq + 1, :] for b in range(batch)], axis=0)   # (B, D)
    xn = _layernorm_f32(cls_rows, lnf_g_ref[...], lnf_b_ref[...], eps)
    out_ref[...] = (jnp.dot(xn, head_w_ref[...],
                            preferred_element_type=jnp.float32)
                    + head_b_ref[...]).astype(out_ref.dtype)


# ------------------------------ parameter init -------------------------------
def init_params(key):
    """Raw parameters mirroring the PyTorch module layout."""
    std = 0.02

    def dense(k, fan_in, fan_out):
        return std * jax.random.normal(k, (fan_in, fan_out), jnp.float32)

    keys = jax.random.split(key, 8 + NUM_LAYERS)
    params = {
        # Conv2d(C, HIDDEN, P, stride=P) expressed as im2col matmul weight.
        "patch_w": dense(keys[0], CHANNELS * PATCH * PATCH, HIDDEN),
        "patch_b": jnp.zeros((HIDDEN,), jnp.float32),
        "cls": std * jax.random.normal(keys[1], (1, 1, HIDDEN), jnp.float32),
        "pos": std * jax.random.normal(keys[2], (1, SEQ, HIDDEN), jnp.float32),
        "ln_g": jnp.ones((HIDDEN,), jnp.float32),
        "ln_b": jnp.zeros((HIDDEN,), jnp.float32),
        "cls_w": dense(keys[3], HIDDEN, NUM_LABELS),
        "cls_b": jnp.zeros((NUM_LABELS,), jnp.float32),
        "layers": [],
    }
    for li in range(NUM_LAYERS):
        lk = jax.random.split(keys[8 + li], 6)
        params["layers"].append({
            "ln1_g": jnp.ones((HIDDEN,), jnp.float32),
            "ln1_b": jnp.zeros((HIDDEN,), jnp.float32),
            "q_w": dense(lk[0], HIDDEN, HIDDEN), "q_b": jnp.zeros((HIDDEN,), jnp.float32),
            "k_w": dense(lk[1], HIDDEN, HIDDEN), "k_b": jnp.zeros((HIDDEN,), jnp.float32),
            "v_w": dense(lk[2], HIDDEN, HIDDEN), "v_b": jnp.zeros((HIDDEN,), jnp.float32),
            "o_w": dense(lk[3], HIDDEN, HIDDEN), "o_b": jnp.zeros((HIDDEN,), jnp.float32),
            "ln2_g": jnp.ones((HIDDEN,), jnp.float32),
            "ln2_b": jnp.zeros((HIDDEN,), jnp.float32),
            "fc1_w": dense(lk[4], HIDDEN, INTERMEDIATE),
            "fc1_b": jnp.zeros((INTERMEDIATE,), jnp.float32),
            "fc2_w": dense(lk[5], INTERMEDIATE, HIDDEN),
            "fc2_b": jnp.zeros((HIDDEN,), jnp.float32),
        })
    return params


def prepare_params(raw):
    """One-time prep: fuse QKV, fold 1/sqrt(head_dim) into Q, stack all layer
    weights along a leading layer axis, pad classifier to a full 128-lane
    output, reshape vectors to (1, N) for in-kernel broadcast."""
    scale = 1.0 / float(HEAD_DIM) ** 0.5
    head_w = jnp.zeros((HIDDEN, LANE_PAD), jnp.float32).at[:, :NUM_LABELS].set(raw["cls_w"])
    head_b = jnp.zeros((1, LANE_PAD), jnp.float32).at[:, :NUM_LABELS].set(raw["cls_b"])

    def stack(fn):
        return jnp.stack([fn(l) for l in raw["layers"]], axis=0)

    return {
        "patch_w": raw["patch_w"],
        "patch_b": raw["patch_b"].reshape(1, HIDDEN),
        "cls": raw["cls"].reshape(1, HIDDEN),
        "pos": raw["pos"].reshape(SEQ, HIDDEN),
        "ln_g": raw["ln_g"].reshape(1, HIDDEN),
        "ln_b": raw["ln_b"].reshape(1, HIDDEN),
        "head_w": head_w,
        "head_b": head_b,
        "ln1_g": stack(lambda l: l["ln1_g"].reshape(1, HIDDEN)),
        "ln1_b": stack(lambda l: l["ln1_b"].reshape(1, HIDDEN)),
        "wqkv": stack(lambda l: jnp.concatenate(
            [l["q_w"] * scale, l["k_w"], l["v_w"]], axis=1)),
        "bqkv": stack(lambda l: jnp.concatenate(
            [l["q_b"] * scale, l["k_b"], l["v_b"]]).reshape(1, 3 * HIDDEN)),
        "o_w": stack(lambda l: l["o_w"]),
        "o_b": stack(lambda l: l["o_b"].reshape(1, HIDDEN)),
        "ln2_g": stack(lambda l: l["ln2_g"].reshape(1, HIDDEN)),
        "ln2_b": stack(lambda l: l["ln2_b"].reshape(1, HIDDEN)),
        "fc1_w": stack(lambda l: l["fc1_w"]),
        "fc1_b": stack(lambda l: l["fc1_b"].reshape(1, INTERMEDIATE)),
        "fc2_w": stack(lambda l: l["fc2_w"]),
        "fc2_b": stack(lambda l: l["fc2_b"].reshape(1, HIDDEN)),
    }


# ------------------------------ model forward --------------------------------
def vit_forward(params, x):
    """x: (B, C, H, W) float32 -> logits (B, NUM_LABELS)."""
    B, C, H, W = x.shape
    hp, wp = H // PATCH, W // PATCH
    num_patches = hp * wp
    seq = num_patches + 1
    bs = B * seq

    # im2col for the strided patch conv (pure layout glue in the wrapper).
    patches = x.reshape(B, C, hp, PATCH, wp, PATCH)
    patches = patches.transpose(0, 2, 4, 1, 3, 5).reshape(
        B * num_patches, C * PATCH * PATCH)

    # Block-diagonal attention bias (constant, folded by jit).
    sample_idx = jnp.arange(bs) // seq
    attn_bias = jnp.where(sample_idx[:, None] == sample_idx[None, :],
                          0.0, -1e30).astype(jnp.float32)

    kern = functools.partial(
        _vit_fused_kernel, batch=B, seq=seq, num_patches=num_patches,
        num_layers=NUM_LAYERS, num_heads=NUM_HEADS, head_dim=HEAD_DIM,
        eps=LN_EPS)
    vmem_spec = pl.BlockSpec(memory_space=VMEM)

    logits_pad = pl.pallas_call(
        kern,
        out_shape=jax.ShapeDtypeStruct((B, LANE_PAD), jnp.float32),
        in_specs=[vmem_spec] * 22,
        out_specs=vmem_spec,
    )(patches, attn_bias,
      params["patch_w"], params["patch_b"], params["cls"], params["pos"],
      params["ln1_g"], params["ln1_b"], params["wqkv"], params["bqkv"],
      params["o_w"], params["o_b"],
      params["ln2_g"], params["ln2_b"], params["fc1_w"], params["fc1_b"],
      params["fc2_w"], params["fc2_b"],
      params["ln_g"], params["ln_b"], params["head_w"], params["head_b"])

    # Output padded to 128 lanes for an unmasked store; slice back here.
    return logits_pad[:, :NUM_LABELS]


# ---------------------------------- main --------------------------------------
if __name__ == "__main__":
    key = jax.random.PRNGKey(0)
    kx, kp = jax.random.split(key)
    x = jax.random.normal(kx, (BATCH, CHANNELS, IMG, IMG), jnp.float32)
    params = prepare_params(init_params(kp))

    fwd = jax.jit(vit_forward)
    logits = fwd(params, x)
    jax.block_until_ready(logits)
    assert logits.shape == (BATCH, NUM_LABELS) and logits.dtype == jnp.float32
    print("KERNEL_OK")
</pallas_src>

<mosaic_0001>
module attributes {stable_mosaic.version = 11 : i64} {
  func.func @_vit_fused_kernel(%arg0: memref<32x64xf32, #tpu.memory_space<vmem>>, %arg1: memref<34x34xf32, #tpu.memory_space<vmem>>, %arg2: memref<64x32xf32, #tpu.memory_space<vmem>>, %arg3: memref<1x32xf32, #tpu.memory_space<vmem>>, %arg4: memref<1x32xf32, #tpu.memory_space<vmem>>, %arg5: memref<17x32xf32, #tpu.memory_space<vmem>>, %arg6: memref<2x1x32xf32, #tpu.memory_space<vmem>>, %arg7: memref<2x1x32xf32, #tpu.memory_space<vmem>>, %arg8: memref<2x32x96xf32, #tpu.memory_space<vmem>>, %arg9: memref<2x1x96xf32, #tpu.memory_space<vmem>>, %arg10: memref<2x32x32xf32, #tpu.memory_space<vmem>>, %arg11: memref<2x1x32xf32, #tpu.memory_space<vmem>>, %arg12: memref<2x1x32xf32, #tpu.memory_space<vmem>>, %arg13: memref<2x1x32xf32, #tpu.memory_space<vmem>>, %arg14: memref<2x32x64xf32, #tpu.memory_space<vmem>>, %arg15: memref<2x1x64xf32, #tpu.memory_space<vmem>>, %arg16: memref<2x64x32xf32, #tpu.memory_space<vmem>>, %arg17: memref<2x1x32xf32, #tpu.memory_space<vmem>>, %arg18: memref<1x32xf32, #tpu.memory_space<vmem>>, %arg19: memref<1x32xf32, #tpu.memory_space<vmem>>, %arg20: memref<32x128xf32, #tpu.memory_space<vmem>>, %arg21: memref<1x128xf32, #tpu.memory_space<vmem>>, %arg22: memref<2x128xf32, #tpu.memory_space<vmem>>) attributes {dimension_semantics = [], scalar_prefetch = 0 : i64, scratch_operands = 0 : i64, tpu.core_type = #tpu.core_type<tc>} {
    %c0 = arith.constant 0 : index
    %c0_0 = arith.constant 0 : index
    %0 = vector.load %arg0[%c0, %c0_0] : memref<32x64xf32, #tpu.memory_space<vmem>>, vector<32x64xf32>
    %c0_1 = arith.constant 0 : index
    %c0_2 = arith.constant 0 : index
    %1 = vector.load %arg2[%c0_1, %c0_2] : memref<64x32xf32, #tpu.memory_space<vmem>>, vector<64x32xf32>
    %cst = arith.constant dense<0.000000e+00> : vector<32x32xf32>
    %2 = tpu.matmul %0, %1, %cst {dimension_numbers = #tpu.dot_dimension_numbers<[1], [0], [0], [1], [0, 0, 1, 1], [], []>} : vector<32x64xf32>, vector<64x32xf32>, vector<32x32xf32> -> vector<32x32xf32>
    %c0_3 = arith.constant 0 : index
    %c0_4 = arith.constant 0 : index
    %3 = vector.load %arg3[%c0_3, %c0_4] : memref<1x32xf32, #tpu.memory_space<vmem>>, vector<1x32xf32>
    %4 = vector.broadcast %3 : vector<1x32xf32> to vector<32x32xf32>
    %5 = arith.addf %2, %4 : vector<32x32xf32>
    %c0_5 = arith.constant 0 : index
    %c0_6 = arith.constant 0 : index
    %6 = vector.load %arg5[%c0_5, %c0_6] : memref<17x32xf32, #tpu.memory_space<vmem>>, vector<1x32xf32>
    %c1 = arith.constant 1 : index
    %c0_7 = arith.constant 0 : index
    %7 = vector.load %arg5[%c1, %c0_7] : memref<17x32xf32, #tpu.memory_space<vmem>>, vector<16x32xf32>
    %c0_8 = arith.constant 0 : index
    %c0_9 = arith.constant 0 : index
    %8 = vector.load %arg4[%c0_8, %c0_9] : memref<1x32xf32, #tpu.memory_space<vmem>>, vector<1x32xf32>
    %9 = arith.addf %8, %6 : vector<1x32xf32>
    %10 = vector.extract_strided_slice %5 {offsets = [0, 0], sizes = [16, 32], strides = [1, 1]} : vector<32x32xf32> to vector<16x32xf32>
    %11 = arith.addf %10, %7 : vector<16x32xf32>
    %12 = vector.extract_strided_slice %5 {offsets = [16, 0], sizes = [16, 32], strides = [1, 1]} : vector<32x32xf32> to vector<16x32xf32>
    %13 = arith.addf %12, %7 : vector<16x32xf32>
    %14 = tpu.concatenate %9, %11, %9, %13 in 0 : vector<1x32xf32>, vector<16x32xf32>, vector<1x32xf32>, vector<16x32xf32> -> vector<34x32xf32>
    %c0_10 = arith.constant 0 : index
    %c0_11 = arith.constant 0 : index
    %15 = vector.load %arg1[%c0_10, %c0_11] : memref<34x34xf32, #tpu.memory_space<vmem>>, vector<34x34xf32>
    %c0_12 = arith.constant 0 : index
    %c0_13 = arith.constant 0 : index
    %c0_14 = arith.constant 0 : index
    %16 = vector.load %arg6[%c0_12, %c0_13, %c0_14] : memref<2x1x32xf32, #tpu.memory_space<vmem>>, vector<1x1x32xf32>
    %17 = vector.shape_cast %16 : vector<1x1x32xf32> to vector<1x32xf32>
    %c0_15 = arith.constant 0 : index
    %c0_16 = arith.constant 0 : index
    %c0_17 = arith.constant 0 : index
    %18 = vector.load %arg7[%c0_15, %c0_16, %c0_17] : memref<2x1x32xf32, #tpu.memory_space<vmem>>, vector<1x1x32xf32>
    %19 = vector.shape_cast %18 : vector<1x1x32xf32> to vector<1x32xf32>
    %cst_18 = arith.constant dense<0.000000e+00> : vector<34xf32>
    %20 = vector.multi_reduction <add>, %14, %cst_18 [1] : vector<34x32xf32> to vector<34xf32>
    %21 = vector.shape_cast %20 : vector<34xf32> to vector<34x1xf32>
    %cst_19 = arith.constant 3.200000e+01 : f32
    %22 = vector.broadcast %cst_19 : f32 to vector<34x1xf32>
    %23 = arith.divf %21, %22 : vector<34x1xf32>
    %24 = vector.broadcast %23 : vector<34x1xf32> to vector<34x32xf32>
    %25 = arith.subf %14, %24 : vector<34x32xf32>
    %26 = arith.mulf %25, %25 : vector<34x32xf32>
    %cst_20 = arith.constant dense<0.000000e+00> : vector<34xf32>
    %27 = vector.multi_reduction <add>, %26, %cst_20 [1] : vector<34x32xf32> to vector<34xf32>
    %28 = vector.shape_cast %27 : vector<34xf32> to vector<34x1xf32>
    %cst_21 = arith.constant 3.200000e+01 : f32
    %29 = vector.broadcast %cst_21 : f32 to vector<34x1xf32>
    %30 = arith.divf %28, %29 : vector<34x1xf32>
    %31 = vector.broadcast %23 : vector<34x1xf32> to vector<34x32xf32>
    %32 = arith.subf %14, %31 : vector<34x32xf32>
    %cst_22 = arith.constant 9.99999996E-13 : f32
    %33 = vector.broadcast %cst_22 : f32 to vector<34x1xf32>
    %34 = arith.addf %30, %33 : vector<34x1xf32>
    %35 = math.rsqrt %34 : vector<34x1xf32>
    %36 = vector.broadcast %35 : vector<34x1xf32> to vector<34x32xf32>
    %37 = arith.mulf %32, %36 : vector<34x32xf32>
    %38 = vector.broadcast %17 : vector<1x32xf32> to vector<34x32xf32>
    %39 = arith.mulf %37, %38 : vector<34x32xf32>
    %40 = vector.broadcast %19 : vector<1x32xf32> to vector<34x32xf32>
    %41 = arith.addf %39, %40 : vector<34x32xf32>
    %c0_23 = arith.constant 0 : index
    %c0_24 = arith.constant 0 : index
    %c0_25 = arith.constant 0 : index
    %42 = vector.load %arg8[%c0_23, %c0_24, %c0_25] : memref<2x32x96xf32, #tpu.memory_space<vmem>>, vector<1x32x96xf32>
    %43 = vector.shape_cast %42 : vector<1x32x96xf32> to vector<32x96xf32>
    %cst_26 = arith.constant dense<0.000000e+00> : vector<34x96xf32>
    %44 = tpu.matmul %41, %43, %cst_26 {dimension_numbers = #tpu.dot_dimension_numbers<[1], [0], [0], [1], [0, 0, 1, 1], [], []>} : vector<34x32xf32>, vector<32x96xf32>, vector<34x96xf32> -> vector<34x96xf32>
    %c0_27 = arith.constant 0 : index
    %c0_28 = arith.constant 0 : index
    %c0_29 = arith.constant 0 : index
    %45 = vector.load %arg9[%c0_27, %c0_28, %c0_29] : memref<2x1x96xf32, #tpu.memory_space<vmem>>, vector<1x1x96xf32>
    %46 = vector.shape_cast %45 : vector<1x1x96xf32> to vector<1x96xf32>
    %47 = vector.broadcast %46 : vector<1x96xf32> to vector<34x96xf32>
    %48 = arith.addf %44, %47 : vector<34x96xf32>
    %c0_30 = arith.constant 0 : index
    %c0_31 = arith.constant 0 : index
    %c0_32 = arith.constant 0 : index
    %49 = vector.load %arg10[%c0_30, %c0_31, %c0_32] : memref<2x32x32xf32, #tpu.memory_space<vmem>>, vector<1x32x32xf32>
    %50 = vector.shape_cast %49 : vector<1x32x32xf32> to vector<32x32xf32>
    %cst_33 = arith.constant 0.000000e+00 : f32
    %51 = vector.broadcast %cst_33 : f32 to vector<34x32xf32>
    %52 = vector.extract_strided_slice %48 {offsets = [0, 0], sizes = [34, 8], strides = [1, 1]} : vector<34x96xf32> to vector<34x8xf32>
    %53 = vector.extract_strided_slice %48 {offsets = [0, 32], sizes = [34, 8], strides = [1, 1]} : vector<34x96xf32> to vector<34x8xf32>
    %54 = vector.extract_strided_slice %48 {offsets = [0, 64], sizes = [34, 8], strides = [1, 1]} : vector<34x96xf32> to vector<34x8xf32>
    %cst_34 = arith.constant dense<0.000000e+00> : vector<34x34xf32>
    %55 = tpu.matmul %52, %53, %cst_34 {dimension_numbers = #tpu.dot_dimension_numbers<[1], [1], [0], [0], [0, 0, 1, 0], [], []>} : vector<34x8xf32>, vector<34x8xf32>, vector<34x34xf32> -> vector<34x34xf32>
    %56 = arith.addf %55, %15 : vector<34x34xf32>
    %cst_35 = arith.constant dense<0xFF800000> : vector<34xf32>
    %57 = vector.multi_reduction <maximumf>, %56, %cst_35 [1] : vector<34x34xf32> to vector<34xf32>
    %58 = vector.shape_cast %57 : vector<34xf32> to vector<34x1xf32>
    %59 = vector.broadcast %58 : vector<34x1xf32> to vector<34x34xf32>
    %60 = arith.subf %56, %59 : vector<34x34xf32>
    %61 = math.exp %60 : vector<34x34xf32>
    %cst_36 = arith.constant dense<0.000000e+00> : vector<34xf32>
    %62 = vector.multi_reduction <add>, %61, %cst_36 [1] : vector<34x34xf32> to vector<34xf32>
    %63 = vector.shape_cast %62 : vector<34xf32> to vector<34x1xf32>
    %64 = tpu.reciprocal %63 {approx = true} : vector<34x1xf32> -> vector<34x1xf32>
    %65 = vector.broadcast %64 : vector<34x1xf32> to vector<34x34xf32>
    %66 = arith.mulf %61, %65 : vector<34x34xf32>
    %cst_37 = arith.constant dense<0.000000e+00> : vector<34x8xf32>
    %67 = tpu.matmul %66, %54, %cst_37 {dimension_numbers = #tpu.dot_dimension_numbers<[1], [0], [0], [1], [0, 0, 1, 1], [], []>} : vector<34x34xf32>, vector<34x8xf32>, vector<34x8xf32> -> vector<34x8xf32>
    %68 = vector.extract_strided_slice %50 {offsets = [0, 0], sizes = [8, 32], strides = [1, 1]} : vector<32x32xf32> to vector<8x32xf32>
    %cst_38 = arith.constant dense<0.000000e+00> : vector<34x32xf32>
    %69 = tpu.matmul %67, %68, %cst_38 {dimension_numbers = #tpu.dot_dimension_numbers<[1], [0], [0], [1], [0, 0, 1, 1], [], []>} : vector<34x8xf32>, vector<8x32xf32>, vector<34x32xf32> -> vector<34x32xf32>
    %70 = arith.addf %51, %69 : vector<34x32xf32>
    %71 = vector.extract_strided_slice %48 {offsets = [0, 8], sizes = [34, 8], strides = [1, 1]} : vector<34x96xf32> to vector<34x8xf32>
    %72 = vector.extract_strided_slice %48 {offsets = [0, 40], sizes = [34, 8], strides = [1, 1]} : vector<34x96xf32> to vector<34x8xf32>
    %73 = vector.extract_strided_slice %48 {offsets = [0, 72], sizes = [34, 8], strides = [1, 1]} : vector<34x96xf32> to vector<34x8xf32>
    %cst_39 = arith.constant dense<0.000000e+00> : vector<34x34xf32>
    %74 = tpu.matmul %71, %72, %cst_39 {dimension_numbers = #tpu.dot_dimension_numbers<[1], [1], [0], [0], [0, 0, 1, 0], [], []>} : vector<34x8xf32>, vector<34x8xf32>, vector<34x34xf32> -> vector<34x34xf32>
    %75 = arith.addf %74, %15 : vector<34x34xf32>
    %cst_40 = arith.constant dense<0xFF800000> : vector<34xf32>
    %76 = vector.multi_reduction <maximumf>, %75, %cst_40 [1] : vector<34x34xf32> to vector<34xf32>
    %77 = vector.shape_cast %76 : vector<34xf32> to vector<34x1xf32>
    %78 = vector.broadcast %77 : vector<34x1xf32> to vector<34x34xf32>
    %79 = arith.subf %75, %78 : vector<34x34xf32>
    %80 = math.exp %79 : vector<34x34xf32>
    %cst_41 = arith.constant dense<0.000000e+00> : vector<34xf32>
    %81 = vector.multi_reduction <add>, %80, %cst_41 [1] : vector<34x34xf32> to vector<34xf32>
    %82 = vector.shape_cast %81 : vector<34xf32> to vector<34x1xf32>
    %83 = tpu.reciprocal %82 {approx = true} : vector<34x1xf32> -> vector<34x1xf32>
    %84 = vector.broadcast %83 : vector<34x1xf32> to vector<34x34xf32>
    %85 = arith.mulf %80, %84 : vector<34x34xf32>
    %cst_42 = arith.constant dense<0.000000e+00> : vector<34x8xf32>
    %86 = tpu.matmul %85, %73, %cst_42 {dimension_numbers = #tpu.dot_dimension_numbers<[1], [0], [0], [1], [0, 0, 1, 1], [], []>} : vector<34x34xf32>, vector<34x8xf32>, vector<34x8xf32> -> vector<34x8xf32>
    %87 = vector.extract_strided_slice %50 {offsets = [8, 0], sizes = [8, 32], strides = [1, 1]} : vector<32x32xf32> to vector<8x32xf32>
    %cst_43 = arith.constant dense<0.000000e+00> : vector<34x32xf32>
    %88 = tpu.matmul %86, %87, %cst_43 {dimension_numbers = #tpu.dot_dimension_numbers<[1], [0], [0], [1], [0, 0, 1, 1], [], []>} : vector<34x8xf32>, vector<8x32xf32>, vector<34x32xf32> -> vector<34x32xf32>
    %89 = arith.addf %70, %88 : vector<34x32xf32>
    %90 = vector.extract_strided_slice %48 {offsets = [0, 16], sizes = [34, 8], strides = [1, 1]} : vector<34x96xf32> to vector<34x8xf32>
    %91 = vector.extract_strided_slice %48 {offsets = [0, 48], sizes = [34, 8], strides = [1, 1]} : vector<34x96xf32> to vector<34x8xf32>
    %92 = vector.extract_strided_slice %48 {offsets = [0, 80], sizes = [34, 8], strides = [1, 1]} : vector<34x96xf32> to vector<34x8xf32>
    %cst_44 = arith.constant dense<0.000000e+00> : vector<34x34xf32>
    %93 = tpu.matmul %90, %91, %cst_44 {dimension_numbers = #tpu.dot_dimension_numbers<[1], [1], [0], [0], [0, 0, 1, 0], [], []>} : vector<34x8xf32>, vector<34x8xf32>, vector<34x34xf32> -> vector<34x34xf32>
    %94 = arith.addf %93, %15 : vector<34x34xf32>
    %cst_45 = arith.constant dense<0xFF800000> : vector<34xf32>
    %95 = vector.multi_reduction <maximumf>, %94, %cst_45 [1] : vector<34x34xf32> to vector<34xf32>
    %96 = vector.shape_cast %95 : vector<34xf32> to vector<34x1xf32>
    %97 = vector.broadcast %96 : vector<34x1xf32> to vector<34x34xf32>
    %98 = arith.subf %94, %97 : vector<34x34xf32>
    %99 = math.exp %98 : vector<34x34xf32>
    %cst_46 = arith.constant dense<0.000000e+00> : vector<34xf32>
    %100 = vector.multi_reduction <add>, %99, %cst_46 [1] : vector<34x34xf32> to vector<34xf32>
    %101 = vector.shape_cast %100 : vector<34xf32> to vector<34x1xf32>
    %102 = tpu.reciprocal %101 {approx = true} : vector<34x1xf32> -> vector<34x1xf32>
    %103 = vector.broadcast %102 : vector<34x1xf32> to vector<34x34xf32>
    %104 = arith.mulf %99, %103 : vector<34x34xf32>
    %cst_47 = arith.constant dense<0.000000e+00> : vector<34x8xf32>
    %105 = tpu.matmul %104, %92, %cst_47 {dimension_numbers = #tpu.dot_dimension_numbers<[1], [0], [0], [1], [0, 0, 1, 1], [], []>} : vector<34x34xf32>, vector<34x8xf32>, vector<34x8xf32> -> vector<34x8xf32>
    %106 = vector.extract_strided_slice %50 {offsets = [16, 0], sizes = [8, 32], strides = [1, 1]} : vector<32x32xf32> to vector<8x32xf32>
    %cst_48 = arith.constant dense<0.000000e+00> : vector<34x32xf32>
    %107 = tpu.matmul %105, %106, %cst_48 {dimension_numbers = #tpu.dot_dimension_numbers<[1], [0], [0], [1], [0, 0, 1, 1], [], []>} : vector<34x8xf32>, vector<8x32xf32>, vector<34x32xf32> -> vector<34x32xf32>
    %108 = arith.addf %89, %107 : vector<34x32xf32>
    %109 = vector.extract_strided_slice %48 {offsets = [0, 24], sizes = [34, 8], strides = [1, 1]} : vector<34x96xf32> to vector<34x8xf32>
    %110 = vector.extract_strided_slice %48 {offsets = [0, 56], sizes = [34, 8], strides = [1, 1]} : vector<34x96xf32> to vector<34x8xf32>
    %111 = vector.extract_strided_slice %48 {offsets = [0, 88], sizes = [34, 8], strides = [1, 1]} : vector<34x96xf32> to vector<34x8xf32>
    %cst_49 = arith.constant dense<0.000000e+00> : vector<34x34xf32>
    %112 = tpu.matmul %109, %110, %cst_49 {dimension_numbers = #tpu.dot_dimension_numbers<[1], [1], [0], [0], [0, 0, 1, 0], [], []>} : vector<34x8xf32>, vector<34x8xf32>, vector<34x34xf32> -> vector<34x34xf32>
    %113 = arith.addf %112, %15 : vector<34x34xf32>
    %cst_50 = arith.constant dense<0xFF800000> : vector<34xf32>
    %114 = vector.multi_reduction <maximumf>, %113, %cst_50 [1] : vector<34x34xf32> to vector<34xf32>
    %115 = vector.shape_cast %114 : vector<34xf32> to vector<34x1xf32>
    %116 = vector.broadcast %115 : vector<34x1xf32> to vector<34x34xf32>
    %117 = arith.subf %113, %116 : vector<34x34xf32>
    %118 = math.exp %117 : vector<34x34xf32>
    %cst_51 = arith.constant dense<0.000000e+00> : vector<34xf32>
    %119 = vector.multi_reduction <add>, %118, %cst_51 [1] : vector<34x34xf32> to vector<34xf32>
    %120 = vector.shape_cast %119 : vector<34xf32> to vector<34x1xf32>
    %121 = tpu.reciprocal %120 {approx = true} : vector<34x1xf32> -> vector<34x1xf32>
    %122 = vector.broadcast %121 : vector<34x1xf32> to vector<34x34xf32>
    %123 = arith.mulf %118, %122 : vector<34x34xf32>
    %cst_52 = arith.constant dense<0.000000e+00> : vector<34x8xf32>
    %124 = tpu.matmul %123, %111, %cst_52 {dimension_numbers = #tpu.dot_dimension_numbers<[1], [0], [0], [1], [0, 0, 1, 1], [], []>} : vector<34x34xf32>, vector<34x8xf32>, vector<34x8xf32> -> vector<34x8xf32>
    %125 = vector.extract_strided_slice %50 {offsets = [24, 0], sizes = [8, 32], strides = [1, 1]} : vector<32x32xf32> to vector<8x32xf32>
    %cst_53 = arith.constant dense<0.000000e+00> : vector<34x32xf32>
    %126 = tpu.matmul %124, %125, %cst_53 {dimension_numbers = #tpu.dot_dimension_numbers<[1], [0], [0], [1], [0, 0, 1, 1], [], []>} : vector<34x8xf32>, vector<8x32xf32>, vector<34x32xf32> -> vector<34x32xf32>
    %127 = arith.addf %108, %126 : vector<34x32xf32>
    %128 = arith.addf %14, %127 : vector<34x32xf32>
    %c0_54 = arith.constant 0 : index
    %c0_55 = arith.constant 0 : index
    %c0_56 = arith.constant 0 : index
    %129 = vector.load %arg11[%c0_54, %c0_55, %c0_56] : memref<2x1x32xf32, #tpu.memory_space<vmem>>, vector<1x1x32xf32>
    %130 = vector.shape_cast %129 : vector<1x1x32xf32> to vector<1x32xf32>
    %131 = vector.broadcast %130 : vector<1x32xf32> to vector<34x32xf32>
    %132 = arith.addf %128, %131 : vector<34x32xf32>
    %c0_57 = arith.constant 0 : index
    %c0_58 = arith.constant 0 : index
    %c0_59 = arith.constant 0 : index
    %133 = vector.load %arg12[%c0_57, %c0_58, %c0_59] : memref<2x1x32xf32, #tpu.memory_space<vmem>>, vector<1x1x32xf32>
    %134 = vector.shape_cast %133 : vector<1x1x32xf32> to vector<1x32xf32>
    %c0_60 = arith.constant 0 : index
    %c0_61 = arith.constant 0 : index
    %c0_62 = arith.constant 0 : index
    %135 = vector.load %arg13[%c0_60, %c0_61, %c0_62] : memref<2x1x32xf32, #tpu.memory_space<vmem>>, vector<1x1x32xf32>
    %136 = vector.shape_cast %135 : vector<1x1x32xf32> to vector<1x32xf32>
    %cst_63 = arith.constant dense<0.000000e+00> : vector<34xf32>
    %137 = vector.multi_reduction <add>, %132, %cst_63 [1] : vector<34x32xf32> to vector<34xf32>
    %138 = vector.shape_cast %137 : vector<34xf32> to vector<34x1xf32>
    %cst_64 = arith.constant 3.200000e+01 : f32
    %139 = vector.broadcast %cst_64 : f32 to vector<34x1xf32>
    %140 = arith.divf %138, %139 : vector<34x1xf32>
    %141 = vector.broadcast %140 : vector<34x1xf32> to vector<34x32xf32>
    %142 = arith.subf %132, %141 : vector<34x32xf32>
    %143 = arith.mulf %142, %142 : vector<34x32xf32>
    %cst_65 = arith.constant dense<0.000000e+00> : vector<34xf32>
    %144 = vector.multi_reduction <add>, %143, %cst_65 [1] : vector<34x32xf32> to vector<34xf32>
    %145 = vector.shape_cast %144 : vector<34xf32> to vector<34x1xf32>
    %cst_66 = arith.constant 3.200000e+01 : f32
    %146 = vector.broadcast %cst_66 : f32 to vector<34x1xf32>
    %147 = arith.divf %145, %146 : vector<34x1xf32>
    %148 = vector.broadcast %140 : vector<34x1xf32> to vector<34x32xf32>
    %149 = arith.subf %132, %148 : vector<34x32xf32>
    %cst_67 = arith.constant 9.99999996E-13 : f32
    %150 = vector.broadcast %cst_67 : f32 to vector<34x1xf32>
    %151 = arith.addf %147, %150 : vector<34x1xf32>
    %152 = math.rsqrt %151 : vector<34x1xf32>
    %153 = vector.broadcast %152 : vector<34x1xf32> to vector<34x32xf32>
    %154 = arith.mulf %149, %153 : vector<34x32xf32>
    %155 = vector.broadcast %134 : vector<1x32xf32> to vector<34x32xf32>
    %156 = arith.mulf %154, %155 : vector<34x32xf32>
    %157 = vector.broadcast %136 : vector<1x32xf32> to vector<34x32xf32>
    %158 = arith.addf %156, %157 : vector<34x32xf32>
    %c0_68 = arith.constant 0 : index
    %c0_69 = arith.constant 0 : index
    %c0_70 = arith.constant 0 : index
    %159 = vector.load %arg14[%c0_68, %c0_69, %c0_70] : memref<2x32x64xf32, #tpu.memory_space<vmem>>, vector<1x32x64xf32>
    %160 = vector.shape_cast %159 : vector<1x32x64xf32> to vector<32x64xf32>
    %cst_71 = arith.constant dense<0.000000e+00> : vector<34x64xf32>
    %161 = tpu.matmul %158, %160, %cst_71 {dimension_numbers = #tpu.dot_dimension_numbers<[1], [0], [0], [1], [0, 0, 1, 1], [], []>} : vector<34x32xf32>, vector<32x64xf32>, vector<34x64xf32> -> vector<34x64xf32>
    %c0_72 = arith.constant 0 : index
    %c0_73 = arith.constant 0 : index
    %c0_74 = arith.constant 0 : index
    %162 = vector.load %arg15[%c0_72, %c0_73, %c0_74] : memref<2x1x64xf32, #tpu.memory_space<vmem>>, vector<1x1x64xf32>
    %163 = vector.shape_cast %162 : vector<1x1x64xf32> to vector<1x64xf32>
    %164 = vector.broadcast %163 : vector<1x64xf32> to vector<34x64xf32>
    %165 = arith.addf %161, %164 : vector<34x64xf32>
    %166 = arith.mulf %165, %165 : vector<34x64xf32>
    %167 = arith.mulf %165, %166 : vector<34x64xf32>
    %cst_75 = arith.constant 4.471500e-02 : f32
    %168 = vector.broadcast %cst_75 : f32 to vector<34x64xf32>
    %169 = arith.mulf %168, %167 : vector<34x64xf32>
    %170 = arith.addf %165, %169 : vector<34x64xf32>
    %cst_76 = arith.constant 0.797884583 : f32
    %171 = vector.broadcast %cst_76 : f32 to vector<34x64xf32>
    %172 = arith.mulf %171, %170 : vector<34x64xf32>
    %173 = math.tanh %172 : vector<34x64xf32>
    %cst_77 = arith.constant 1.000000e+00 : f32
    %174 = vector.broadcast %cst_77 : f32 to vector<34x64xf32>
    %175 = arith.addf %174, %173 : vector<34x64xf32>
    %cst_78 = arith.constant 5.000000e-01 : f32
    %176 = vector.broadcast %cst_78 : f32 to vector<34x64xf32>
    %177 = arith.mulf %176, %175 : vector<34x64xf32>
    %178 = arith.mulf %165, %177 : vector<34x64xf32>
    %c0_79 = arith.constant 0 : index
    %c0_80 = arith.constant 0 : index
    %c0_81 = arith.constant 0 : index
    %179 = vector.load %arg16[%c0_79, %c0_80, %c0_81] : memref<2x64x32xf32, #tpu.memory_space<vmem>>, vector<1x64x32xf32>
    %180 = vector.shape_cast %179 : vector<1x64x32xf32> to vector<64x32xf32>
    %cst_82 = arith.constant dense<0.000000e+00> : vector<34x32xf32>
    %181 = tpu.matmul %178, %180, %cst_82 {dimension_numbers = #tpu.dot_dimension_numbers<[1], [0], [0], [1], [0, 0, 1, 1], [], []>} : vector<34x64xf32>, vector<64x32xf32>, vector<34x32xf32> -> vector<34x32xf32>
    %182 = arith.addf %132, %181 : vector<34x32xf32>
    %c0_83 = arith.constant 0 : index
    %c0_84 = arith.constant 0 : index
    %c0_85 = arith.constant 0 : index
    %183 = vector.load %arg17[%c0_83, %c0_84, %c0_85] : memref<2x1x32xf32, #tpu.memory_space<vmem>>, vector<1x1x32xf32>
    %184 = vector.shape_cast %183 : vector<1x1x32xf32> to vector<1x32xf32>
    %185 = vector.broadcast %184 : vector<1x32xf32> to vector<34x32xf32>
    %186 = arith.addf %182, %185 : vector<34x32xf32>
    %c1_86 = arith.constant 1 : index
    %c0_87 = arith.constant 0 : index
    %c0_88 = arith.constant 0 : index
    %187 = vector.load %arg6[%c1_86, %c0_87, %c0_88] : memref<2x1x32xf32, #tpu.memory_space<vmem>>, vector<1x1x32xf32>
    %188 = vector.shape_cast %187 : vector<1x1x32xf32> to vector<1x32xf32>
    %c1_89 = arith.constant 1 : index
    %c0_90 = arith.constant 0 : index
    %c0_91 = arith.constant 0 : index
    %189 = vector.load %arg7[%c1_89, %c0_90, %c0_91] : memref<2x1x32xf32, #tpu.memory_space<vmem>>, vector<1x1x32xf32>
    %190 = vector.shape_cast %189 : vector<1x1x32xf32> to vector<1x32xf32>
    %cst_92 = arith.constant dense<0.000000e+00> : vector<34xf32>
    %191 = vector.multi_reduction <add>, %186, %cst_92 [1] : vector<34x32xf32> to vector<34xf32>
    %192 = vector.shape_cast %191 : vector<34xf32> to vector<34x1xf32>
    %cst_93 = arith.constant 3.200000e+01 : f32
    %193 = vector.broadcast %cst_93 : f32 to vector<34x1xf32>
    %194 = arith.divf %192, %193 : vector<34x1xf32>
    %195 = vector.broadcast %194 : vector<34x1xf32> to vector<34x32xf32>
    %196 = arith.subf %186, %195 : vector<34x32xf32>
    %197 = arith.mulf %196, %196 : vector<34x32xf32>
    %cst_94 = arith.constant dense<0.000000e+00> : vector<34xf32>
    %198 = vector.multi_reduction <add>, %197, %cst_94 [1] : vector<34x32xf32> to vector<34xf32>
    %199 = vector.shape_cast %198 : vector<34xf32> to vector<34x1xf32>
    %cst_95 = arith.constant 3.200000e+01 : f32
    %200 = vector.broadcast %cst_95 : f32 to vector<34x1xf32>
    %201 = arith.divf %199, %200 : vector<34x1xf32>
    %202 = vector.broadcast %194 : vector<34x1xf32> to vector<34x32xf32>
    %203 = arith.subf %186, %202 : vector<34x32xf32>
    %cst_96 = arith.constant 9.99999996E-13 : f32
    %204 = vector.broadcast %cst_96 : f32 to vector<34x1xf32>
    %205 = arith.addf %201, %204 : vector<34x1xf32>
    %206 = math.rsqrt %205 : vector<34x1xf32>
    %207 = vector.broadcast %206 : vector<34x1xf32> to vector<34x32xf32>
    %208 = arith.mulf %203, %207 : vector<34x32xf32>
    %209 = vector.broadcast %188 : vector<1x32xf32> to vector<34x32xf32>
    %210 = arith.mulf %208, %209 : vector<34x32xf32>
    %211 = vector.broadcast %190 : vector<1x32xf32> to vector<34x32xf32>
    %212 = arith.addf %210, %211 : vector<34x32xf32>
    %c1_97 = arith.constant 1 : index
    %c0_98 = arith.constant 0 : index
    %c0_99 = arith.constant 0 : index
    %213 = vector.load %arg8[%c1_97, %c0_98, %c0_99] : memref<2x32x96xf32, #tpu.memory_space<vmem>>, vector<1x32x96xf32>
    %214 = vector.shape_cast %213 : vector<1x32x96xf32> to vector<32x96xf32>
    %cst_100 = arith.constant dense<0.000000e+00> : vector<34x96xf32>
    %215 = tpu.matmul %212, %214, %cst_100 {dimension_numbers = #tpu.dot_dimension_numbers<[1], [0], [0], [1], [0, 0, 1, 1], [], []>} : vector<34x32xf32>, vector<32x96xf32>, vector<34x96xf32> -> vector<34x96xf32>
    %c1_101 = arith.constant 1 : index
    %c0_102 = arith.constant 0 : index
    %c0_103 = arith.constant 0 : index
    %216 = vector.load %arg9[%c1_101, %c0_102, %c0_103] : memref<2x1x96xf32, #tpu.memory_space<vmem>>, vector<1x1x96xf32>
    %217 = vector.shape_cast %216 : vector<1x1x96xf32> to vector<1x96xf32>
    %218 = vector.broadcast %217 : vector<1x96xf32> to vector<34x96xf32>
    %219 = arith.addf %215, %218 : vector<34x96xf32>
    %c1_104 = arith.constant 1 : index
    %c0_105 = arith.constant 0 : index
    %c0_106 = arith.constant 0 : index
    %220 = vector.load %arg10[%c1_104, %c0_105, %c0_106] : memref<2x32x32xf32, #tpu.memory_space<vmem>>, vector<1x32x32xf32>
    %221 = vector.shape_cast %220 : vector<1x32x32xf32> to vector<32x32xf32>
    %cst_107 = arith.constant 0.000000e+00 : f32
    %222 = vector.broadcast %cst_107 : f32 to vector<34x32xf32>
    %223 = vector.extract_strided_slice %219 {offsets = [0, 0], sizes = [34, 8], strides = [1, 1]} : vector<34x96xf32> to vector<34x8xf32>
    %224 = vector.extract_strided_slice %219 {offsets = [0, 32], sizes = [34, 8], strides = [1, 1]} : vector<34x96xf32> to vector<34x8xf32>
    %225 = vector.extract_strided_slice %219 {offsets = [0, 64], sizes = [34, 8], strides = [1, 1]} : vector<34x96xf32> to vector<34x8xf32>
    %cst_108 = arith.constant dense<0.000000e+00> : vector<34x34xf32>
    %226 = tpu.matmul %223, %224, %cst_108 {dimension_numbers = #tpu.dot_dimension_numbers<[1], [1], [0], [0], [0, 0, 1, 0], [], []>} : vector<34x8xf32>, vector<34x8xf32>, vector<34x34xf32> -> vector<34x34xf32>
    %227 = arith.addf %226, %15 : vector<34x34xf32>
    %cst_109 = arith.constant dense<0xFF800000> : vector<34xf32>
    %228 = vector.multi_reduction <maximumf>, %227, %cst_109 [1] : vector<34x34xf32> to vector<34xf32>
    %229 = vector.shape_cast %228 : vector<34xf32> to vector<34x1xf32>
    %230 = vector.broadcast %229 : vector<34x1xf32> to vector<34x34xf32>
    %231 = arith.subf %227, %230 : vector<34x34xf32>
    %232 = math.exp %231 : vector<34x34xf32>
    %cst_110 = arith.constant dense<0.000000e+00> : vector<34xf32>
    %233 = vector.multi_reduction <add>, %232, %cst_110 [1] : vector<34x34xf32> to vector<34xf32>
    %234 = vector.shape_cast %233 : vector<34xf32> to vector<34x1xf32>
    %235 = tpu.reciprocal %234 {approx = true} : vector<34x1xf32> -> vector<34x1xf32>
    %236 = vector.broadcast %235 : vector<34x1xf32> to vector<34x34xf32>
    %237 = arith.mulf %232, %236 : vector<34x34xf32>
    %cst_111 = arith.constant dense<0.000000e+00> : vector<34x8xf32>
    %238 = tpu.matmul %237, %225, %cst_111 {dimension_numbers = #tpu.dot_dimension_numbers<[1], [0], [0], [1], [0, 0, 1, 1], [], []>} : vector<34x34xf32>, vector<34x8xf32>, vector<34x8xf32> -> vector<34x8xf32>
    %239 = vector.extract_strided_slice %221 {offsets = [0, 0], sizes = [8, 32], strides = [1, 1]} : vector<32x32xf32> to vector<8x32xf32>
    %cst_112 = arith.constant dense<0.000000e+00> : vector<34x32xf32>
    %240 = tpu.matmul %238, %239, %cst_112 {dimension_numbers = #tpu.dot_dimension_numbers<[1], [0], [0], [1], [0, 0, 1, 1], [], []>} : vector<34x8xf32>, vector<8x32xf32>, vector<34x32xf32> -> vector<34x32xf32>
    %241 = arith.addf %222, %240 : vector<34x32xf32>
    %242 = vector.extract_strided_slice %219 {offsets = [0, 8], sizes = [34, 8], strides = [1, 1]} : vector<34x96xf32> to vector<34x8xf32>
    %243 = vector.extract_strided_slice %219 {offsets = [0, 40], sizes = [34, 8], strides = [1, 1]} : vector<34x96xf32> to vector<34x8xf32>
    %244 = vector.extract_strided_slice %219 {offsets = [0, 72], sizes = [34, 8], strides = [1, 1]} : vector<34x96xf32> to vector<34x8xf32>
    %cst_113 = arith.constant dense<0.000000e+00> : vector<34x34xf32>
    %245 = tpu.matmul %242, %243, %cst_113 {dimension_numbers = #tpu.dot_dimension_numbers<[1], [1], [0], [0], [0, 0, 1, 0], [], []>} : vector<34x8xf32>, vector<34x8xf32>, vector<34x34xf32> -> vector<34x34xf32>
    %246 = arith.addf %245, %15 : vector<34x34xf32>
    %cst_114 = arith.constant dense<0xFF800000> : vector<34xf32>
    %247 = vector.multi_reduction <maximumf>, %246, %cst_114 [1] : vector<34x34xf32> to vector<34xf32>
    %248 = vector.shape_cast %247 : vector<34xf32> to vector<34x1xf32>
    %249 = vector.broadcast %248 : vector<34x1xf32> to vector<34x34xf32>
    %250 = arith.subf %246, %249 : vector<34x34xf32>
    %251 = math.exp %250 : vector<34x34xf32>
    %cst_115 = arith.constant dense<0.000000e+00> : vector<34xf32>
    %252 = vector.multi_reduction <add>, %251, %cst_115 [1] : vector<34x34xf32> to vector<34xf32>
    %253 = vector.shape_cast %252 : vector<34xf32> to vector<34x1xf32>
    %254 = tpu.reciprocal %253 {approx = true} : vector<34x1xf32> -> vector<34x1xf32>
    %255 = vector.broadcast %254 : vector<34x1xf32> to vector<34x34xf32>
    %256 = arith.mulf %251, %255 : vector<34x34xf32>
    %cst_116 = arith.constant dense<0.000000e+00> : vector<34x8xf32>
    %257 = tpu.matmul %256, %244, %cst_116 {dimension_numbers = #tpu.dot_dimension_numbers<[1], [0], [0], [1], [0, 0, 1, 1], [], []>} : vector<34x34xf32>, vector<34x8xf32>, vector<34x8xf32> -> vector<34x8xf32>
    %258 = vector.extract_strided_slice %221 {offsets = [8, 0], sizes = [8, 32], strides = [1, 1]} : vector<32x32xf32> to vector<8x32xf32>
    %cst_117 = arith.constant dense<0.000000e+00> : vector<34x32xf32>
    %259 = tpu.matmul %257, %258, %cst_117 {dimension_numbers = #tpu.dot_dimension_numbers<[1], [0], [0], [1], [0, 0, 1, 1], [], []>} : vector<34x8xf32>, vector<8x32xf32>, vector<34x32xf32> -> vector<34x32xf32>
    %260 = arith.addf %241, %259 : vector<34x32xf32>
    %261 = vector.extract_strided_slice %219 {offsets = [0, 16], sizes = [34, 8], strides = [1, 1]} : vector<34x96xf32> to vector<34x8xf32>
    %262 = vector.extract_strided_slice %219 {offsets = [0, 48], sizes = [34, 8], strides = [1, 1]} : vector<34x96xf32> to vector<34x8xf32>
    %263 = vector.extract_strided_slice %219 {offsets = [0, 80], sizes = [34, 8], strides = [1, 1]} : vector<34x96xf32> to vector<34x8xf32>
    %cst_118 = arith.constant dense<0.000000e+00> : vector<34x34xf32>
    %264 = tpu.matmul %261, %262, %cst_118 {dimension_numbers = #tpu.dot_dimension_numbers<[1], [1], [0], [0], [0, 0, 1, 0], [], []>} : vector<34x8xf32>, vector<34x8xf32>, vector<34x34xf32> -> vector<34x34xf32>
    %265 = arith.addf %264, %15 : vector<34x34xf32>
    %cst_119 = arith.constant dense<0xFF800000> : vector<34xf32>
    %266 = vector.multi_reduction <maximumf>, %265, %cst_119 [1] : vector<34x34xf32> to vector<34xf32>
    %267 = vector.shape_cast %266 : vector<34xf32> to vector<34x1xf32>
    %268 = vector.broadcast %267 : vector<34x1xf32> to vector<34x34xf32>
    %269 = arith.subf %265, %268 : vector<34x34xf32>
    %270 = math.exp %269 : vector<34x34xf32>
    %cst_120 = arith.constant dense<0.000000e+00> : vector<34xf32>
    %271 = vector.multi_reduction <add>, %270, %cst_120 [1] : vector<34x34xf32> to vector<34xf32>
    %272 = vector.shape_cast %271 : vector<34xf32> to vector<34x1xf32>
    %273 = tpu.reciprocal %272 {approx = true} : vector<34x1xf32> -> vector<34x1xf32>
    %274 = vector.broadcast %273 : vector<34x1xf32> to vector<34x34xf32>
    %275 = arith.mulf %270, %274 : vector<34x34xf32>
    %cst_121 = arith.constant dense<0.000000e+00> : vector<34x8xf32>
    %276 = tpu.matmul %275, %263, %cst_121 {dimension_numbers = #tpu.dot_dimension_numbers<[1], [0], [0], [1], [0, 0, 1, 1], [], []>} : vector<34x34xf32>, vector<34x8xf32>, vector<34x8xf32> -> vector<34x8xf32>
    %277 = vector.extract_strided_slice %221 {offsets = [16, 0], sizes = [8, 32], strides = [1, 1]} : vector<32x32xf32> to vector<8x32xf32>
    %cst_122 = arith.constant dense<0.000000e+00> : vector<34x32xf32>
    %278 = tpu.matmul %276, %277, %cst_122 {dimension_numbers = #tpu.dot_dimension_numbers<[1], [0], [0], [1], [0, 0, 1, 1], [], []>} : vector<34x8xf32>, vector<8x32xf32>, vector<34x32xf32> -> vector<34x32xf32>
    %279 = arith.addf %260, %278 : vector<34x32xf32>
    %280 = vector.extract_strided_slice %219 {offsets = [0, 24], sizes = [34, 8], strides = [1, 1]} : vector<34x96xf32> to vector<34x8xf32>
    %281 = vector.extract_strided_slice %219 {offsets = [0, 56], sizes = [34, 8], strides = [1, 1]} : vector<34x96xf32> to vector<34x8xf32>
    %282 = vector.extract_strided_slice %219 {offsets = [0, 88], sizes = [34, 8], strides = [1, 1]} : vector<34x96xf32> to vector<34x8xf32>
    %cst_123 = arith.constant dense<0.000000e+00> : vector<34x34xf32>
    %283 = tpu.matmul %280, %281, %cst_123 {dimension_numbers = #tpu.dot_dimension_numbers<[1], [1], [0], [0], [0, 0, 1, 0], [], []>} : vector<34x8xf32>, vector<34x8xf32>, vector<34x34xf32> -> vector<34x34xf32>
    %284 = arith.addf %283, %15 : vector<34x34xf32>
    %cst_124 = arith.constant dense<0xFF800000> : vector<34xf32>
    %285 = vector.multi_reduction <maximumf>, %284, %cst_124 [1] : vector<34x34xf32> to vector<34xf32>
    %286 = vector.shape_cast %285 : vector<34xf32> to vector<34x1xf32>
    %287 = vector.broadcast %286 : vector<34x1xf32> to vector<34x34xf32>
    %288 = arith.subf %284, %287 : vector<34x34xf32>
    %289 = math.exp %288 : vector<34x34xf32>
    %cst_125 = arith.constant dense<0.000000e+00> : vector<34xf32>
    %290 = vector.multi_reduction <add>, %289, %cst_125 [1] : vector<34x34xf32> to vector<34xf32>
    %291 = vector.shape_cast %290 : vector<34xf32> to vector<34x1xf32>
    %292 = tpu.reciprocal %291 {approx = true} : vector<34x1xf32> -> vector<34x1xf32>
    %293 = vector.broadcast %292 : vector<34x1xf32> to vector<34x34xf32>
    %294 = arith.mulf %289, %293 : vector<34x34xf32>
    %cst_126 = arith.constant dense<0.000000e+00> : vector<34x8xf32>
    %295 = tpu.matmul %294, %282, %cst_126 {dimension_numbers = #tpu.dot_dimension_numbers<[1], [0], [0], [1], [0, 0, 1, 1], [], []>} : vector<34x34xf32>, vector<34x8xf32>, vector<34x8xf32> -> vector<34x8xf32>
    %296 = vector.extract_strided_slice %221 {offsets = [24, 0], sizes = [8, 32], strides = [1, 1]} : vector<32x32xf32> to vector<8x32xf32>
    %cst_127 = arith.constant dense<0.000000e+00> : vector<34x32xf32>
    %297 = tpu.matmul %295, %296, %cst_127 {dimension_numbers = #tpu.dot_dimension_numbers<[1], [0], [0], [1], [0, 0, 1, 1], [], []>} : vector<34x8xf32>, vector<8x32xf32>, vector<34x32xf32> -> vector<34x32xf32>
    %298 = arith.addf %279, %297 : vector<34x32xf32>
    %299 = arith.addf %186, %298 : vector<34x32xf32>
    %c1_128 = arith.constant 1 : index
    %c0_129 = arith.constant 0 : index
    %c0_130 = arith.constant 0 : index
    %300 = vector.load %arg11[%c1_128, %c0_129, %c0_130] : memref<2x1x32xf32, #tpu.memory_space<vmem>>, vector<1x1x32xf32>
    %301 = vector.shape_cast %300 : vector<1x1x32xf32> to vector<1x32xf32>
    %302 = vector.broadcast %301 : vector<1x32xf32> to vector<34x32xf32>
    %303 = arith.addf %299, %302 : vector<34x32xf32>
    %c1_131 = arith.constant 1 : index
    %c0_132 = arith.constant 0 : index
    %c0_133 = arith.constant 0 : index
    %304 = vector.load %arg12[%c1_131, %c0_132, %c0_133] : memref<2x1x32xf32, #tpu.memory_space<vmem>>, vector<1x1x32xf32>
    %305 = vector.shape_cast %304 : vector<1x1x32xf32> to vector<1x32xf32>
    %c1_134 = arith.constant 1 : index
    %c0_135 = arith.constant 0 : index
    %c0_136 = arith.constant 0 : index
    %306 = vector.load %arg13[%c1_134, %c0_135, %c0_136] : memref<2x1x32xf32, #tpu.memory_space<vmem>>, vector<1x1x32xf32>
    %307 = vector.shape_cast %306 : vector<1x1x32xf32> to vector<1x32xf32>
    %cst_137 = arith.constant dense<0.000000e+00> : vector<34xf32>
    %308 = vector.multi_reduction <add>, %303, %cst_137 [1] : vector<34x32xf32> to vector<34xf32>
    %309 = vector.shape_cast %308 : vector<34xf32> to vector<34x1xf32>
    %cst_138 = arith.constant 3.200000e+01 : f32
    %310 = vector.broadcast %cst_138 : f32 to vector<34x1xf32>
    %311 = arith.divf %309, %310 : vector<34x1xf32>
    %312 = vector.broadcast %311 : vector<34x1xf32> to vector<34x32xf32>
    %313 = arith.subf %303, %312 : vector<34x32xf32>
    %314 = arith.mulf %313, %313 : vector<34x32xf32>
    %cst_139 = arith.constant dense<0.000000e+00> : vector<34xf32>
    %315 = vector.multi_reduction <add>, %314, %cst_139 [1] : vector<34x32xf32> to vector<34xf32>
    %316 = vector.shape_cast %315 : vector<34xf32> to vector<34x1xf32>
    %cst_140 = arith.constant 3.200000e+01 : f32
    %317 = vector.broadcast %cst_140 : f32 to vector<34x1xf32>
    %318 = arith.divf %316, %317 : vector<34x1xf32>
    %319 = vector.broadcast %311 : vector<34x1xf32> to vector<34x32xf32>
    %320 = arith.subf %303, %319 : vector<34x32xf32>
    %cst_141 = arith.constant 9.99999996E-13 : f32
    %321 = vector.broadcast %cst_141 : f32 to vector<34x1xf32>
    %322 = arith.addf %318, %321 : vector<34x1xf32>
    %323 = math.rsqrt %322 : vector<34x1xf32>
    %324 = vector.broadcast %323 : vector<34x1xf32> to vector<34x32xf32>
    %325 = arith.mulf %320, %324 : vector<34x32xf32>
    %326 = vector.broadcast %305 : vector<1x32xf32> to vector<34x32xf32>
    %327 = arith.mulf %325, %326 : vector<34x32xf32>
    %328 = vector.broadcast %307 : vector<1x32xf32> to vector<34x32xf32>
    %329 = arith.addf %327, %328 : vector<34x32xf32>
    %c1_142 = arith.constant 1 : index
    %c0_143 = arith.constant 0 : index
    %c0_144 = arith.constant 0 : index
    %330 = vector.load %arg14[%c1_142, %c0_143, %c0_144] : memref<2x32x64xf32, #tpu.memory_space<vmem>>, vector<1x32x64xf32>
    %331 = vector.shape_cast %330 : vector<1x32x64xf32> to vector<32x64xf32>
    %cst_145 = arith.constant dense<0.000000e+00> : vector<34x64xf32>
    %332 = tpu.matmul %329, %331, %cst_145 {dimension_numbers = #tpu.dot_dimension_numbers<[1], [0], [0], [1], [0, 0, 1, 1], [], []>} : vector<34x32xf32>, vector<32x64xf32>, vector<34x64xf32> -> vector<34x64xf32>
    %c1_146 = arith.constant 1 : index
    %c0_147 = arith.constant 0 : index
    %c0_148 = arith.constant 0 : index
    %333 = vector.load %arg15[%c1_146, %c0_147, %c0_148] : memref<2x1x64xf32, #tpu.memory_space<vmem>>, vector<1x1x64xf32>
    %334 = vector.shape_cast %333 : vector<1x1x64xf32> to vector<1x64xf32>
    %335 = vector.broadcast %334 : vector<1x64xf32> to vector<34x64xf32>
    %336 = arith.addf %332, %335 : vector<34x64xf32>
    %337 = arith.mulf %336, %336 : vector<34x64xf32>
    %338 = arith.mulf %336, %337 : vector<34x64xf32>
    %cst_149 = arith.constant 4.471500e-02 : f32
    %339 = vector.broadcast %cst_149 : f32 to vector<34x64xf32>
    %340 = arith.mulf %339, %338 : vector<34x64xf32>
    %341 = arith.addf %336, %340 : vector<34x64xf32>
    %cst_150 = arith.constant 0.797884583 : f32
    %342 = vector.broadcast %cst_150 : f32 to vector<34x64xf32>
    %343 = arith.mulf %342, %341 : vector<34x64xf32>
    %344 = math.tanh %343 : vector<34x64xf32>
    %cst_151 = arith.constant 1.000000e+00 : f32
    %345 = vector.broadcast %cst_151 : f32 to vector<34x64xf32>
    %346 = arith.addf %345, %344 : vector<34x64xf32>
    %cst_152 = arith.constant 5.000000e-01 : f32
    %347 = vector.broadcast %cst_152 : f32 to vector<34x64xf32>
    %348 = arith.mulf %347, %346 : vector<34x64xf32>
    %349 = arith.mulf %336, %348 : vector<34x64xf32>
    %c1_153 = arith.constant 1 : index
    %c0_154 = arith.constant 0 : index
    %c0_155 = arith.constant 0 : index
    %350 = vector.load %arg16[%c1_153, %c0_154, %c0_155] : memref<2x64x32xf32, #tpu.memory_space<vmem>>, vector<1x64x32xf32>
    %351 = vector.shape_cast %350 : vector<1x64x32xf32> to vector<64x32xf32>
    %cst_156 = arith.constant dense<0.000000e+00> : vector<34x32xf32>
    %352 = tpu.matmul %349, %351, %cst_156 {dimension_numbers = #tpu.dot_dimension_numbers<[1], [0], [0], [1], [0, 0, 1, 1], [], []>} : vector<34x64xf32>, vector<64x32xf32>, vector<34x32xf32> -> vector<34x32xf32>
    %353 = arith.addf %303, %352 : vector<34x32xf32>
    %c1_157 = arith.constant 1 : index
    %c0_158 = arith.constant 0 : index
    %c0_159 = arith.constant 0 : index
    %354 = vector.load %arg17[%c1_157, %c0_158, %c0_159] : memref<2x1x32xf32, #tpu.memory_space<vmem>>, vector<1x1x32xf32>
    %355 = vector.shape_cast %354 : vector<1x1x32xf32> to vector<1x32xf32>
    %356 = vector.broadcast %355 : vector<1x32xf32> to vector<34x32xf32>
    %357 = arith.addf %353, %356 : vector<34x32xf32>
    %358 = vector.extract_strided_slice %357 {offsets = [0, 0], sizes = [1, 32], strides = [1, 1]} : vector<34x32xf32> to vector<1x32xf32>
    %359 = vector.extract_strided_slice %357 {offsets = [17, 0], sizes = [1, 32], strides = [1, 1]} : vector<34x32xf32> to vector<1x32xf32>
    %360 = tpu.concatenate %358, %359 in 0 : vector<1x32xf32>, vector<1x32xf32> -> vector<2x32xf32>
    %c0_160 = arith.constant 0 : index
    %c0_161 = arith.constant 0 : index
    %361 = vector.load %arg18[%c0_160, %c0_161] : memref<1x32xf32, #tpu.memory_space<vmem>>, vector<1x32xf32>
    %c0_162 = arith.constant 0 : index
    %c0_163 = arith.constant 0 : index
    %362 = vector.load %arg19[%c0_162, %c0_163] : memref<1x32xf32, #tpu.memory_space<vmem>>, vector<1x32xf32>
    %cst_164 = arith.constant dense<0.000000e+00> : vector<2xf32>
    %363 = vector.multi_reduction <add>, %360, %cst_164 [1] : vector<2x32xf32> to vector<2xf32>
    %364 = vector.shape_cast %363 : vector<2xf32> to vector<2x1xf32>
    %cst_165 = arith.constant 3.200000e+01 : f32
    %365 = vector.broadcast %cst_165 : f32 to vector<2x1xf32>
    %366 = arith.divf %364, %365 : vector<2x1xf32>
    %367 = vector.broadcast %366 : vector<2x1xf32> to vector<2x32xf32>
    %368 = arith.subf %360, %367 : vector<2x32xf32>
    %369 = arith.mulf %368, %368 : vector<2x32xf32>
    %cst_166 = arith.constant dense<0.000000e+00> : vector<2xf32>
    %370 = vector.multi_reduction <add>, %369, %cst_166 [1] : vector<2x32xf32> to vector<2xf32>
    %371 = vector.shape_cast %370 : vector<2xf32> to vector<2x1xf32>
    %cst_167 = arith.constant 3.200000e+01 : f32
    %372 = vector.broadcast %cst_167 : f32 to vector<2x1xf32>
    %373 = arith.divf %371, %372 : vector<2x1xf32>
    %374 = vector.broadcast %366 : vector<2x1xf32> to vector<2x32xf32>
    %375 = arith.subf %360, %374 : vector<2x32xf32>
    %cst_168 = arith.constant 9.99999996E-13 : f32
    %376 = vector.broadcast %cst_168 : f32 to vector<2x1xf32>
    %377 = arith.addf %373, %376 : vector<2x1xf32>
    %378 = math.rsqrt %377 : vector<2x1xf32>
    %379 = vector.broadcast %378 : vector<2x1xf32> to vector<2x32xf32>
    %380 = arith.mulf %375, %379 : vector<2x32xf32>
    %381 = vector.broadcast %361 : vector<1x32xf32> to vector<2x32xf32>
    %382 = arith.mulf %380, %381 : vector<2x32xf32>
    %383 = vector.broadcast %362 : vector<1x32xf32> to vector<2x32xf32>
    %384 = arith.addf %382, %383 : vector<2x32xf32>
    %c0_169 = arith.constant 0 : index
    %c0_170 = arith.constant 0 : index
    %385 = vector.load %arg20[%c0_169, %c0_170] : memref<32x128xf32, #tpu.memory_space<vmem>>, vector<32x128xf32>
    %cst_171 = arith.constant dense<0.000000e+00> : vector<2x128xf32>
    %386 = tpu.matmul %384, %385, %cst_171 {dimension_numbers = #tpu.dot_dimension_numbers<[1], [0], [0], [1], [0, 0, 1, 1], [], []>} : vector<2x32xf32>, vector<32x128xf32>, vector<2x128xf32> -> vector<2x128xf32>
    %c0_172 = arith.constant 0 : index
    %c0_173 = arith.constant 0 : index
    %387 = vector.load %arg21[%c0_172, %c0_173] : memref<1x128xf32, #tpu.memory_space<vmem>>, vector<1x128xf32>
    %388 = vector.broadcast %387 : vector<1x128xf32> to vector<2x128xf32>
    %389 = arith.addf %386, %388 : vector<2x128xf32>
    %c0_174 = arith.constant 0 : index
    %c0_175 = arith.constant 0 : index
    %390 = vector.load %arg22[%c0_174, %c0_175] : memref<2x128xf32, #tpu.memory_space<vmem>>, vector<2x128xf32>
    tpu.vector_store %arg22[%c0_174, %c0_175], %389 {strides = array<i32>} : memref<2x128xf32, #tpu.memory_space<vmem>>, vector<2x128xf32>,
    return
  }
}

</mosaic_0001>

<bundles_post_ra>
// kernel: vit_forward.1
= control target key start
LH: loop header
LB: loop body
LE: loop exit
PB: predicated region body
PF: predicated region fallthrough
CT: control target
= control target key end

     0   :  { %s8472_s0 = inlined_call_operand.vmem [shape: f32[32,64], index: 0, kind: input, shape index: {}]   ;;  %s8473_s1 = inlined_call_operand.vmem [shape: f32[34,34], index: 1, kind: input, shape index: {}]   ;;  %s8474_s2 = inlined_call_operand.vmem [shape: f32[64,32], index: 2, kind: input, shape index: {}]   ;;  %s8475_s3 = inlined_call_operand.vmem [shape: f32[1,32], index: 3, kind: input, shape index: {}]   ;;  %s8476_s4 = inlined_call_operand.vmem [shape: f32[1,32], index: 4, kind: input, shape index: {}]   ;;  %s8477_s5 = inlined_call_operand.vmem [shape: f32[17,32], index: 5, kind: input, shape index: {}]   ;;  %s8478_s6 = inlined_call_operand.vmem [shape: f32[2,1,32], index: 6, kind: input, shape index: {}]   ;;  %s8479_s7 = inlined_call_operand.vmem [shape: f32[2,1,32], index: 7, kind: input, shape index: {}]   ;;  %s8480_s8 = inlined_call_operand.vmem [shape: f32[2,32,96], index: 8, kind: input, shape index: {}]   ;;  %s8481_s9 = inlined_call_operand.vmem [shape: f32[2,1,96], index: 9, kind: input, shape index: {}]   ;;  %s8482_s10 = inlined_call_operand.vmem [shape: f32[2,32,32], index: 10, kind: input, shape index: {}]   ;;  %s8483_s11 = inlined_call_operand.vmem [shape: f32[2,1,32], index: 11, kind: input, shape index: {}]   ;;  %s8484_s12 = inlined_call_operand.vmem [shape: f32[2,1,32], index: 12, kind: input, shape index: {}]   ;;  %s8485_s13 = inlined_call_operand.vmem [shape: f32[2,1,32], index: 13, kind: input, shape index: {}]   ;;  %s8486_s14 = inlined_call_operand.vmem [shape: f32[2,32,64], index: 14, kind: input, shape index: {}]   ;;  %s8487_s15 = inlined_call_operand.vmem [shape: f32[2,1,64], index: 15, kind: input, shape index: {}]   ;;  %s8488_s16 = inlined_call_operand.vmem [shape: f32[2,64,32], index: 16, kind: input, shape index: {}]   ;;  %s8489_s17 = inlined_call_operand.vmem [shape: f32[2,1,32], index: 17, kind: input, shape index: {}]   ;;  %s8490_s18 = inlined_call_operand.vmem [shape: f32[1,32], index: 18, kind: input, shape index: {}]   ;;  %s8491_s19 = inlined_call_operand.vmem [shape: f32[1,32], index: 19, kind: input, shape index: {}]   ;;  %s8492_s20 = inlined_call_operand.vmem [shape: f32[32,128], index: 20, kind: input, shape index: {}]   ;;  %s8493_s21 = inlined_call_operand.vmem [shape: f32[1,128], index: 21, kind: input, shape index: {}]   ;;  %s8494_s22 = inlined_call_operand.hbm [shape: f32[2,128], index: 22, kind: output, shape index: {}]  }
   0x1   :  { %8512 = sst [smem:[#allocation5_spill]] %s8472_s0 }
   0x2   :  { %8513 = sst [smem:[#allocation6_spill]] %s8473_s1 }
   0x3   :  { %8514 = sst [smem:[#allocation7_spill]] %s8474_s2 }
   0x4   :  { %8515 = sst [smem:[#allocation8_spill]] %s8475_s3 }
   0x5   :  { %8516 = sst [smem:[#allocation9_spill]] %s8476_s4 }
   0x6   :  { %8517 = sst [smem:[#allocation10_spill]] %s8477_s5 }
   0x7   :  { %8518 = sst [smem:[#allocation11_spill]] %s8478_s6 }
   0x8   :  { %s8519_s29 = sld [smem:[#allocation7_spill]]  ;;  %vm91_vm0 = vcmask 523264   ;;  %s8520_s3 = sld [smem:[#allocation5_spill]] }
   0xe   :  { %v76_v0 = vld [vmem:[%s8519_s29] sm:$0xff]  ;;  %v77_v1 = vld [vmem:[%s8519_s29 + $0x8] sm:$0xff]  ;;  %v78_v2 = vld [vmem:[%s8519_s29 + $0x10] sm:$0xff] }
   0xf   :  { %v6139_v3 = vpack.c.bf16 %v77_v1, %v76_v0  ;;  %v79_v4 = vld [vmem:[%s8519_s29 + $0x18] sm:$0xff]  ;;  %v80_v6 = vld [vmem:[%s8519_s29 + $0x20] sm:$0xff]  ;;  %v81_v7 = vld [vmem:[%s8519_s29 + $0x28] sm:$0xff] }
  0x10   :  { %v6143_v5 = vpack.c.bf16 %v79_v4, %v78_v2  ;;  %v72_v8 = vld [vmem:[%s8520_s3] sm:$0xff] }
  0x11   :  { %6140 = vmatprep.subr.bf16.mxu0 %v6139_v3  ;;  %5432 = vmatprep.mubr.msk.f32.mxu0 %vm91_vm0, %v72_v8 }
  0x12   :  { %6142 = vmatpush3.bf16.msra.mxu0 %v6139_v3 }
  0x13   :  { %27 = vsyncpa [#allocation3], 0  ;;  %6144 = vmatprep.subr.bf16.mxu0 %v6143_v5  ;;  %v6147_v9 = vpack.c.bf16 %v81_v7, %v80_v6  ;;  %v82_v10 = vld [vmem:[%s8519_s29 + $0x30] sm:$0xff]  ;;  %v83_v11 = vld [vmem:[%s8519_s29 + $0x38] sm:$0xff]  ;;  %v208_v16 = vlaneseq  ;;  %s8521_s2 = sld [smem:[#allocation8_spill]]  ;;  %s8522_s30 = sld [smem:[#allocation10_spill]] }
  0x14   :  { %v6151_v12 = vpack.c.bf16 %v83_v11, %v82_v10  ;;  %v73_v13 = vld [vmem:[%s8520_s3 + $0x8] sm:$0xff]  ;;  %v74_v14 = vld [vmem:[%s8520_s3 + $0x10] sm:$0xff]  ;;  %v75_v15 = vld [vmem:[%s8520_s3 + $0x18] sm:$0xff]  ;;  %s8523_s3 = sld [smem:[#allocation9_spill]]  ;;  %vm200_vm1 = vcmask 1040384   ;;  %vm232_vm2 = vcmask 261120  }
  0x15   :  { %v209_v18 = vshrl.u32 %v208_v16, 7  ;;  %vm215_vm3 = vcmask 1041408   ;;  %vm245_vm4 = vcmask 254976   ;;  %v324_v16 = vld [vmem:[%s8480_s8 + $0x10] sm:$0xff]  ;;  %vm6761_vm5 = vmmov 0   ;;  %s8524_s23 = sld [smem:[#allocation11_spill]] }
  0x16   :  { %6146 = vmatpush3.bf16.msra.mxu0 %v6143_v5  ;;  %s6763_s6 = smov 96   ;;  %vm457_vm6 = vcmask 64512   ;;  %s8527_s26 = sld [smem:[#allocation6_spill]]  ;;  %vm568_vm8 = vcmask 277504   ;;  %vm581_vm9 = vcmask 271360  }
  0x17   :  { %6148 = vmatprep.subr.bf16.mxu0 %v6147_v9  ;;  %v210_v29 = vsub.s32 0, %v209_v18  ;;  %v6760_v18 = vmov 0.0|0.0   ;;  %vm7076_vm7 = vmpackc.low %vm457_vm6, %vm457_vm6  ;;  %s6764_s5 = smov 64   ;;  %s6765_s24 = smov 120  }
  0x18   :  { %6155 = vmatprep.subr.bf16.mxu1 %v6760_v18  ;;  %s6766_s29 = smov 88   ;;  %s6767_s25 = smov 56  }
  0x19   :  { %v4878_v17 = vld [vmem:[%s8521_s2] ss:$0 sm:$0xff]  ;;  %v191_v20 = vld [vmem:[%s8522_s30 + $0x9] sm:$0xff]  ;;  %v190_v25 = vld [vmem:[%s8522_s30 + $0x1] sm:$0xff]  ;;  %s8510_s2 = smov 80   ;;  %s8508_s27 = smov 112  }
  0x1a   :  { %6150 = vmatpush3.bf16.msra.mxu0 %v6147_v9  ;;  %v189_v21 = vld [vmem:[%s8522_s30] sm:$0x1]  ;;  %s8504_s1 = smov 48   ;;  %s8500_s28 = smov 104  }
  0x1b   :  { %6152 = vmatprep.subr.bf16.mxu0 %v6151_v12  ;;  %v192_v22 = vld [vmem:[%s8523_s3] sm:$0x1]  ;;  %s8502_s3 = smov 72   ;;  %s8533_s4 = smov 40  }
  0x1c   :  { %v193_v28 = vadd.f32 %v192_v22, %v189_v21 }
  0x1e   :  { %6154 = vmatpush3.bf16.msra.mxu0 %v6151_v12  ;;  %v211_v38 = vrot.slane %v193_v28, %v210_v29 }
  0x1f   :  { %6169 = vmatprep.subr.bf16.mxu0 %v6760_v18 }
  0x21   :  { %5433 = vmatmul.mubr.msk.f32.vlgmr.msra.gmra.mrb[0].mxu0 %vm91_vm0, %v73_v13  ;;  %v322_v13 = vld [vmem:[%s8480_s8] sm:$0xff] }
  0x22   :  { %5435 = vmatprep.mubr.msk.f32.mxu0 %vm91_vm0, %v74_v14  ;;  %v323_v14 = vld [vmem:[%s8480_s8 + $0x8] sm:$0xff] }
  0x25   :  { %5436 = vmatmul.mubr.msk.f32.gmra.mrb[2].mxu0 %vm91_vm0, %v75_v15  ;;  %v6156_v15 = vpack.c.bf16 %v323_v14, %v322_v13 }
  0x27   :  { %6157 = vmatpush3.bf16.msra.mxu1 %v6156_v15 }
  0x28   :  { %6158 = vmatprep.subr.bf16.mxu1 %v6760_v18 }
  0xf4   :  { %v5434_v19 = vpop.f32.mrb[0].mxu0 }
  0xf5   :  { %v176_v23 = vadd.f32 %v5434_v19, %v4878_v17  ;;  %v170_v24 = vpop.f32.mrb[1].mxu0  ;;  %v6762_v19 = vmov 0.0  }
  0xf6   :  { %v171_v26 = vadd.f32 %v4878_v17, %v170_v24  ;;  %5446 = vmatprep.mubr.msk.f32.mxu1 %vm6761_vm5, %v6762_v19  ;;  %5496 = vmatprep.mubr.msk.f32.mxu0 %vm6761_vm5, %v6762_v19 }
  0xf7   :  { %v195_v27 = vadd.f32 %v191_v20, %v176_v23 }
  0xf8   :  { %v194_v30 = vadd.f32 %v190_v25, %v171_v26  ;;  %v5437_v31 = vpop.f32.mrb[2].mxu0 }
  0xf9   :  { %v202_v32 = vrot.slane %v195_v27, 7  ;;  %v186_v33 = vadd.f32 %v5437_v31, %v4878_v17  ;;  %v180_v34 = vpop.f32.mrb[3].mxu0 }
  0xfa   :  { %v201_v35 = vrot.slane %v194_v30, 7  ;;  %v181_v36 = vadd.f32 %v4878_v17, %v180_v34  ;;  %v325_v17 = vld [vmem:[%s8480_s8 + $0x18] sm:$0xff] }
  0xfb   :  { %v197_v37 = vadd.f32 %v191_v20, %v186_v33  ;;  %v223_v45 = vsel %vm200_vm1, %v202_v32, %v211_v38  ;;  %v6159_v20 = vpack.c.bf16 %v325_v17, %v324_v16 }
  0xfc   :  { %v196_v39 = vadd.f32 %v190_v25, %v181_v36  ;;  %v6946_v40 = vsel %vm200_vm1, %v193_v28, %v201_v35  ;;  %v6949_v41 = vsel %vm200_vm1, %v201_v35, %v202_v32 }
  0xfd   :  { %v6951_v42 = vrot.slane %v197_v37, 6  ;;  %v233_v43 = vsel %vm232_vm2, %v6946_v40, 0.0  ;;  %v236_v49 = vsel %vm232_vm2, %v6949_v41, 0.0  ;;  %6160 = vmatpush3.bf16.msra.mxu1 %v6159_v20  ;;  %v4883_v37 = vld [vmem:[%s8524_s23] ss:$0 sm:$0xff] }
  0xfe   :  { %v216_v44 = vrot.slane %v196_v39, 6  ;;  %234 = vadd.xlane.f32.xlu0 %v233_v43  ;;  %6161 = vmatprep.subr.bf16.mxu1 %v6760_v18  ;;  %v4884_v39 = vld [vmem:[%s8479_s7] ss:$0 sm:$0xff] }
  0xff   :  { %v246_v51 = vsel %vm245_vm4, %v6951_v42, 0.0 }
 0x100   :  { %v6957_v46 = vsel %vm215_vm3, %v223_v45, %v216_v44  ;;  %v6961_v47 = vsel %vm215_vm3, %v216_v44, %v6951_v42 }
 0x101   :  { %v239_v48 = vsel %vm232_vm2, %v6957_v46, 0.0  ;;  %v242_v50 = vsel %vm232_vm2, %v6961_v47, 0.0 }
 0x102   :  { %240 = vadd.xlane.f32.xlu1 %v239_v48  ;;  %237 = vadd.xlane.f32.xlu0 %v236_v49 }
 0x106   :  { %243 = vadd.xlane.f32.xlu1 %v242_v50  ;;  %247 = vadd.xlane.f32.xlu0 %v246_v51 }
 0x18b   :  { %v235_v52 = vpop.xlane.xlu0 %234 }
 0x18c   :  { %v250_v53 = vmul.f32 0.03125, %v235_v52 }
 0x18e   :  { %v6972_v54 = vsub.f32 %v6946_v40, %v250_v53 }
 0x18f   :  { %v241_v55 = vpop.xlane.xlu1 %240  ;;  %v238_v56 = vpop.xlane.xlu0 %237 }
 0x190   :  { %v252_v57 = vmul.f32 0.03125, %v241_v55  ;;  %v251_v58 = vmul.f32 0.03125, %v238_v56  ;;  %v260_v59 = vmul.f32 %v6972_v54, %v6972_v54 }
 0x192   :  { %v6977_v60 = vsub.f32 %v6957_v46, %v252_v57  ;;  %v6980_v61 = vsub.f32 %v6949_v41, %v251_v58  ;;  %v265_v62 = vsel %vm232_vm2, %v260_v59, 0.0 }
 0x193   :  { %v244_v63 = vpop.xlane.xlu1 %243  ;;  %266 = vadd.xlane.f32.xlu1 %v265_v62  ;;  %v248_v0 = vpop.xlane.xlu0 %247 }
 0x194   :  { %v253_v1 = vmul.f32 0.03125, %v244_v63  ;;  %v254_v2 = vmul.f32 0.03125, %v248_v0  ;;  %v262_v3 = vmul.f32 %v6977_v60, %v6977_v60  ;;  %v261_v4 = vmul.f32 %v6980_v61, %v6980_v61 }
 0x196   :  { %v6988_v5 = vsub.f32 %v6961_v47, %v253_v1  ;;  %v6991_v6 = vsub.f32 %v6951_v42, %v254_v2  ;;  %v271_v7 = vsel %vm232_vm2, %v262_v3, 0.0  ;;  %v268_v8 = vsel %vm232_vm2, %v261_v4, 0.0  ;;  %v4885_v1 = vld [vmem:[%s8481_s9] ss:$0 sm:$0xff] }
 0x197   :  { %272 = vadd.xlane.f32.xlu1 %v271_v7  ;;  %269 = vadd.xlane.f32.xlu0 %v268_v8 }
 0x198   :  { %v263_v9 = vmul.f32 %v6988_v5, %v6988_v5  ;;  %v264_v10 = vmul.f32 %v6991_v6, %v6991_v6 }
 0x19a   :  { %v274_v11 = vsel %vm232_vm2, %v263_v9, 0.0  ;;  %v277_v12 = vsel %vm245_vm4, %v264_v10, 0.0 }
 0x19b   :  { %275 = vadd.xlane.f32.xlu0 %v274_v11  ;;  %278 = vadd.xlane.f32.xlu1 %v277_v12 }
 0x220   :  { %v267_v21 = vpop.xlane.xlu1 %266 }
 0x221   :  { %v280_v22 = vmul.f32 0.03125, %v267_v21 }
 0x223   :  { %v285_v23 = vadd.f32 1e-12, %v280_v22 }
 0x224   :  { %v273_v24 = vpop.xlane.xlu1 %272  ;;  %v270_v25 = vpop.xlane.xlu0 %269 }
 0x225   :  { %6502 = vrsqrt.f32 %v285_v23  ;;  %v282_v26 = vmul.f32 0.03125, %v273_v24  ;;  %v281_v27 = vmul.f32 0.03125, %v270_v25 }
 0x227   :  { %v287_v28 = vadd.f32 1e-12, %v282_v26  ;;  %v286_v29 = vadd.f32 1e-12, %v281_v27 }
 0x228   :  { %v279_v30 = vpop.xlane.xlu1 %278  ;;  %v276_v31 = vpop.xlane.xlu0 %275 }
 0x229   :  { %6504 = vrsqrt.f32 %v287_v28  ;;  %v284_v32 = vmul.f32 0.03125, %v279_v30  ;;  %v283_v33 = vmul.f32 0.03125, %v276_v31 }
 0x22a   :  { %6506 = vrsqrt.f32 %v286_v29  ;;  %v7111_v29 = vld [vmem:[%s8527_s26] sm:$0xff] }
 0x22b   :  { %v288_v34 = vadd.f32 1e-12, %v283_v33  ;;  %v289_v35 = vadd.f32 1e-12, %v284_v32  ;;  %v7117_v33 = vld [vmem:[%s8527_s26 + $0x8] sm:$0xff] }
 0x22d   :  { %6508 = vrsqrt.f32 %v288_v34 }
 0x22e   :  { %6510 = vrsqrt.f32 %v289_v35 }
 0x22f   :  { %v6503_v36 = vpop.eup %6502 }
 0x230   :  { %v295_v38 = vmul.f32 %v6503_v36, %v6972_v54 }
 0x232   :  { %v306_v43 = vmul.f32 %v4883_v37, %v295_v38  ;;  %v7124_v38 = vld [vmem:[%s8527_s26 + $0x10] sm:$0xff] }
 0x233   :  { %v6505_v44 = vpop.eup %6504 }
 0x234   :  { %v6507_v45 = vpop.eup %6506  ;;  %v317_v48 = vadd.f32 %v4884_v39, %v306_v43  ;;  %v297_v50 = vmul.f32 %v6505_v44, %v6977_v60 }
 0x235   :  { %v296_v49 = vmul.f32 %v6507_v45, %v6980_v61 }
 0x236   :  { %5447 = vmatmul.mubr.msk.f32.vlgmr.msra.gmra.mrb[0].mxu1 %vm232_vm2, %v317_v48  ;;  %v308_v54 = vmul.f32 %v4883_v37, %v297_v50  ;;  %v7131_v48 = vld [vmem:[%s8527_s26 + $0x18] sm:$0xff] }
 0x237   :  { %5449 = vmatprep.mubr.msk.f32.mxu1 %vm6761_vm5, %v6762_v19  ;;  %v307_v51 = vmul.f32 %v4883_v37, %v296_v49  ;;  %v6509_v52 = vpop.eup %6508 }
 0x238   :  { %v298_v55 = vmul.f32 %v6509_v52, %v6988_v5  ;;  %v6511_v56 = vpop.eup %6510  ;;  %v319_v57 = vadd.f32 %v4884_v39, %v308_v54 }
 0x239   :  { %v318_v53 = vadd.f32 %v4884_v39, %v307_v51  ;;  %v299_v59 = vmul.f32 %v6511_v56, %v6991_v6 }
 0x23a   :  { %v309_v58 = vmul.f32 %v4883_v37, %v298_v55 }
 0x23b   :  { %5450 = vmatmul.mubr.msk.f32.gmra.mrb[2].mxu1 %vm232_vm2, %v318_v53  ;;  %v310_v61 = vmul.f32 %v4883_v37, %v299_v59  ;;  %v7138_v53 = vld [vmem:[%s8527_s26 + $0x20] sm:$0x3] }
 0x23c   :  { %5452 = vmatprep.mubr.msk.f32.mxu1 %vm6761_vm5, %v6762_v19  ;;  %v320_v60 = vadd.f32 %v4884_v39, %v309_v58 }
 0x23d   :  { %v321_v62 = vadd.f32 %v4884_v39, %v310_v61 }
 0x23f   :  { %5453 = vmatmul.mubr.msk.f32.gmra.mrb[4].mxu1 %vm232_vm2, %v319_v57 }
 0x240   :  { %5455 = vmatprep.mubr.msk.f32.mxu1 %vm6761_vm5, %v6762_v19 }
 0x243   :  { %5456 = vmatmul.mubr.msk.f32.gmra.mrb[6].mxu1 %vm232_vm2, %v320_v60 }
 0x244   :  { %5458 = vmatprep.mubr.msk.f32.mxu1 %vm6761_vm5, %v6762_v19 }
 0x247   :  { %5459 = vmatmul.mubr.msk.f32.gmra.mrb[8].mxu1 %vm232_vm2, %v321_v62 }
 0x248   :  { %5471 = vmatprep.mubr.msk.f32.mxu1 %vm6761_vm5, %v6762_v19 }
 0x309   :  { %v414_v63 = vpop.f32.mrb[0].mxu1 }
 0x30a   :  { %v5448_v0 = vpop.f32.mrb[1].mxu1  ;;  %v7050_v3 = vadd.f32 %v4885_v1, %v414_v63 }
 0x30e   :  { %v419_v2 = vpop.f32.mrb[2].mxu1 }
 0x30f   :  { %v7052_v4 = vadd.f32 %v4885_v1, %v419_v2  ;;  %v5451_v5 = vpop.f32.mrb[3].mxu1 }
 0x311   :  { %v7056_v6 = vpack.i.bf16 %v7052_v4, %v7050_v3 }
 0x312   :  { %v424_v7 = vpop.f32.mrb[4].mxu1 }
 0x313   :  { %6343 = vrot.lane.b32.xlu0 %v7056_v6, %s6763_s6  ;;  %v5454_v8 = vpop.f32.mrb[5].mxu1  ;;  %v7060_v10 = vadd.f32 %v4885_v1, %v424_v7 }
 0x316   :  { %v429_v9 = vpop.f32.mrb[6].mxu1 }
 0x317   :  { %v7062_v11 = vadd.f32 %v4885_v1, %v429_v9  ;;  %v5457_v12 = vpop.f32.mrb[7].mxu1 }
 0x319   :  { %v7066_v13 = vpack.i.bf16 %v7062_v11, %v7060_v10 }
 0x31a   :  { %v434_v14 = vpop.f32.mrb[8].mxu1 }
 0x31b   :  { %6348 = vrot.lane.b32.xlu1 %v7066_v13, %s6763_s6  ;;  %v5460_v15 = vpop.f32.mrb[9].mxu1  ;;  %v7070_v16 = vadd.f32 %v4885_v1, %v434_v14 }
 0x31f   :  { %455 = vrot.lane.b32.xlu1 %v7070_v16, %s6763_s6 }
 0x385   :  { %v6344_v17 = vpop.permute.xlu0 %6343 }
 0x386   :  { %v6346_v20 = vunpack.i.h.bf16 %v6344_v17  ;;  %v6345_v21 = vunpack.i.l.bf16 %v6344_v17 }
 0x388   :  { %v6162_v23 = vpack.c.bf16 %v6346_v20, %v6345_v21 }
 0x38a   :  { %6164 = vmatpush3.bf16.xpose.msk.msra.mxu1 %vm7076_vm7, %v6162_v23 }
 0x38b   :  { %6165 = vmatprep.subr.bf16.mxu1 %v6760_v18 }
 0x38d   :  { %v6349_v24 = vpop.permute.xlu1 %6348 }
 0x38e   :  { %v6351_v25 = vunpack.i.h.bf16 %v6349_v24  ;;  %v6350_v26 = vunpack.i.l.bf16 %v6349_v24 }
 0x390   :  { %v6166_v27 = vpack.c.bf16 %v6351_v25, %v6350_v26 }
 0x391   :  { %v456_v28 = vpop.permute.xlu1 %455 }
 0x392   :  { %6168 = vmatpush3.bf16.xpose.msk.msra.mxu1 %vm7076_vm7, %v6166_v27 }
 0x393   :  { %5469 = vmatprep.subr.mxu1 %v6762_v19 }
 0x39a   :  { %5470 = vmatpush3.xpose.msk.msra.mxu1 %vm457_vm6, %v456_v28 }
 0x39b   :  { %6183 = vmatprep.subr.bf16.mxu1 %v6760_v18 }
 0x39d   :  { %5472 = vmatmul.mubr.msk.f32.vlgmr.msra.gmra.mrb[10].mxu1 %vm457_vm6, %v7050_v3 }
 0x39e   :  { %5474 = vmatprep.mubr.msk.f32.mxu1 %vm6761_vm5, %v6762_v19 }
 0x3a1   :  { %5475 = vmatmul.mubr.msk.f32.gmra.mrb[12].mxu1 %vm457_vm6, %v7052_v4 }
 0x3a2   :  { %5477 = vmatprep.mubr.msk.f32.mxu1 %vm6761_vm5, %v6762_v19 }
 0x3a5   :  { %5478 = vmatmul.mubr.msk.f32.gmra.mrb[14].mxu1 %vm457_vm6, %v7060_v10 }
 0x3a6   :  { %5480 = vmatprep.mubr.msk.f32.mxu1 %vm6761_vm5, %v6762_v19 }
 0x3a9   :  { %5481 = vmatmul.mubr.msk.f32.gmra.mrb[16].mxu1 %vm457_vm6, %v7062_v11 }
 0x3aa   :  { %5483 = vmatprep.mubr.msk.f32.mxu1 %vm6761_vm5, %v6762_v19 }
 0x3ad   :  { %5484 = vmatmul.mubr.msk.f32.gmra.mrb[18].mxu1 %vm457_vm6, %v7070_v16 }
 0x3ae   :  { %5546 = vmatprep.mubr.msk.f32.mxu1 %vm6761_vm5, %v6762_v19 }
 0x470   :  { %v544_v30 = vpop.f32.mrb[10].mxu1 }
 0x471   :  { %v545_v31 = vadd.f32 %v544_v30, %v7111_v29  ;;  %v5473_v32 = vpop.f32.mrb[11].mxu1 }
 0x473   :  { %v569_v34 = vsel %vm568_vm8, %v545_v31, -inf }
 0x474   :  { %570 = vmax.xlane.f32.xlu1 %v569_v34  ;;  %v549_v35 = vpop.f32.mrb[12].mxu1 }
 0x475   :  { %v550_v36 = vadd.f32 %v549_v35, %v7117_v33  ;;  %v5476_v37 = vpop.f32.mrb[13].mxu1 }
 0x477   :  { %v572_v39 = vsel %vm568_vm8, %v550_v36, -inf }
 0x478   :  { %573 = vmax.xlane.f32.xlu0 %v572_v39  ;;  %v554_v43 = vpop.f32.mrb[14].mxu1 }
 0x479   :  { %v555_v44 = vadd.f32 %v554_v43, %v7124_v38  ;;  %v5479_v45 = vpop.f32.mrb[15].mxu1 }
 0x47b   :  { %v575_v49 = vsel %vm568_vm8, %v555_v44, -inf }
 0x47c   :  { %576 = vmax.xlane.f32.xlu0 %v575_v49  ;;  %v559_v50 = vpop.f32.mrb[16].mxu1 }
 0x47d   :  { %v560_v51 = vadd.f32 %v559_v50, %v7131_v48  ;;  %v5482_v52 = vpop.f32.mrb[17].mxu1 }
 0x47f   :  { %v578_v54 = vsel %vm568_vm8, %v560_v51, -inf }
 0x480   :  { %579 = vmax.xlane.f32.xlu0 %v578_v54  ;;  %v564_v55 = vpop.f32.mrb[18].mxu1 }
 0x481   :  { %v565_v56 = vadd.f32 %v564_v55, %v7138_v53  ;;  %v5485_v57 = vpop.f32.mrb[19].mxu1 }
 0x483   :  { %v582_v58 = vsel %vm581_vm9, %v565_v56, -inf }
 0x484   :  { %583 = vmax.xlane.f32.xlu1 %v582_v58 }
 0x501   :  { %v571_v59 = vpop.xlane.xlu1 %570 }
 0x502   :  { %v585_v60 = vsub.f32 %v545_v31, %v571_v59 }
 0x504   :  { %v590_v61 = vmul.f32 1.442695, %v585_v60 }
 0x505   :  { %v574_v62 = vpop.xlane.xlu0 %573 }
 0x506   :  { %6512 = vpow2.f32 %v590_v61  ;;  %v586_v63 = vsub.f32 %v550_v36, %v574_v62 }
 0x508   :  { %v592_v0 = vmul.f32 1.442695, %v586_v63 }
 0x509   :  { %v577_v8 = vpop.xlane.xlu0 %576 }
 0x50a   :  { %6514 = vpow2.f32 %v592_v0  ;;  %v587_v9 = vsub.f32 %v555_v44, %v577_v8 }
 0x50c   :  { %v594_v17 = vmul.f32 1.442695, %v587_v9 }
 0x50d   :  { %v580_v12 = vpop.xlane.xlu0 %579 }
 0x50e   :  { %v588_v15 = vsub.f32 %v560_v51, %v580_v12  ;;  %6516 = vpow2.f32 %v594_v17 }
 0x510   :  { %v6513_v1 = vpop.eup %6512  ;;  %v596_v21 = vmul.f32 1.442695, %v588_v15 }
 0x511   :  { %v600_v2 = vsel %vm568_vm8, %v6513_v1, 0.0  ;;  %v584_v14 = vpop.xlane.xlu1 %583 }
 0x512   :  { %601 = vadd.xlane.f32.xlu0 %v600_v2  ;;  %v589_v20 = vsub.f32 %v565_v56, %v584_v14  ;;  %6518 = vpow2.f32 %v596_v21 }
 0x514   :  { %v7144_v5 = vpop.eup %6514  ;;  %v598_v23 = vmul.f32 1.442695, %v589_v20 }
 0x515   :  { %v603_v7 = vsel %vm568_vm8, %v7144_v5, 0.0 }
 0x516   :  { %604 = vadd.xlane.f32.xlu1 %v603_v7  ;;  %6520 = vpow2.f32 %v598_v23 }
 0x518   :  { %v6517_v24 = vpop.eup %6516 }
 0x519   :  { %v606_v26 = vsel %vm568_vm8, %v6517_v24, 0.0 }
 0x51c   :  { %v7152_v25 = vpop.eup %6518 }
 0x51d   :  { %v609_v28 = vsel %vm568_vm8, %v7152_v25, 0.0 }
 0x520   :  { %v7155_v27 = vpop.eup %6520 }
 0x521   :  { %v612_v30 = vsel %vm581_vm9, %v7155_v27, 0.0 }
 0x527   :  { %6353 = vrot.lane.b32.xlu1 %v7056_v6, %s6764_s5 }
 0x528   :  { %6358 = vrot.lane.b32.xlu0 %v7066_v13, %s6764_s5 }
 0x547   :  { %607 = vadd.xlane.f32.xlu0 %v606_v26 }
 0x54b   :  { %610 = vadd.xlane.f32.xlu0 %v609_v28  ;;  %613 = vadd.xlane.f32.xlu1 %v612_v30 }
 0x55c   :  { %750 = vrot.lane.b32.xlu1 %v7060_v10, %s6765_s24 }
 0x561   :  { %633 = vrot.lane.b32.xlu0 %v7070_v16, %s6764_s5 }
 0x565   :  { %6363 = vrot.lane.b32.xlu0 %v7056_v6, %s6766_s29 }
 0x569   :  { %6368 = vrot.lane.b32.xlu0 %v7066_v13, %s6766_s29 }
 0x56d   :  { %764 = vrot.lane.b32.xlu0 %v7070_v16, %s6766_s29 }
 0x571   :  { %746 = vrot.lane.b32.xlu0 %v7050_v3, %s6765_s24 }
 0x575   :  { %748 = vrot.lane.b32.xlu0 %v7052_v4, %s6765_s24 }
 0x579   :  { %752 = vrot.lane.b32.xlu0 %v7062_v11, %s6765_s24 }
 0x57d   :  { %754 = vrot.lane.b32.xlu0 %v7070_v16, %s6765_s24 }
 0x59f   :  { %v602_v31 = vpop.xlane.xlu0 %601 }
 0x5a0   :  { %6522 = vrcp.f32 %v602_v31 }
 0x5a3   :  { %v605_v32 = vpop.xlane.xlu1 %604  ;;  %v6359_v34 = vpop.permute.xlu0 %6358 }
 0x5a4   :  { %v6361_v39 = vunpack.i.h.bf16 %v6359_v34  ;;  %v6360_v43 = vunpack.i.l.bf16 %v6359_v34  ;;  %6524 = vrcp.f32 %v605_v32 }
 0x5a6   :  { %v6173_v45 = vpack.c.bf16 %v6361_v39, %v6360_v43 }
 0x5a7   :  { %v6354_v35 = vpop.permute.xlu1 %6353 }
 0x5a8   :  { %v6356_v36 = vunpack.i.h.bf16 %v6354_v35  ;;  %v6355_v37 = vunpack.i.l.bf16 %v6354_v35 }
 0x5aa   :  { %v6170_v44 = vpack.c.bf16 %v6356_v36, %v6355_v37  ;;  %v6523_v51 = vpop.eup %6522 }
 0x5ab   :  { %v620_v52 = vmul.f32 %v6523_v51, %v6513_v1 }
 0x5ac   :  { %6171 = vmatpush3.bf16.msra.mxu0 %v6170_v44 }
 0x5ad   :  { %6172 = vmatprep.subr.bf16.mxu0 %v6760_v18 }
 0x5ae   :  { %v6525_v56 = vpop.eup %6524 }
 0x5af   :  { %v621_v58 = vmul.f32 %v6525_v56, %v7144_v5 }
 0x5b0   :  { %6174 = vmatpush3.bf16.msra.mxu0 %v6173_v45 }
 0x5b1   :  { %5494 = vmatprep.subr.mxu0 %v6762_v19 }
 0x5d4   :  { %v608_v49 = vpop.xlane.xlu0 %607 }
 0x5d5   :  { %6526 = vrcp.f32 %v608_v49 }
 0x5d8   :  { %v611_v50 = vpop.xlane.xlu0 %610  ;;  %v614_v54 = vpop.xlane.xlu1 %613 }
 0x5d9   :  { %6528 = vrcp.f32 %v611_v50 }
 0x5da   :  { %6530 = vrcp.f32 %v614_v54 }
 0x5dc   :  { %v634_v55 = vpop.permute.xlu0 %633  ;;  %v751_v20 = vpop.permute.xlu1 %750 }
 0x5dd   :  { %5495 = vmatpush3.msk.msra.mxu0 %vm215_vm3, %v634_v55 }
 0x5de   :  { %5497 = vmatmul.mubr.msk.f32.vlgmr.msra.gmra.mrb[4].mxu0 %vm568_vm8, %v620_v52  ;;  %6175 = vmatprep.subr.bf16.mxu0 %v6760_v18 }
 0x5df   :  { %5499 = vmatprep.mubr.msk.f32.mxu0 %vm6761_vm5, %v6762_v19  ;;  %v6527_v59 = vpop.eup %6526 }
 0x5e0   :  { %v6364_v57 = vpop.permute.xlu0 %6363  ;;  %v622_v0 = vmul.f32 %v6527_v59, %v6517_v24 }
 0x5e1   :  { %v6366_v60 = vunpack.i.h.bf16 %v6364_v57  ;;  %v6365_v61 = vunpack.i.l.bf16 %v6364_v57 }
 0x5e2   :  { %5500 = vmatmul.mubr.msk.f32.gmra.mrb[6].mxu0 %vm568_vm8, %v621_v58 }
 0x5e3   :  { %v6176_v62 = vpack.c.bf16 %v6366_v60, %v6365_v61  ;;  %5502 = vmatprep.mubr.msk.f32.mxu0 %vm6761_vm5, %v6762_v19  ;;  %v6529_v1 = vpop.eup %6528 }
 0x5e4   :  { %v6369_v63 = vpop.permute.xlu0 %6368  ;;  %v623_v7 = vmul.f32 %v6529_v1, %v7152_v25  ;;  %v6531_v8 = vpop.eup %6530 }
 0x5e5   :  { %6178 = vmatpush3.bf16.xpose.msk.msra.mxu0 %vm7076_vm7, %v6176_v62  ;;  %v6371_v2 = vunpack.i.h.bf16 %v6369_v63  ;;  %v6370_v5 = vunpack.i.l.bf16 %v6369_v63  ;;  %v624_v12 = vmul.f32 %v6531_v8, %v7155_v27 }
 0x5e6   :  { %5503 = vmatmul.mubr.msk.f32.gmra.mrb[8].mxu0 %vm568_vm8, %v622_v0  ;;  %6179 = vmatprep.subr.bf16.mxu0 %v6760_v18 }
 0x5e7   :  { %5505 = vmatprep.mubr.msk.f32.mxu0 %vm6761_vm5, %v6762_v19  ;;  %v6180_v9 = vpack.c.bf16 %v6371_v2, %v6370_v5 }
 0x5e8   :  { %v765_v14 = vpop.permute.xlu0 %764 }
 0x5ea   :  { %5506 = vmatmul.mubr.msk.f32.gmra.mrb[10].mxu0 %vm568_vm8, %v623_v7 }
 0x5eb   :  { %5508 = vmatprep.mubr.msk.f32.mxu0 %vm6761_vm5, %v6762_v19 }
 0x5ec   :  { %v747_v15 = vpop.permute.xlu0 %746 }
 0x5ed   :  { %6182 = vmatpush3.bf16.xpose.msk.msra.mxu0 %vm7076_vm7, %v6180_v9 }
 0x5ee   :  { %5509 = vmatmul.mubr.msk.f32.gmra.mrb[12].mxu0 %vm568_vm8, %v624_v12  ;;  %5519 = vmatprep.subr.mxu0 %v6762_v19 }
 0x5ef   :  { %5521 = vmatprep.mubr.msk.f32.mxu0 %vm6761_vm5, %v6762_v19 }
 0x5f0   :  { %v749_v17 = vpop.permute.xlu0 %748 }
 0x5f4   :  { %v753_v21 = vpop.permute.xlu0 %752 }
 0x5f5   :  { %5520 = vmatpush3.xpose.msk.msra.mxu0 %vm457_vm6, %v765_v14 }
 0x5f6   :  { %5561 = vmatprep.subr.mxu0 %v6762_v19 }
 0x5f8   :  { %5522 = vmatmul.mubr.msk.f32.vlgmr.msra.gmra.mrb[14].mxu0 %vm457_vm6, %v747_v15  ;;  %v755_v23 = vpop.permute.xlu0 %754 }
 0x5f9   :  { %5524 = vmatprep.mubr.msk.f32.mxu0 %vm6761_vm5, %v6762_v19 }
 0x5fc   :  { %5525 = vmatmul.mubr.msk.f32.gmra.mrb[16].mxu0 %vm457_vm6, %v749_v17 }
 0x5fd   :  { %5527 = vmatprep.mubr.msk.f32.mxu0 %vm6761_vm5, %v6762_v19 }
 0x600   :  { %5528 = vmatmul.mubr.msk.f32.gmra.mrb[18].mxu0 %vm457_vm6, %v751_v20 }
 0x601   :  { %5530 = vmatprep.mubr.msk.f32.mxu0 %vm6761_vm5, %v6762_v19 }
 0x604   :  { %5531 = vmatmul.mubr.msk.f32.gmra.mrb[20].mxu0 %vm457_vm6, %v753_v21 }
 0x605   :  { %5533 = vmatprep.mubr.msk.f32.mxu0 %vm6761_vm5, %v6762_v19 }
 0x608   :  { %5534 = vmatmul.mubr.msk.f32.gmra.mrb[22].mxu0 %vm457_vm6, %v755_v23 }
 0x609   :  { %5563 = vmatprep.mubr.msk.f32.mxu0 %vm6761_vm5, %v6762_v19 }
 0x6b1   :  { %v7224_v24 = vpop.f32.mrb[4].mxu0 }
 0x6b2   :  { %v5498_v25 = vpop.f32.mrb[5].mxu0 }
 0x6b5   :  { %v7226_v26 = vpop.f32.mrb[6].mxu0 }
 0x6b6   :  { %v5501_v27 = vpop.f32.mrb[7].mxu0 }
 0x6b9   :  { %v7228_v28 = vpop.f32.mrb[8].mxu0 }
 0x6ba   :  { %v5504_v30 = vpop.f32.mrb[9].mxu0 }
 0x6bd   :  { %v7230_v31 = vpop.f32.mrb[10].mxu0 }
 0x6be   :  { %v5507_v32 = vpop.f32.mrb[11].mxu0 }
 0x6c1   :  { %v7232_v34 = vpop.f32.mrb[12].mxu0 }
 0x6c2   :  { %v5510_v35 = vpop.f32.mrb[13].mxu0 }
 0x6cb   :  { %v852_v36 = vpop.f32.mrb[14].mxu0 }
 0x6cc   :  { %v853_v37 = vadd.f32 %v852_v36, %v7111_v29  ;;  %v5523_v39 = vpop.f32.mrb[15].mxu0 }
 0x6ce   :  { %v876_v43 = vsel %vm568_vm8, %v853_v37, -inf }
 0x6cf   :  { %877 = vmax.xlane.f32.xlu0 %v876_v43  ;;  %v857_v44 = vpop.f32.mrb[16].mxu0 }
 0x6d0   :  { %v858_v45 = vadd.f32 %v857_v44, %v7117_v33  ;;  %v5526_v49 = vpop.f32.mrb[17].mxu0 }
 0x6d2   :  { %v879_v50 = vsel %vm568_vm8, %v858_v45, -inf }
 0x6d3   :  { %880 = vmax.xlane.f32.xlu1 %v879_v50  ;;  %v862_v51 = vpop.f32.mrb[18].mxu0 }
 0x6d4   :  { %v863_v52 = vadd.f32 %v862_v51, %v7124_v38  ;;  %v5529_v54 = vpop.f32.mrb[19].mxu0 }
 0x6d5   :  { %v439_v54 = vld [vmem:[%s8482_s10 + $0x8] sm:$0xff] }
 0x6d6   :  { %v882_v55 = vsel %vm568_vm8, %v863_v52, -inf  ;;  %5562 = vmatpush3.msra.mxu0 %v439_v54 }
 0x6d7   :  { %883 = vmax.xlane.f32.xlu0 %v882_v55  ;;  %v867_v56 = vpop.f32.mrb[20].mxu0  ;;  %6189 = vmatprep.subr.bf16.mxu0 %v6760_v18 }
 0x6d8   :  { %v868_v57 = vadd.f32 %v867_v56, %v7131_v48  ;;  %v5532_v58 = vpop.f32.mrb[21].mxu0 }
 0x6da   :  { %v885_v59 = vsel %vm568_vm8, %v868_v57, -inf }
 0x6db   :  { %886 = vmax.xlane.f32.xlu0 %v885_v59  ;;  %v872_v60 = vpop.f32.mrb[22].mxu0 }
 0x6dc   :  { %v873_v61 = vadd.f32 %v872_v60, %v7138_v53  ;;  %v5535_v62 = vpop.f32.mrb[23].mxu0 }
 0x6de   :  { %v888_v63 = vsel %vm581_vm9, %v873_v61, -inf }
 0x6df   :  { %889 = vmax.xlane.f32.xlu0 %v888_v63 }
 0x6e4   :  { %6373 = vrot.lane.b32.xlu1 %v7056_v6, %s6767_s25 }
 0x75c   :  { %v878_v0 = vpop.xlane.xlu0 %877 }
 0x75d   :  { %v891_v1 = vsub.f32 %v853_v37, %v878_v0 }
 0x75f   :  { %v896_v2 = vmul.f32 1.442695, %v891_v1 }
 0x760   :  { %v881_v5 = vpop.xlane.xlu1 %880 }
 0x761   :  { %6532 = vpow2.f32 %v896_v2  ;;  %v892_v7 = vsub.f32 %v858_v45, %v881_v5  ;;  %v438_v5 = vld [vmem:[%s8482_s10] sm:$0xff] }
 0x763   :  { %v898_v8 = vmul.f32 1.442695, %v892_v7 }
 0x764   :  { %v6374_v9 = vpop.permute.xlu1 %6373  ;;  %v884_v12 = vpop.xlane.xlu0 %883 }
 0x765   :  { %6534 = vpow2.f32 %v898_v8  ;;  %v6376_v14 = vunpack.i.h.bf16 %v6374_v9  ;;  %v6375_v15 = vunpack.i.l.bf16 %v6374_v9  ;;  %v893_v17 = vsub.f32 %v863_v52, %v884_v12 }
 0x767   :  { %v6184_v20 = vpack.c.bf16 %v6376_v14, %v6375_v15  ;;  %v900_v21 = vmul.f32 1.442695, %v893_v17 }
 0x768   :  { %v887_v23 = vpop.xlane.xlu0 %886 }
 0x769   :  { %6536 = vpow2.f32 %v900_v21  ;;  %v894_v25 = vsub.f32 %v868_v57, %v887_v23  ;;  %6185 = vmatpush3.bf16.msra.mxu1 %v6184_v20 }
 0x76a   :  { %6186 = vmatprep.subr.bf16.mxu1 %v6760_v18 }
 0x76b   :  { %v6533_v27 = vpop.eup %6532  ;;  %v902_v30 = vmul.f32 1.442695, %v894_v25 }
 0x76c   :  { %v890_v32 = vpop.xlane.xlu0 %889  ;;  %v906_v35 = vsel %vm568_vm8, %v6533_v27, 0.0 }
 0x76d   :  { %6538 = vpow2.f32 %v902_v30  ;;  %v895_v36 = vsub.f32 %v873_v61, %v890_v32  ;;  %907 = vadd.xlane.f32.xlu0 %v906_v35 }
 0x76f   :  { %v6535_v37 = vpop.eup %6534  ;;  %v904_v39 = vmul.f32 1.442695, %v895_v36 }
 0x770   :  { %v909_v43 = vsel %vm568_vm8, %v6535_v37, 0.0 }
 0x771   :  { %6540 = vpow2.f32 %v904_v39  ;;  %910 = vadd.xlane.f32.xlu1 %v909_v43 }
 0x773   :  { %v6537_v44 = vpop.eup %6536 }
 0x774   :  { %v912_v45 = vsel %vm568_vm8, %v6537_v44, 0.0 }
 0x775   :  { %913 = vadd.xlane.f32.xlu0 %v912_v45 }
 0x777   :  { %v6539_v49 = vpop.eup %6538 }
 0x778   :  { %v915_v50 = vsel %vm568_vm8, %v6539_v49, 0.0 }
 0x779   :  { %916 = vadd.xlane.f32.xlu1 %v915_v50 }
 0x77b   :  { %v6541_v51 = vpop.eup %6540 }
 0x77c   :  { %v918_v52 = vsel %vm581_vm9, %v6541_v51, 0.0 }
 0x77d   :  { %919 = vadd.xlane.f32.xlu0 %v918_v52 }
 0x78a   :  { %939 = vrot.lane.b32.xlu1 %v7070_v16, %s6767_s25 }
 0x78e   :  { %6383 = vrot.lane.b32.xlu1 %v7056_v6, %s8510_s2 }
 0x792   :  { %1280 = vrot.lane.b32.xlu1 %v7070_v16, %s8510_s2 }
 0x793   :  { %6378 = vrot.lane.b32.xlu0 %v7066_v13, %s6767_s25 }
 0x796   :  { %1264 = vrot.lane.b32.xlu1 %v7052_v4, %s8508_s27 }
 0x797   :  { %6388 = vrot.lane.b32.xlu0 %v7066_v13, %s8510_s2  ;;  %s8529_s2 = smov 112  }
 0x79a   :  { %1268 = vrot.lane.b32.xlu1 %v7062_v11, %s8508_s27 }
 0x79b   :  { %1262 = vrot.lane.b32.xlu0 %v7050_v3, %s8508_s27 }
 0x79f   :  { %1266 = vrot.lane.b32.xlu0 %v7060_v10, %s8508_s27 }
 0x7a3   :  { %1270 = vrot.lane.b32.xlu0 %v7070_v16, %s8508_s27 }
 0x7fa   :  { %v908_v55 = vpop.xlane.xlu0 %907 }
 0x7fb   :  { %6542 = vrcp.f32 %v908_v55 }
 0x7fe   :  { %v911_v57 = vpop.xlane.xlu1 %910 }
 0x7ff   :  { %6544 = vrcp.f32 %v911_v57 }
 0x802   :  { %v914_v56 = vpop.xlane.xlu0 %913 }
 0x803   :  { %6546 = vrcp.f32 %v914_v56 }
 0x805   :  { %v6543_v0 = vpop.eup %6542 }
 0x806   :  { %v917_v62 = vpop.xlane.xlu1 %916  ;;  %v926_v1 = vmul.f32 %v6543_v0, %v6533_v27 }
 0x807   :  { %6548 = vrcp.f32 %v917_v62 }
 0x809   :  { %v6545_v7 = vpop.eup %6544 }
 0x80a   :  { %v920_v58 = vpop.xlane.xlu0 %919  ;;  %v940_v2 = vpop.permute.xlu1 %939  ;;  %v927_v8 = vmul.f32 %v6545_v7, %v6535_v37 }
 0x80b   :  { %6550 = vrcp.f32 %v920_v58 }
 0x80d   :  { %v6547_v9 = vpop.eup %6546 }
 0x80e   :  { %v6379_v59 = vpop.permute.xlu0 %6378  ;;  %v928_v12 = vmul.f32 %v6547_v9, %v6537_v44 }
 0x80f   :  { %v6381_v60 = vunpack.i.h.bf16 %v6379_v59  ;;  %v6380_v61 = vunpack.i.l.bf16 %v6379_v59 }
 0x811   :  { %v6187_v63 = vpack.c.bf16 %v6381_v60, %v6380_v61  ;;  %v6549_v14 = vpop.eup %6548 }
 0x812   :  { %v929_v15 = vmul.f32 %v6549_v14, %v6539_v49  ;;  %v6389_v25 = vpop.permute.xlu0 %6388 }
 0x813   :  { %6188 = vmatpush3.bf16.msra.mxu1 %v6187_v63 }
 0x814   :  { %5544 = vmatprep.subr.mxu1 %v6762_v19 }
 0x815   :  { %v6551_v17 = vpop.eup %6550 }
 0x816   :  { %v930_v20 = vmul.f32 %v6551_v17, %v6541_v51  ;;  %v1263_v50 = vpop.permute.xlu0 %1262 }
 0x817   :  { %5545 = vmatpush3.msk.msra.mxu1 %vm215_vm3, %v940_v2 }
 0x818   :  { %5547 = vmatmul.mubr.msk.f32.vlgmr.msra.gmra.mrb[20].mxu1 %vm568_vm8, %v926_v1  ;;  %5578 = vmatprep.subr.mxu1 %v6762_v19 }
 0x819   :  { %5549 = vmatprep.mubr.msk.f32.mxu1 %vm6761_vm5, %v6762_v19  ;;  %5579 = vmatpush3.msra.mxu1 %v438_v5 }
 0x81a   :  { %6197 = vmatprep.subr.bf16.mxu1 %v6760_v18  ;;  %v1267_v57 = vpop.permute.xlu0 %1266 }
 0x81c   :  { %5550 = vmatmul.mubr.msk.f32.gmra.mrb[22].mxu1 %vm568_vm8, %v927_v8 }
 0x81d   :  { %5552 = vmatprep.mubr.msk.f32.mxu1 %vm6761_vm5, %v6762_v19 }
 0x81e   :  { %v1271_v63 = vpop.permute.xlu0 %1270 }
 0x820   :  { %5553 = vmatmul.mubr.msk.f32.gmra.mrb[24].mxu1 %vm568_vm8, %v928_v12 }
 0x821   :  { %5555 = vmatprep.mubr.msk.f32.mxu1 %vm6761_vm5, %v6762_v19 }
 0x824   :  { %5556 = vmatmul.mubr.msk.f32.gmra.mrb[26].mxu1 %vm568_vm8, %v929_v15 }
 0x825   :  { %5558 = vmatprep.mubr.msk.f32.mxu1 %vm6761_vm5, %v6762_v19 }
 0x828   :  { %5559 = vmatmul.mubr.msk.f32.gmra.mrb[28].mxu1 %vm568_vm8, %v930_v20 }
 0x829   :  { %5580 = vmatprep.mubr.msk.f32.mxu1 %vm6761_vm5, %v6762_v19 }
 0x82c   :  { %5581 = vmatmul.mubr.msk.f32.vlgmr.msra.gmra.mrb[30].mxu1 %vm457_vm6, %v7224_v24  ;;  %v6384_v24 = vpop.permute.xlu1 %6383 }
 0x82d   :  { %5583 = vmatprep.mubr.msk.f32.mxu1 %vm6761_vm5, %v6762_v19  ;;  %v6385_v21 = vunpack.i.l.bf16 %v6384_v24 }
 0x830   :  { %5584 = vmatmul.mubr.msk.f32.gmra.mrb[32].mxu1 %vm457_vm6, %v7226_v26  ;;  %v6386_v26 = vunpack.i.h.bf16 %v6384_v24  ;;  %v1281_v45 = vpop.permute.xlu1 %1280 }
 0x831   :  { %5586 = vmatprep.mubr.msk.f32.mxu1 %vm6761_vm5, %v6762_v19 }
 0x832   :  { %v6190_v23 = vpack.c.bf16 %v6386_v26, %v6385_v21 }
 0x834   :  { %5587 = vmatmul.mubr.msk.f32.gmra.mrb[34].mxu1 %vm457_vm6, %v7228_v28  ;;  %v1265_v54 = vpop.permute.xlu1 %1264 }
 0x835   :  { %5589 = vmatprep.mubr.msk.f32.mxu1 %vm6761_vm5, %v6762_v19 }
 0x838   :  { %5590 = vmatmul.mubr.msk.f32.gmra.mrb[36].mxu1 %vm457_vm6, %v7230_v31  ;;  %v6391_v31 = vunpack.i.h.bf16 %v6389_v25  ;;  %v1269_v60 = vpop.permute.xlu1 %1268 }
 0x839   :  { %5592 = vmatprep.mubr.msk.f32.mxu1 %vm6761_vm5, %v6762_v19 }
 0x83c   :  { %5593 = vmatmul.mubr.msk.f32.gmra.mrb[38].mxu1 %vm457_vm6, %v7232_v34  ;;  %v6390_v34 = vunpack.i.l.bf16 %v6389_v25 }
 0x83d   :  { %5630 = vmatprep.mubr.msk.f32.mxu1 %vm6761_vm5, %v6762_v19 }
 0x83e   :  { %v6194_v35 = vpack.c.bf16 %v6391_v31, %v6390_v34 }
 0x8eb   :  { %v1028_v28 = vpop.f32.mrb[20].mxu1 }
 0x8ec   :  { %v5548_v27 = vpop.f32.mrb[21].mxu1  ;;  %5564 = vmatmul.mubr.msk.f32.vlgmr.msra.gmra.mrb[24].mxu0 %vm457_vm6, %v1028_v28 }
 0x8ed   :  { %6192 = vmatpush3.bf16.xpose.msk.msra.mxu0 %vm7076_vm7, %v6190_v23  ;;  %5566 = vmatprep.mubr.msk.f32.mxu0 %vm6761_vm5, %v6762_v19 }
 0x8ee   :  { %6193 = vmatprep.subr.bf16.mxu0 %v6760_v18 }
 0x8ef   :  { %v1033_v30 = vpop.f32.mrb[22].mxu1 }
 0x8f0   :  { %v5551_v32 = vpop.f32.mrb[23].mxu1  ;;  %5567 = vmatmul.mubr.msk.f32.gmra.mrb[26].mxu0 %vm457_vm6, %v1033_v30 }
 0x8f1   :  { %5569 = vmatprep.mubr.msk.f32.mxu0 %vm6761_vm5, %v6762_v19 }
 0x8f3   :  { %v1038_v36 = vpop.f32.mrb[24].mxu1 }
 0x8f4   :  { %v5554_v37 = vpop.f32.mrb[25].mxu1  ;;  %5570 = vmatmul.mubr.msk.f32.gmra.mrb[28].mxu0 %vm457_vm6, %v1038_v36 }
 0x8f5   :  { %6196 = vmatpush3.bf16.xpose.msk.msra.mxu0 %vm7076_vm7, %v6194_v35  ;;  %5572 = vmatprep.mubr.msk.f32.mxu0 %vm6761_vm5, %v6762_v19 }
 0x8f6   :  { %5603 = vmatprep.subr.mxu0 %v6762_v19 }
 0x8f7   :  { %v1043_v39 = vpop.f32.mrb[26].mxu1 }
 0x8f8   :  { %v5557_v43 = vpop.f32.mrb[27].mxu1  ;;  %5573 = vmatmul.mubr.msk.f32.gmra.mrb[30].mxu0 %vm457_vm6, %v1043_v39 }
 0x8f9   :  { %5575 = vmatprep.mubr.msk.f32.mxu0 %vm6761_vm5, %v6762_v19 }
 0x8fb   :  { %v1048_v44 = vpop.f32.mrb[28].mxu1 }
 0x8fc   :  { %v5560_v49 = vpop.f32.mrb[29].mxu1  ;;  %5576 = vmatmul.mubr.msk.f32.gmra.mrb[32].mxu0 %vm457_vm6, %v1048_v44 }
 0x8fd   :  { %5604 = vmatpush3.xpose.msk.msra.mxu0 %vm457_vm6, %v1281_v45  ;;  %5605 = vmatprep.mubr.msk.f32.mxu0 %vm6761_vm5, %v6762_v19 }
 0x8fe   :  { %5645 = vmatprep.subr.mxu0 %v6762_v19 }
 0x8ff   :  { %v1238_v51 = vpop.f32.mrb[30].mxu1 }
 0x900   :  { %v5582_v52 = vpop.f32.mrb[31].mxu1  ;;  %5606 = vmatmul.mubr.msk.f32.vlgmr.msra.gmra.mrb[34].mxu0 %vm457_vm6, %v1263_v50 }
 0x901   :  { %5608 = vmatprep.mubr.msk.f32.mxu0 %vm6761_vm5, %v6762_v19 }
 0x903   :  { %v1243_v55 = vpop.f32.mrb[32].mxu1 }
 0x904   :  { %v5585_v56 = vpop.f32.mrb[33].mxu1  ;;  %5609 = vmatmul.mubr.msk.f32.gmra.mrb[36].mxu0 %vm457_vm6, %v1265_v54 }
 0x905   :  { %5611 = vmatprep.mubr.msk.f32.mxu0 %vm6761_vm5, %v6762_v19 }
 0x907   :  { %v1248_v58 = vpop.f32.mrb[34].mxu1 }
 0x908   :  { %v5588_v59 = vpop.f32.mrb[35].mxu1  ;;  %5612 = vmatmul.mubr.msk.f32.gmra.mrb[38].mxu0 %vm457_vm6, %v1267_v57 }
 0x909   :  { %5614 = vmatprep.mubr.msk.f32.mxu0 %vm6761_vm5, %v6762_v19 }
 0x90b   :  { %v1253_v61 = vpop.f32.mrb[36].mxu1 }
 0x90c   :  { %v5591_v62 = vpop.f32.mrb[37].mxu1  ;;  %5615 = vmatmul.mubr.msk.f32.gmra.mrb[40].mxu0 %vm457_vm6, %v1269_v60 }
 0x90d   :  { %5617 = vmatprep.mubr.msk.f32.mxu0 %vm6761_vm5, %v6762_v19 }
 0x90f   :  { %v1258_v0 = vpop.f32.mrb[38].mxu1 }
 0x910   :  { %v5594_v1 = vpop.f32.mrb[39].mxu1  ;;  %5618 = vmatmul.mubr.msk.f32.gmra.mrb[42].mxu0 %vm457_vm6, %v1271_v63 }
 0x911   :  { %5647 = vmatprep.mubr.msk.f32.mxu0 %vm6761_vm5, %v6762_v19 }
 0x9bf   :  { %v1133_v2 = vpop.f32.mrb[24].mxu0 }
 0x9c0   :  { %v7356_v5 = vadd.f32 %v1238_v51, %v1133_v2  ;;  %v5565_v7 = vpop.f32.mrb[25].mxu0 }
 0x9c3   :  { %v1138_v8 = vpop.f32.mrb[26].mxu0 }
 0x9c4   :  { %v7358_v9 = vadd.f32 %v1243_v55, %v1138_v8  ;;  %v5568_v12 = vpop.f32.mrb[27].mxu0 }
 0x9c7   :  { %v1143_v14 = vpop.f32.mrb[28].mxu0 }
 0x9c8   :  { %v7360_v15 = vadd.f32 %v1248_v58, %v1143_v14  ;;  %v5571_v17 = vpop.f32.mrb[29].mxu0 }
 0x9cb   :  { %v1148_v20 = vpop.f32.mrb[30].mxu0 }
 0x9cc   :  { %v7362_v24 = vadd.f32 %v1253_v61, %v1148_v20  ;;  %v5574_v26 = vpop.f32.mrb[31].mxu0 }
 0x9cf   :  { %v1153_v21 = vpop.f32.mrb[32].mxu0 }
 0x9d0   :  { %v7364_v23 = vadd.f32 %v1258_v0, %v1153_v21  ;;  %v5577_v28 = vpop.f32.mrb[33].mxu0 }
 0x9d3   :  { %v1368_v25 = vpop.f32.mrb[34].mxu0 }
 0x9d4   :  { %v1369_v27 = vadd.f32 %v1368_v25, %v7111_v29  ;;  %v5607_v31 = vpop.f32.mrb[35].mxu0 }
 0x9d6   :  { %v1392_v34 = vsel %vm568_vm8, %v1369_v27, -inf }
 0x9d7   :  { %1393 = vmax.xlane.f32.xlu1 %v1392_v34  ;;  %v1373_v30 = vpop.f32.mrb[36].mxu0 }
 0x9d8   :  { %v1374_v32 = vadd.f32 %v1373_v30, %v7117_v33  ;;  %v5610_v35 = vpop.f32.mrb[37].mxu0 }
 0x9da   :  { %v1395_v36 = vsel %vm568_vm8, %v1374_v32, -inf }
 0x9db   :  { %1396 = vmax.xlane.f32.xlu0 %v1395_v36  ;;  %v1378_v37 = vpop.f32.mrb[38].mxu0 }
 0x9dc   :  { %v1379_v39 = vadd.f32 %v1378_v37, %v7124_v38  ;;  %v5613_v43 = vpop.f32.mrb[39].mxu0 }
 0x9de   :  { %v1398_v44 = vsel %vm568_vm8, %v1379_v39, -inf }
 0x9df   :  { %1399 = vmax.xlane.f32.xlu0 %v1398_v44  ;;  %v1383_v45 = vpop.f32.mrb[40].mxu0 }
 0x9e0   :  { %v1384_v29 = vadd.f32 %v1383_v45, %v7131_v48  ;;  %v5616_v49 = vpop.f32.mrb[41].mxu0 }
 0x9e2   :  { %v1401_v50 = vsel %vm568_vm8, %v1384_v29, -inf }
 0x9e3   :  { %1402 = vmax.xlane.f32.xlu1 %v1401_v50  ;;  %v1388_v51 = vpop.f32.mrb[42].mxu0 }
 0x9e4   :  { %v1389_v33 = vadd.f32 %v1388_v51, %v7138_v53  ;;  %v5619_v52 = vpop.f32.mrb[43].mxu0 }
 0x9e6   :  { %v1404_v54 = vsel %vm581_vm9, %v1389_v33, -inf }
 0x9e7   :  { %1405 = vmax.xlane.f32.xlu0 %v1404_v54 }
 0xa64   :  { %v1394_v55 = vpop.xlane.xlu1 %1393 }
 0xa65   :  { %v1407_v38 = vsub.f32 %v1369_v27, %v1394_v55 }
 0xa67   :  { %v1412_v56 = vmul.f32 1.442695, %v1407_v38 }
 0xa68   :  { %v1397_v57 = vpop.xlane.xlu0 %1396 }
 0xa69   :  { %6552 = vpow2.f32 %v1412_v56  ;;  %v1408_v58 = vsub.f32 %v1374_v32, %v1397_v57 }
 0xa6b   :  { %v1414_v59 = vmul.f32 1.442695, %v1408_v58 }
 0xa6c   :  { %v1400_v62 = vpop.xlane.xlu0 %1399 }
 0xa6d   :  { %6554 = vpow2.f32 %v1414_v59  ;;  %v1409_v63 = vsub.f32 %v1379_v39, %v1400_v62 }
 0xa6f   :  { %v1416_v7 = vmul.f32 1.442695, %v1409_v63 }
 0xa70   :  { %v1403_v0 = vpop.xlane.xlu1 %1402 }
 0xa71   :  { %v1410_v2 = vsub.f32 %v1384_v29, %v1403_v0  ;;  %6556 = vpow2.f32 %v1416_v7  ;;  %v440_v7 = vld [vmem:[%s8482_s10 + $0x10] sm:$0xff] }
 0xa72   :  { %5646 = vmatpush3.msra.mxu0 %v440_v7 }
 0xa73   :  { %v6553_v48 = vpop.eup %6552  ;;  %v1418_v12 = vmul.f32 1.442695, %v1410_v2  ;;  %6211 = vmatprep.subr.bf16.mxu0 %v6760_v18 }
 0xa74   :  { %v1422_v60 = vsel %vm568_vm8, %v6553_v48, 0.0  ;;  %v1406_v1 = vpop.xlane.xlu0 %1405 }
 0xa75   :  { %1423 = vadd.xlane.f32.xlu1 %v1422_v60  ;;  %v1411_v8 = vsub.f32 %v1389_v33, %v1406_v1  ;;  %6558 = vpow2.f32 %v1418_v12 }
 0xa77   :  { %v7377_v61 = vpop.eup %6554  ;;  %v1420_v14 = vmul.f32 1.442695, %v1411_v8 }
 0xa78   :  { %v1425_v53 = vsel %vm568_vm8, %v7377_v61, 0.0 }
 0xa79   :  { %1426 = vadd.xlane.f32.xlu0 %v1425_v53  ;;  %6560 = vpow2.f32 %v1420_v14 }
 0xa7b   :  { %v6557_v17 = vpop.eup %6556 }
 0xa7c   :  { %v1428_v26 = vsel %vm568_vm8, %v6557_v17, 0.0 }
 0xa7f   :  { %v7385_v20 = vpop.eup %6558 }
 0xa80   :  { %v1431_v28 = vsel %vm568_vm8, %v7385_v20, 0.0 }
 0xa83   :  { %v7388_v21 = vpop.eup %6560 }
 0xa84   :  { %v1434_v25 = vsel %vm581_vm9, %v7388_v21, 0.0 }
 0xa86   :  { %6398 = vrot.lane.b32.xlu1 %v7066_v13, %s8504_s1 }
 0xa8f   :  { %6393 = vrot.lane.b32.xlu0 %v7056_v6, %s8504_s1 }
 0xaaa   :  { %1429 = vadd.xlane.f32.xlu1 %v1428_v26 }
 0xaae   :  { %1432 = vadd.xlane.f32.xlu1 %v1431_v28  ;;  %1435 = vadd.xlane.f32.xlu0 %v1434_v25 }
 0xabf   :  { %1455 = vrot.lane.b32.xlu1 %v7070_v16, %s8504_s1  ;;  %s8506_s1 = smov 40  }
 0xac3   :  { %6403 = vrot.lane.b32.xlu1 %v7056_v6, %s8502_s3 }
 0xac4   :  { %1686 = vrot.lane.b32.xlu0 %v7070_v16, %s8500_s28 }
 0xac7   :  { %6408 = vrot.lane.b32.xlu1 %v7066_v13, %s8502_s3 }
 0xacb   :  { %1696 = vrot.lane.b32.xlu1 %v7070_v16, %s8502_s3 }
 0xacf   :  { %1678 = vrot.lane.b32.xlu1 %v7050_v3, %s8500_s28 }
 0xad3   :  { %1680 = vrot.lane.b32.xlu1 %v7052_v4, %s8500_s28 }
 0xad7   :  { %1682 = vrot.lane.b32.xlu1 %v7060_v10, %s8500_s28 }
 0xadb   :  { %1684 = vrot.lane.b32.xlu1 %v7062_v11, %s8500_s28  ;;  %s6774_s28 = smov [#allocation2]  }
 0xb02   :  { %v1424_v27 = vpop.xlane.xlu1 %1423 }
 0xb03   :  { %6562 = vrcp.f32 %v1424_v27 }
 0xb06   :  { %v1427_v31 = vpop.xlane.xlu0 %1426  ;;  %v6399_v34 = vpop.permute.xlu1 %6398 }
 0xb07   :  { %v6401_v36 = vunpack.i.h.bf16 %v6399_v34  ;;  %v6400_v37 = vunpack.i.l.bf16 %v6399_v34  ;;  %6564 = vrcp.f32 %v1427_v31  ;;  %v6724_v34 = vld [vmem:[%s8527_s26] sm:$0xff] }
 0xb09   :  { %v6201_v3 = vpack.c.bf16 %v6401_v36, %v6400_v37  ;;  %v6725_v37 = vld [vmem:[%s8527_s26 + $0x8] sm:$0xff] }
 0xb0a   :  { %v6394_v30 = vpop.permute.xlu0 %6393 }
 0xb0b   :  { %v6396_v32 = vunpack.i.h.bf16 %v6394_v30  ;;  %v6395_v35 = vunpack.i.l.bf16 %v6394_v30 }
 0xb0d   :  { %v6198_v39 = vpack.c.bf16 %v6396_v32, %v6395_v35  ;;  %v6563_v11 = vpop.eup %6562 }
 0xb0e   :  { %v1442_v43 = vmul.f32 %v6563_v11, %v6553_v48  ;;  %v6726_v11 = vld [vmem:[%s8527_s26 + $0x10] sm:$0xff] }
 0xb0f   :  { %6199 = vmatpush3.bf16.msra.mxu1 %v6198_v39 }
 0xb10   :  { %6200 = vmatprep.subr.bf16.mxu1 %v6760_v18 }
 0xb11   :  { %v6565_v29 = vpop.eup %6564 }
 0xb12   :  { %v1443_v50 = vmul.f32 %v6565_v29, %v7377_v61 }
 0xb13   :  { %6202 = vmatpush3.bf16.msra.mxu1 %v6201_v3 }
 0xb14   :  { %5628 = vmatprep.subr.mxu1 %v6762_v19 }
 0xb37   :  { %v1430_v4 = vpop.xlane.xlu1 %1429 }
 0xb38   :  { %6566 = vrcp.f32 %v1430_v4 }
 0xb3b   :  { %v1433_v10 = vpop.xlane.xlu1 %1432  ;;  %v1436_v44 = vpop.xlane.xlu0 %1435 }
 0xb3c   :  { %6568 = vrcp.f32 %v1433_v10 }
 0xb3d   :  { %6570 = vrcp.f32 %v1436_v44 }
 0xb3f   :  { %v1456_v45 = vpop.permute.xlu1 %1455  ;;  %v1687_v2 = vpop.permute.xlu0 %1686 }
 0xb40   :  { %5629 = vmatpush3.msk.msra.mxu1 %vm215_vm3, %v1456_v45 }
 0xb41   :  { %5631 = vmatmul.mubr.msk.f32.vlgmr.msra.gmra.mrb[40].mxu1 %vm568_vm8, %v1442_v43  ;;  %6203 = vmatprep.subr.bf16.mxu1 %v6760_v18 }
 0xb42   :  { %5633 = vmatprep.mubr.msk.f32.mxu1 %vm6761_vm5, %v6762_v19  ;;  %v6567_v51 = vpop.eup %6566 }
 0xb43   :  { %v6404_v49 = vpop.permute.xlu1 %6403  ;;  %v1444_v38 = vmul.f32 %v6567_v51, %v6557_v17 }
 0xb44   :  { %v6406_v33 = vunpack.i.h.bf16 %v6404_v49  ;;  %v6405_v52 = vunpack.i.l.bf16 %v6404_v49  ;;  %v6727_v49 = vld [vmem:[%s8527_s26 + $0x18] sm:$0xff] }
 0xb45   :  { %5634 = vmatmul.mubr.msk.f32.gmra.mrb[42].mxu1 %vm568_vm8, %v1443_v50 }
 0xb46   :  { %v6204_v54 = vpack.c.bf16 %v6406_v33, %v6405_v52  ;;  %5636 = vmatprep.mubr.msk.f32.mxu1 %vm6761_vm5, %v6762_v19  ;;  %v6569_v56 = vpop.eup %6568 }
 0xb47   :  { %v6409_v55 = vpop.permute.xlu1 %6408  ;;  %v1445_v59 = vmul.f32 %v6569_v56, %v7385_v20  ;;  %v6571_v48 = vpop.eup %6570 }
 0xb48   :  { %6206 = vmatpush3.bf16.xpose.msk.msra.mxu1 %vm7076_vm7, %v6204_v54  ;;  %v6411_v57 = vunpack.i.h.bf16 %v6409_v55  ;;  %v6410_v58 = vunpack.i.l.bf16 %v6409_v55  ;;  %v1446_v53 = vmul.f32 %v6571_v48, %v7388_v21  ;;  %v6728_v54 = vld [vmem:[%s8527_s26 + $0x20] sm:$0x3] }
 0xb49   :  { %5637 = vmatmul.mubr.msk.f32.gmra.mrb[44].mxu1 %vm568_vm8, %v1444_v38  ;;  %6207 = vmatprep.subr.bf16.mxu1 %v6760_v18 }
 0xb4a   :  { %5639 = vmatprep.mubr.msk.f32.mxu1 %vm6761_vm5, %v6762_v19  ;;  %v6208_v60 = vpack.c.bf16 %v6411_v57, %v6410_v58 }
 0xb4b   :  { %v1697_v61 = vpop.permute.xlu1 %1696 }
 0xb4d   :  { %5640 = vmatmul.mubr.msk.f32.gmra.mrb[46].mxu1 %vm568_vm8, %v1445_v59 }
 0xb4e   :  { %5642 = vmatprep.mubr.msk.f32.mxu1 %vm6761_vm5, %v6762_v19 }
 0xb4f   :  { %v1679_v62 = vpop.permute.xlu1 %1678 }
 0xb50   :  { %6210 = vmatpush3.bf16.xpose.msk.msra.mxu1 %vm7076_vm7, %v6208_v60 }
 0xb51   :  { %5643 = vmatmul.mubr.msk.f32.gmra.mrb[48].mxu1 %vm568_vm8, %v1446_v53  ;;  %5670 = vmatprep.subr.mxu1 %v6762_v19 }
 0xb52   :  { %5672 = vmatprep.mubr.msk.f32.mxu1 %vm6761_vm5, %v6762_v19 }
 0xb53   :  { %v1681_v63 = vpop.permute.xlu1 %1680 }
 0xb57   :  { %v1683_v0 = vpop.permute.xlu1 %1682 }
 0xb58   :  { %5671 = vmatpush3.xpose.msk.msra.mxu1 %vm457_vm6, %v1697_v61 }
 0xb59   :  { %6321 = vmatprep.subr.bf16.mxu1 %v6760_v18 }
 0xb5b   :  { %5673 = vmatmul.mubr.msk.f32.vlgmr.msra.gmra.mrb[50].mxu1 %vm457_vm6, %v1679_v62  ;;  %v1685_v1 = vpop.permute.xlu1 %1684 }
 0xb5c   :  { %5675 = vmatprep.mubr.msk.f32.mxu1 %vm6761_vm5, %v6762_v19 }
 0xb5f   :  { %5676 = vmatmul.mubr.msk.f32.gmra.mrb[52].mxu1 %vm457_vm6, %v1681_v63 }
 0xb60   :  { %5678 = vmatprep.mubr.msk.f32.mxu1 %vm6761_vm5, %v6762_v19 }
 0xb63   :  { %5679 = vmatmul.mubr.msk.f32.gmra.mrb[54].mxu1 %vm457_vm6, %v1683_v0 }
 0xb64   :  { %5681 = vmatprep.mubr.msk.f32.mxu1 %vm6761_vm5, %v6762_v19 }
 0xb67   :  { %5682 = vmatmul.mubr.msk.f32.gmra.mrb[56].mxu1 %vm457_vm6, %v1685_v1 }
 0xb68   :  { %5684 = vmatprep.mubr.msk.f32.mxu1 %vm6761_vm5, %v6762_v19 }
 0xb6b   :  { %5685 = vmatmul.mubr.msk.f32.gmra.mrb[58].mxu1 %vm457_vm6, %v1687_v2 }
 0xb6c   :  { %5709 = vmatprep.mubr.msk.f32.mxu1 %vm6761_vm5, %v6762_v19 }
 0xc14   :  { %v1544_v8 = vpop.f32.mrb[40].mxu1 }
 0xc15   :  { %v5632_v12 = vpop.f32.mrb[41].mxu1  ;;  %5648 = vmatmul.mubr.msk.f32.vlgmr.msra.gmra.mrb[44].mxu0 %vm457_vm6, %v1544_v8 }
 0xc16   :  { %5650 = vmatprep.mubr.msk.f32.mxu0 %vm6761_vm5, %v6762_v19 }
 0xc18   :  { %v1549_v14 = vpop.f32.mrb[42].mxu1 }
 0xc19   :  { %v5635_v17 = vpop.f32.mrb[43].mxu1  ;;  %5651 = vmatmul.mubr.msk.f32.gmra.mrb[46].mxu0 %vm457_vm6, %v1549_v14 }
 0xc1a   :  { %5653 = vmatprep.mubr.msk.f32.mxu0 %vm6761_vm5, %v6762_v19 }
 0xc1c   :  { %v1554_v20 = vpop.f32.mrb[44].mxu1 }
 0xc1d   :  { %v5638_v26 = vpop.f32.mrb[45].mxu1  ;;  %5654 = vmatmul.mubr.msk.f32.gmra.mrb[48].mxu0 %vm457_vm6, %v1554_v20 }
 0xc1e   :  { %5656 = vmatprep.mubr.msk.f32.mxu0 %vm6761_vm5, %v6762_v19 }
 0xc20   :  { %v1559_v21 = vpop.f32.mrb[46].mxu1 }
 0xc21   :  { %v5641_v28 = vpop.f32.mrb[47].mxu1  ;;  %5657 = vmatmul.mubr.msk.f32.gmra.mrb[50].mxu0 %vm457_vm6, %v1559_v21 }
 0xc22   :  { %5659 = vmatprep.mubr.msk.f32.mxu0 %vm6761_vm5, %v6762_v19 }
 0xc24   :  { %v1564_v25 = vpop.f32.mrb[48].mxu1 }
 0xc25   :  { %v5644_v27 = vpop.f32.mrb[49].mxu1  ;;  %5660 = vmatmul.mubr.msk.f32.gmra.mrb[52].mxu0 %vm457_vm6, %v1564_v25 }
 0xc26   :  { %5697 = vmatprep.mubr.msk.f32.mxu0 %vm6761_vm5, %v6762_v19 }
 0xc2e   :  { %v1784_v31 = vpop.f32.mrb[50].mxu1 }
 0xc2f   :  { %v1785_v30 = vadd.f32 %v6724_v34, %v1784_v31  ;;  %v5674_v32 = vpop.f32.mrb[51].mxu1 }
 0xc31   :  { %v1808_v35 = vsel %vm568_vm8, %v1785_v30, -inf }
 0xc32   :  { %1809 = vmax.xlane.f32.xlu1 %v1808_v35  ;;  %v1789_v36 = vpop.f32.mrb[52].mxu1 }
 0xc33   :  { %v1790_v39 = vadd.f32 %v6725_v37, %v1789_v36  ;;  %v5677_v3 = vpop.f32.mrb[53].mxu1 }
 0xc35   :  { %v1811_v4 = vsel %vm568_vm8, %v1790_v39, -inf }
 0xc36   :  { %1812 = vmax.xlane.f32.xlu0 %v1811_v4  ;;  %v1794_v10 = vpop.f32.mrb[54].mxu1 }
 0xc37   :  { %v1795_v43 = vadd.f32 %v6726_v11, %v1794_v10  ;;  %v5680_v44 = vpop.f32.mrb[55].mxu1 }
 0xc39   :  { %v1814_v45 = vsel %vm568_vm8, %v1795_v43, -inf }
 0xc3a   :  { %1815 = vmax.xlane.f32.xlu1 %v1814_v45  ;;  %v1799_v29 = vpop.f32.mrb[56].mxu1 }
 0xc3b   :  { %v1800_v50 = vadd.f32 %v6727_v49, %v1799_v29  ;;  %v5683_v51 = vpop.f32.mrb[57].mxu1 }
 0xc3d   :  { %v1817_v33 = vsel %vm568_vm8, %v1800_v50, -inf }
 0xc3e   :  { %1818 = vmax.xlane.f32.xlu1 %v1817_v33  ;;  %v1804_v52 = vpop.f32.mrb[58].mxu1 }
 0xc3f   :  { %v1805_v55 = vadd.f32 %v6728_v54, %v1804_v52  ;;  %v5686_v38 = vpop.f32.mrb[59].mxu1 }
 0xc41   :  { %v1820_v56 = vsel %vm581_vm9, %v1805_v55, -inf }
 0xc42   :  { %1821 = vmax.xlane.f32.xlu1 %v1820_v56 }
 0xcbf   :  { %v1810_v57 = vpop.xlane.xlu1 %1809 }
 0xcc0   :  { %v1823_v58 = vsub.f32 %v1785_v30, %v1810_v57 }
 0xcc2   :  { %v1828_v59 = vmul.f32 1.442695, %v1823_v58 }
 0xcc3   :  { %v1813_v48 = vpop.xlane.xlu0 %1812 }
 0xcc4   :  { %6572 = vpow2.f32 %v1828_v59  ;;  %v1824_v60 = vsub.f32 %v1790_v39, %v1813_v48 }
 0xcc6   :  { %v1830_v61 = vmul.f32 1.442695, %v1824_v60 }
 0xcc7   :  { %v1816_v53 = vpop.xlane.xlu1 %1815 }
 0xcc8   :  { %6574 = vpow2.f32 %v1830_v61  ;;  %v1825_v62 = vsub.f32 %v1795_v43, %v1816_v53 }
 0xcca   :  { %v1832_v63 = vmul.f32 1.442695, %v1825_v62 }
 0xccb   :  { %v1819_v25 = vpop.xlane.xlu1 %1818 }
 0xccc   :  { %6576 = vpow2.f32 %v1832_v63  ;;  %v1826_v34 = vsub.f32 %v1800_v50, %v1819_v25  ;;  %v441_v63 = vld [vmem:[%s8482_s10 + $0x18] sm:$0xff] }
 0xcce   :  { %v7496_v0 = vpop.eup %6572  ;;  %v1834_v36 = vmul.f32 1.442695, %v1826_v34  ;;  %v4975_v34 = vld [vmem:[%s8483_s11] ss:$0 sm:$0xff] }
 0xccf   :  { %v1838_v1 = vsel %vm568_vm8, %v7496_v0, 0.0  ;;  %v1822_v30 = vpop.xlane.xlu1 %1821 }
 0xcd0   :  { %1839 = vadd.xlane.f32.xlu1 %v1838_v1  ;;  %6578 = vpow2.f32 %v1834_v36 }
 0xcd2   :  { %v7500_v2 = vpop.eup %6574 }
 0xcd3   :  { %v1841_v7 = vsel %vm568_vm8, %v7500_v2, 0.0 }
 0xcd4   :  { %1842 = vadd.xlane.f32.xlu0 %v1841_v7 }
 0xcd6   :  { %v7504_v8 = vpop.eup %6576 }
 0xcd7   :  { %v1844_v12 = vsel %vm568_vm8, %v7504_v8, 0.0 }
 0xcd8   :  { %1845 = vadd.xlane.f32.xlu1 %v1844_v12 }
 0xce8   :  { %v1649_v14 = vpop.f32.mrb[44].mxu0 }
 0xce9   :  { %v7509_v17 = vadd.f32 %v1649_v14, %v7356_v5  ;;  %v5649_v20 = vpop.f32.mrb[45].mxu0  ;;  %6413 = vrot.lane.b32.xlu1 %v7056_v6, %s8506_s1 }
 0xcea   :  { %6418 = vrot.lane.b32.xlu0 %v7066_v13, %s8506_s1  ;;  %v1827_v13 = vsub.f32 %v1805_v55, %v1822_v30 }
 0xcec   :  { %v1654_v26 = vpop.f32.mrb[46].mxu0  ;;  %v1836_v3 = vmul.f32 1.442695, %v1827_v13 }
 0xced   :  { %v7516_v21 = vadd.f32 %v1654_v26, %v7358_v9  ;;  %v5652_v28 = vpop.f32.mrb[47].mxu0 }
 0xcee   :  { %6580 = vpow2.f32 %v1836_v3 }
 0xcf0   :  { %v1659_v27 = vpop.f32.mrb[48].mxu0 }
 0xcf1   :  { %v7519_v31 = vadd.f32 %v1659_v27, %v7360_v15  ;;  %v5655_v5 = vpop.f32.mrb[49].mxu0  ;;  %v6579_v15 = vpop.eup %6578 }
 0xcf2   :  { %v1847_v4 = vsel %vm568_vm8, %v6579_v15, 0.0 }
 0xcf4   :  { %v1664_v32 = vpop.f32.mrb[50].mxu0 }
 0xcf5   :  { %v7522_v35 = vadd.f32 %v1664_v32, %v7362_v24  ;;  %v5658_v6 = vpop.f32.mrb[51].mxu0 }
 0xcf8   :  { %v1669_v37 = vpop.f32.mrb[52].mxu0  ;;  %v6581_v10 = vpop.eup %6580 }
 0xcf9   :  { %v7525_v9 = vadd.f32 %v1669_v37, %v7364_v23  ;;  %v5661_v39 = vpop.f32.mrb[53].mxu0  ;;  %v1850_v11 = vsel %vm581_vm9, %v6581_v10, 0.0 }
 0xd09   :  { %1848 = vadd.xlane.f32.xlu0 %v1847_v4 }
 0xd0d   :  { %1851 = vadd.xlane.f32.xlu1 %v1850_v11 }
 0xd1f   :  { %1871 = vrot.lane.b32.xlu0 %v7070_v16, %s8506_s1 }
 0xd5d   :  { %v1840_v24 = vpop.xlane.xlu1 %1839 }
 0xd5e   :  { %6582 = vrcp.f32 %v1840_v24 }
 0xd61   :  { %v1843_v43 = vpop.xlane.xlu0 %1842 }
 0xd62   :  { %6584 = vrcp.f32 %v1843_v43 }
 0xd65   :  { %v1846_v44 = vpop.xlane.xlu1 %1845  ;;  %v6419_v23 = vpop.permute.xlu0 %6418 }
 0xd66   :  { %v6421_v50 = vunpack.i.h.bf16 %v6419_v23  ;;  %v6420_v51 = vunpack.i.l.bf16 %v6419_v23  ;;  %6586 = vrcp.f32 %v1846_v44 }
 0xd68   :  { %v6215_v52 = vpack.c.bf16 %v6421_v50, %v6420_v51  ;;  %v6583_v54 = vpop.eup %6582 }
 0xd69   :  { %v6414_v45 = vpop.permute.xlu1 %6413  ;;  %v1858_v55 = vmul.f32 %v6583_v54, %v7496_v0 }
 0xd6a   :  { %v6416_v29 = vunpack.i.h.bf16 %v6414_v45  ;;  %v6415_v49 = vunpack.i.l.bf16 %v6414_v45 }
 0xd6c   :  { %v6212_v33 = vpack.c.bf16 %v6416_v29, %v6415_v49  ;;  %v6585_v57 = vpop.eup %6584 }
 0xd6d   :  { %v1859_v58 = vmul.f32 %v6585_v57, %v7500_v2 }
 0xd6e   :  { %6213 = vmatpush3.bf16.msra.mxu0 %v6212_v33  ;;  %6324 = vmatpush3.bf16.msra.mxu1 %v6212_v33 }
 0xd6f   :  { %6214 = vmatprep.subr.bf16.mxu0 %v6760_v18  ;;  %6322 = vmatprep.subr.bf16.mxu1 %v6760_v18 }
 0xd70   :  { %v6587_v59 = vpop.eup %6586 }
 0xd71   :  { %v1860_v48 = vmul.f32 %v6587_v59, %v7504_v8 }
 0xd72   :  { %6216 = vmatpush3.bf16.msra.mxu0 %v6215_v52  ;;  %6325 = vmatpush3.bf16.msra.mxu1 %v6215_v52 }
 0xd73   :  { %5695 = vmatprep.subr.mxu0 %v6762_v19  ;;  %6323 = vmatprep.subr.mxu1 %v6762_v19 }
 0xd96   :  { %v1849_v16 = vpop.xlane.xlu0 %1848 }
 0xd97   :  { %6588 = vrcp.f32 %v1849_v16 }
 0xd9a   :  { %v1872_v38 = vpop.permute.xlu0 %1871  ;;  %v1852_v56 = vpop.xlane.xlu1 %1851 }
 0xd9b   :  { %6590 = vrcp.f32 %v1852_v56  ;;  %5696 = vmatpush3.msk.msra.mxu0 %vm215_vm3, %v1872_v38  ;;  %6326 = vmatpush3.msk.msra.mxu1 %vm215_vm3, %v1872_v38 }
 0xd9c   :  { %5698 = vmatmul.mubr.msk.f32.vlgmr.msra.gmra.mrb[54].mxu0 %vm568_vm8, %v1858_v55  ;;  %5712 = vmatprep.subr.mxu1 %v6762_v19 }
 0xd9d   :  { %5700 = vmatprep.mubr.msk.f32.mxu0 %vm6761_vm5, %v6762_v19  ;;  %6217 = vmatprep.subr.bf16.mxu0 %v6760_v18 }
 0xda0   :  { %5701 = vmatmul.mubr.msk.f32.gmra.mrb[56].mxu0 %vm568_vm8, %v1859_v58 }
 0xda1   :  { %5703 = vmatprep.mubr.msk.f32.mxu0 %vm6761_vm5, %v6762_v19  ;;  %v6589_v60 = vpop.eup %6588 }
 0xda2   :  { %v1861_v62 = vmul.f32 %v6589_v60, %v6579_v15 }
 0xda4   :  { %5704 = vmatmul.mubr.msk.f32.gmra.mrb[58].mxu0 %vm568_vm8, %v1860_v48 }
 0xda5   :  { %v6591_v61 = vpop.eup %6590  ;;  %5706 = vmatprep.mubr.msk.f32.mxu0 %vm6761_vm5, %v6762_v19 }
 0xda6   :  { %v1862_v53 = vmul.f32 %v6591_v61, %v6581_v10 }
 0xda8   :  { %5707 = vmatmul.mubr.msk.f32.gmra.mrb[60].mxu0 %vm568_vm8, %v1861_v62  ;;  %5710 = vmatmul.mubr.msk.f32.vlgmr.msra.gmra.mrb[60].mxu1 %vm568_vm8, %v1862_v53 }
 0xda9   :  { %5714 = vmatprep.mubr.msk.f32.mxu1 %vm6761_vm5, %v6762_v19  ;;  %5737 = vmatprep.mubr.msk.f32.mxu0 %vm6761_vm5, %v6762_v19 }
 0xdaa   :  { %5713 = vmatpush3.msra.mxu1 %v441_v63 }
 0xdab   :  { %6223 = vmatprep.subr.bf16.mxu1 %v6760_v18 }
 0xe6f   :  { %v1960_v0 = vpop.f32.mrb[54].mxu0 }
 0xe70   :  { %v5699_v1 = vpop.f32.mrb[55].mxu0  ;;  %5715 = vmatmul.mubr.msk.f32.vlgmr.msra.gmra.mrb[62].mxu1 %vm457_vm6, %v1960_v0 }
 0xe71   :  { %5717 = vmatprep.mubr.msk.f32.mxu1 %vm6761_vm5, %v6762_v19 }
 0xe73   :  { %v1965_v2 = vpop.f32.mrb[56].mxu0 }
 0xe74   :  { %v5702_v7 = vpop.f32.mrb[57].mxu0  ;;  %5718 = vmatmul.mubr.msk.f32.gmra.mrb[64].mxu1 %vm457_vm6, %v1965_v2 }
 0xe75   :  { %5720 = vmatprep.mubr.msk.f32.mxu1 %vm6761_vm5, %v6762_v19 }
 0xe77   :  { %v1970_v8 = vpop.f32.mrb[58].mxu0 }
 0xe78   :  { %v5705_v12 = vpop.f32.mrb[59].mxu0  ;;  %5721 = vmatmul.mubr.msk.f32.gmra.mrb[66].mxu1 %vm457_vm6, %v1970_v8 }
 0xe79   :  { %5723 = vmatprep.mubr.msk.f32.mxu1 %vm6761_vm5, %v6762_v19  ;;  %v2200_v12 = vld [vmem:[%s8486_s14] sm:$0xff] }
 0xe7b   :  { %v1975_v14 = vpop.f32.mrb[60].mxu0  ;;  %v1980_v20 = vpop.f32.mrb[60].mxu1 }
 0xe7c   :  { %v5708_v26 = vpop.f32.mrb[61].mxu0  ;;  %v5711_v28 = vpop.f32.mrb[61].mxu1  ;;  %5724 = vmatmul.mubr.msk.f32.gmra.mrb[68].mxu1 %vm457_vm6, %v1975_v14  ;;  %v2201_v14 = vld [vmem:[%s8486_s14 + $0x8] sm:$0xff] }
 0xe7d   :  { %5726 = vmatprep.mubr.msk.f32.mxu1 %vm6761_vm5, %v6762_v19  ;;  %v2202_v26 = vld [vmem:[%s8486_s14 + $0x10] sm:$0xff]  ;;  %v2203_v28 = vld [vmem:[%s8486_s14 + $0x18] sm:$0xff] }
 0xe80   :  { %5727 = vmatmul.mubr.msk.f32.gmra.mrb[70].mxu1 %vm457_vm6, %v1980_v20  ;;  %v6218_v20 = vpack.c.bf16 %v2201_v14, %v2200_v12 }
 0xe81   :  { %5768 = vmatprep.mubr.msk.f32.mxu1 %vm6761_vm5, %v6762_v19 }
 0xe82   :  { %6219 = vmatpush3.bf16.msra.mxu0 %v6218_v20 }
 0xe83   :  { %6220 = vmatprep.subr.bf16.mxu0 %v6760_v18 }
 0xf43   :  { %v2065_v25 = vpop.f32.mrb[62].mxu1 }
 0xf44   :  { %v2089_v27 = vadd.f32 %v2065_v25, %v7509_v17  ;;  %v5716_v5 = vpop.f32.mrb[63].mxu1  ;;  %v6221_v25 = vpack.c.bf16 %v2203_v28, %v2202_v26 }
 0xf46   :  { %v2094_v30 = vadd.f32 %v2089_v27, %v6946_v40  ;;  %6222 = vmatpush3.bf16.msra.mxu0 %v6221_v25 }
 0xf47   :  { %v2070_v32 = vpop.f32.mrb[64].mxu1  ;;  %6235 = vmatprep.subr.bf16.mxu0 %v6760_v18 }
 0xf48   :  { %v7581_v6 = vadd.f32 %v4975_v34, %v2094_v30  ;;  %v2090_v36 = vadd.f32 %v2070_v32, %v7516_v21  ;;  %v5719_v13 = vpop.f32.mrb[65].mxu1 }
 0xf4a   :  { %v2095_v37 = vadd.f32 %v2090_v36, %v6949_v41  ;;  %v2113_v39 = vsel %vm232_vm2, %v7581_v6, 0.0 }
 0xf4b   :  { %2114 = vadd.xlane.f32.xlu0 %v2113_v39  ;;  %v2075_v17 = vpop.f32.mrb[66].mxu1 }
 0xf4c   :  { %v7587_v3 = vadd.f32 %v4975_v34, %v2095_v37  ;;  %v2091_v15 = vadd.f32 %v2075_v17, %v7519_v31  ;;  %v5722_v4 = vpop.f32.mrb[67].mxu1 }
 0xf4e   :  { %v2096_v40 = vadd.f32 %v2091_v15, %v6957_v46  ;;  %v2116_v10 = vsel %vm232_vm2, %v7587_v3, 0.0 }
 0xf4f   :  { %2117 = vadd.xlane.f32.xlu1 %v2116_v10  ;;  %v2080_v21 = vpop.f32.mrb[68].mxu1 }
 0xf50   :  { %v7593_v11 = vadd.f32 %v4975_v34, %v2096_v40  ;;  %v2092_v41 = vadd.f32 %v2080_v21, %v7522_v35  ;;  %v5725_v24 = vpop.f32.mrb[69].mxu1  ;;  %v4976_v40 = vld [vmem:[%s8484_s12] ss:$0 sm:$0xff] }
 0xf52   :  { %v2097_v43 = vadd.f32 %v2092_v41, %v6961_v47  ;;  %v2119_v44 = vsel %vm232_vm2, %v7593_v11, 0.0 }
 0xf53   :  { %2120 = vadd.xlane.f32.xlu1 %v2119_v44  ;;  %v2085_v31 = vpop.f32.mrb[70].mxu1 }
 0xf54   :  { %v7599_v23 = vadd.f32 %v4975_v34, %v2097_v43  ;;  %v2093_v46 = vadd.f32 %v2085_v31, %v7525_v9  ;;  %v5728_v45 = vpop.f32.mrb[71].mxu1  ;;  %v4977_v43 = vld [vmem:[%s8485_s13] ss:$0 sm:$0xff] }
 0xf56   :  { %v2098_v29 = vadd.f32 %v2093_v46, %v6951_v42  ;;  %v2122_v49 = vsel %vm232_vm2, %v7599_v23, 0.0 }
 0xf57   :  { %2123 = vadd.xlane.f32.xlu0 %v2122_v49 }
 0xf58   :  { %v7605_v35 = vadd.f32 %v4975_v34, %v2098_v29 }
 0xf5a   :  { %v2125_v47 = vsel %vm245_vm4, %v7605_v35, 0.0 }
 0xf5b   :  { %2126 = vadd.xlane.f32.xlu1 %v2125_v47 }
 0xfd8   :  { %v2115_v50 = vpop.xlane.xlu0 %2114 }
 0xfd9   :  { %v2128_v51 = vmul.f32 0.03125, %v2115_v50 }
 0xfdb   :  { %v2133_v33 = vsub.f32 %v7581_v6, %v2128_v51 }
 0xfdc   :  { %v2118_v52 = vpop.xlane.xlu1 %2117 }
 0xfdd   :  { %v2129_v16 = vmul.f32 0.03125, %v2118_v52  ;;  %v2138_v9 = vmul.f32 %v2133_v33, %v2133_v33 }
 0xfdf   :  { %v2134_v54 = vsub.f32 %v7587_v3, %v2129_v16  ;;  %v2143_v42 = vsel %vm232_vm2, %v2138_v9, 0.0 }
 0xfe0   :  { %v2121_v55 = vpop.xlane.xlu1 %2120  ;;  %2144 = vadd.xlane.f32.xlu0 %v2143_v42 }
 0xfe1   :  { %v2130_v38 = vmul.f32 0.03125, %v2121_v55  ;;  %v2139_v56 = vmul.f32 %v2134_v54, %v2134_v54 }
 0xfe3   :  { %v2135_v57 = vsub.f32 %v7593_v11, %v2130_v38  ;;  %v2146_v58 = vsel %vm232_vm2, %v2139_v56, 0.0 }
 0xfe4   :  { %v2124_v59 = vpop.xlane.xlu0 %2123  ;;  %2147 = vadd.xlane.f32.xlu1 %v2146_v58  ;;  %v2361_v58 = vld [vmem:[%s8488_s16] sm:$0xff] }
 0xfe5   :  { %v2131_v48 = vmul.f32 0.03125, %v2124_v59  ;;  %v2140_v60 = vmul.f32 %v2135_v57, %v2135_v57  ;;  %v2362_v59 = vld [vmem:[%s8488_s16 + $0x8] sm:$0xff] }
 0xfe7   :  { %v2136_v61 = vsub.f32 %v7599_v23, %v2131_v48  ;;  %v2149_v53 = vsel %vm232_vm2, %v2140_v60, 0.0  ;;  %v6224_v48 = vpack.c.bf16 %v2362_v59, %v2361_v58  ;;  %v2363_v60 = vld [vmem:[%s8488_s16 + $0x10] sm:$0xff] }
 0xfe8   :  { %2150 = vadd.xlane.f32.xlu0 %v2149_v53  ;;  %v2127_v62 = vpop.xlane.xlu1 %2126 }
 0xfe9   :  { %v2132_v63 = vmul.f32 0.03125, %v2127_v62  ;;  %v2141_v0 = vmul.f32 %v2136_v61, %v2136_v61  ;;  %6225 = vmatpush3.bf16.msra.mxu1 %v6224_v48  ;;  %v2365_v62 = vld [vmem:[%s8488_s16 + $0x20] sm:$0xff] }
 0xfea   :  { %6226 = vmatprep.subr.bf16.mxu1 %v6760_v18 }
 0xfeb   :  { %v2137_v1 = vsub.f32 %v7605_v35, %v2132_v63  ;;  %v2152_v2 = vsel %vm232_vm2, %v2141_v0, 0.0  ;;  %v2366_v63 = vld [vmem:[%s8488_s16 + $0x28] sm:$0xff] }
 0xfec   :  { %2153 = vadd.xlane.f32.xlu1 %v2152_v2  ;;  %v6230_v0 = vpack.c.bf16 %v2366_v63, %v2365_v62  ;;  %v2368_v2 = vld [vmem:[%s8488_s16 + $0x38] sm:$0xff] }
 0xfed   :  { %v2142_v7 = vmul.f32 %v2137_v1, %v2137_v1 }
 0xfef   :  { %v2155_v8 = vsel %vm245_vm4, %v2142_v7, 0.0 }
 0xff0   :  { %2156 = vadd.xlane.f32.xlu0 %v2155_v8  ;;  %v4978_v8 = vld [vmem:[%s8487_s15] ss:$0 sm:$0xff] }
0x106d   :  { %v2145_v27 = vpop.xlane.xlu0 %2144 }
0x106e   :  { %v2158_v5 = vmul.f32 0.03125, %v2145_v27 }
0x1070   :  { %v2163_v34 = vadd.f32 1e-12, %v2158_v5 }
0x1071   :  { %v2148_v30 = vpop.xlane.xlu1 %2147 }
0x1072   :  { %6592 = vrsqrt.f32 %v2163_v34  ;;  %v2159_v32 = vmul.f32 0.03125, %v2148_v30 }
0x1074   :  { %v2164_v36 = vadd.f32 1e-12, %v2159_v32 }
0x1075   :  { %v2151_v13 = vpop.xlane.xlu0 %2150 }
0x1076   :  { %6594 = vrsqrt.f32 %v2164_v36  ;;  %v2160_v37 = vmul.f32 0.03125, %v2151_v13 }
0x1078   :  { %v2165_v39 = vadd.f32 1e-12, %v2160_v37 }
0x1079   :  { %v2154_v17 = vpop.xlane.xlu1 %2153 }
0x107a   :  { %6596 = vrsqrt.f32 %v2165_v39  ;;  %v2161_v15 = vmul.f32 0.03125, %v2154_v17 }
0x107c   :  { %v6593_v4 = vpop.eup %6592  ;;  %v2166_v10 = vadd.f32 1e-12, %v2161_v15 }
0x107d   :  { %v2173_v21 = vmul.f32 %v6593_v4, %v2133_v33  ;;  %v2157_v41 = vpop.xlane.xlu0 %2156 }
0x107e   :  { %6598 = vrsqrt.f32 %v2166_v10  ;;  %v2162_v24 = vmul.f32 0.03125, %v2157_v41 }
0x107f   :  { %v2184_v44 = vmul.f32 %v4976_v40, %v2173_v21 }
0x1080   :  { %v6595_v31 = vpop.eup %6594  ;;  %v2167_v46 = vadd.f32 1e-12, %v2162_v24 }
0x1081   :  { %v2195_v45 = vadd.f32 %v4977_v43, %v2184_v44  ;;  %v2174_v29 = vmul.f32 %v6595_v31, %v2134_v54 }
0x1082   :  { %6600 = vrsqrt.f32 %v2167_v46 }
0x1083   :  { %5738 = vmatmul.mubr.msk.f32.vlgmr.msra.gmra.mrb[62].mxu0 %vm232_vm2, %v2195_v45  ;;  %v2185_v49 = vmul.f32 %v4976_v40, %v2174_v29 }
0x1084   :  { %v6597_v47 = vpop.eup %6596  ;;  %5740 = vmatprep.mubr.msk.f32.mxu0 %vm6761_vm5, %v6762_v19 }
0x1085   :  { %v2196_v50 = vadd.f32 %v4977_v43, %v2185_v49  ;;  %v2175_v51 = vmul.f32 %v6597_v47, %v2135_v57 }
0x1087   :  { %5741 = vmatmul.mubr.msk.f32.gmra.mrb[64].mxu0 %vm232_vm2, %v2196_v50  ;;  %v2186_v33 = vmul.f32 %v4976_v40, %v2175_v51 }
0x1088   :  { %v6599_v52 = vpop.eup %6598  ;;  %5743 = vmatprep.mubr.msk.f32.mxu0 %vm6761_vm5, %v6762_v19 }
0x1089   :  { %v2197_v16 = vadd.f32 %v4977_v43, %v2186_v33  ;;  %v2176_v9 = vmul.f32 %v6599_v52, %v2136_v61  ;;  %v2364_v61 = vld [vmem:[%s8488_s16 + $0x18] sm:$0xff] }
0x108a   :  { %v6227_v53 = vpack.c.bf16 %v2364_v61, %v2363_v60 }
0x108b   :  { %5744 = vmatmul.mubr.msk.f32.gmra.mrb[66].mxu0 %vm232_vm2, %v2197_v16  ;;  %v2187_v54 = vmul.f32 %v4976_v40, %v2176_v9 }
0x108c   :  { %v6601_v42 = vpop.eup %6600  ;;  %5746 = vmatprep.mubr.msk.f32.mxu0 %vm6761_vm5, %v6762_v19  ;;  %6228 = vmatpush3.bf16.msra.mxu1 %v6227_v53 }
0x108d   :  { %v2198_v55 = vadd.f32 %v4977_v43, %v2187_v54  ;;  %v2177_v38 = vmul.f32 %v6601_v42, %v2137_v1  ;;  %6229 = vmatprep.subr.bf16.mxu1 %v6760_v18  ;;  %v2367_v1 = vld [vmem:[%s8488_s16 + $0x30] sm:$0xff] }
0x108e   :  { %v6233_v7 = vpack.c.bf16 %v2368_v2, %v2367_v1 }
0x108f   :  { %5747 = vmatmul.mubr.msk.f32.gmra.mrb[68].mxu0 %vm232_vm2, %v2198_v55  ;;  %v2188_v56 = vmul.f32 %v4976_v40, %v2177_v38 }
0x1090   :  { %5749 = vmatprep.mubr.msk.f32.mxu0 %vm6761_vm5, %v6762_v19  ;;  %6231 = vmatpush3.bf16.msra.mxu1 %v6230_v0 }
0x1091   :  { %v2199_v57 = vadd.f32 %v4977_v43, %v2188_v56  ;;  %6232 = vmatprep.subr.bf16.mxu1 %v6760_v18 }
0x1093   :  { %5750 = vmatmul.mubr.msk.f32.gmra.mrb[70].mxu0 %vm232_vm2, %v2199_v57 }
0x1094   :  { %5791 = vmatprep.mubr.msk.f32.mxu0 %vm6761_vm5, %v6762_v19  ;;  %6234 = vmatpush3.bf16.msra.mxu1 %v6233_v7 }
0x1095   :  { %6241 = vmatprep.subr.bf16.mxu1 %v6760_v18 }
0x1156   :  { %v2292_v12 = vpop.f32.mrb[62].mxu0 }
0x1157   :  { %v2293_v14 = vadd.f32 %v4978_v8, %v2292_v12  ;;  %v5739_v20 = vpop.f32.mrb[63].mxu0 }
0x1159   :  { %v2316_v26 = vmul.f32 %v2293_v14, %v2293_v14 }
0x115a   :  { %v2297_v28 = vpop.f32.mrb[64].mxu0 }
0x115b   :  { %v2321_v25 = vmul.f32 %v2316_v26, %v2293_v14  ;;  %v2298_v27 = vadd.f32 %v4978_v8, %v2297_v28  ;;  %v5742_v5 = vpop.f32.mrb[65].mxu0 }
0x115d   :  { %v2326_v34 = vmul.f32 0.044715, %v2321_v25  ;;  %v2317_v30 = vmul.f32 %v2298_v27, %v2298_v27  ;;  %v4989_v25 = vld [vmem:[%s8489_s17] ss:$0 sm:$0xff] }
0x115e   :  { %v2302_v32 = vpop.f32.mrb[66].mxu0 }
0x115f   :  { %v2331_v36 = vadd.f32 %v2326_v34, %v2293_v14  ;;  %v2322_v13 = vmul.f32 %v2317_v30, %v2298_v27  ;;  %v2303_v37 = vadd.f32 %v4978_v8, %v2302_v32  ;;  %v5745_v39 = vpop.f32.mrb[67].mxu0 }
0x1161   :  { %v2336_v17 = vmul.f32 0.7978846, %v2331_v36  ;;  %v2327_v15 = vmul.f32 0.044715, %v2322_v13  ;;  %v2318_v4 = vmul.f32 %v2303_v37, %v2303_v37 }
0x1162   :  { %v2307_v40 = vpop.f32.mrb[68].mxu0 }
0x1163   :  { %6602 = vtanh.f32 %v2336_v17  ;;  %v2332_v10 = vadd.f32 %v2327_v15, %v2298_v27  ;;  %v2323_v21 = vmul.f32 %v2318_v4, %v2303_v37  ;;  %v2308_v41 = vadd.f32 %v4978_v8, %v2307_v40  ;;  %v5748_v24 = vpop.f32.mrb[69].mxu0 }
0x1165   :  { %v2337_v43 = vmul.f32 0.7978846, %v2332_v10  ;;  %v2328_v44 = vmul.f32 0.044715, %v2323_v21  ;;  %v2319_v31 = vmul.f32 %v2308_v41, %v2308_v41 }
0x1166   :  { %v2312_v46 = vpop.f32.mrb[70].mxu0 }
0x1167   :  { %6604 = vtanh.f32 %v2337_v43  ;;  %v2333_v45 = vadd.f32 %v2328_v44, %v2303_v37  ;;  %v2324_v29 = vmul.f32 %v2319_v31, %v2308_v41  ;;  %v2313_v49 = vadd.f32 %v4978_v8, %v2312_v46  ;;  %v5751_v47 = vpop.f32.mrb[71].mxu0 }
0x1169   :  { %v2338_v50 = vmul.f32 0.7978846, %v2333_v45  ;;  %v2329_v51 = vmul.f32 0.044715, %v2324_v29  ;;  %v2320_v33 = vmul.f32 %v2313_v49, %v2313_v49 }
0x116b   :  { %6606 = vtanh.f32 %v2338_v50  ;;  %v2334_v52 = vadd.f32 %v2329_v51, %v2308_v41  ;;  %v2325_v16 = vmul.f32 %v2320_v33, %v2313_v49 }
0x116d   :  { %v6603_v9 = vpop.eup %6602  ;;  %v2339_v54 = vmul.f32 0.7978846, %v2334_v52  ;;  %v2330_v42 = vmul.f32 0.044715, %v2325_v16 }
0x116e   :  { %v2346_v55 = vadd.f32 1.0, %v6603_v9 }
0x116f   :  { %6608 = vtanh.f32 %v2339_v54  ;;  %v2335_v38 = vadd.f32 %v2330_v42, %v2313_v49 }
0x1170   :  { %v2351_v56 = vmul.f32 0.5, %v2346_v55 }
0x1171   :  { %v6605_v57 = vpop.eup %6604  ;;  %v2340_v58 = vmul.f32 0.7978846, %v2335_v38 }
0x1172   :  { %v2356_v59 = vmul.f32 %v2351_v56, %v2293_v14  ;;  %v2347_v48 = vadd.f32 1.0, %v6605_v57 }
0x1173   :  { %6610 = vtanh.f32 %v2340_v58 }
0x1174   :  { %5769 = vmatmul.mubr.msk.f32.vlgmr.msra.gmra.mrb[72].mxu1 %vm91_vm0, %v2356_v59  ;;  %v2352_v60 = vmul.f32 0.5, %v2347_v48 }
0x1175   :  { %v6607_v61 = vpop.eup %6606  ;;  %5771 = vmatprep.mubr.msk.f32.mxu1 %vm6761_vm5, %v6762_v19 }
0x1176   :  { %v2357_v53 = vmul.f32 %v2352_v60, %v2298_v27  ;;  %v2348_v62 = vadd.f32 1.0, %v6607_v61 }
0x1178   :  { %5772 = vmatmul.mubr.msk.f32.gmra.mrb[74].mxu1 %vm91_vm0, %v2357_v53  ;;  %v2353_v63 = vmul.f32 0.5, %v2348_v62 }
0x1179   :  { %v6609_v0 = vpop.eup %6608  ;;  %5774 = vmatprep.mubr.msk.f32.mxu1 %vm6761_vm5, %v6762_v19 }
0x117a   :  { %v2358_v1 = vmul.f32 %v2353_v63, %v2303_v37  ;;  %v2349_v2 = vadd.f32 1.0, %v6609_v0  ;;  %v4994_v63 = vld [vmem:[%s8480_s8 + $0x20] sm:$0xff]  ;;  %v4995_v0 = vld [vmem:[%s8480_s8 + $0x28] sm:$0xff] }
0x117c   :  { %5775 = vmatmul.mubr.msk.f32.gmra.mrb[76].mxu1 %vm91_vm0, %v2358_v1  ;;  %v2354_v7 = vmul.f32 0.5, %v2349_v2  ;;  %v6236_v1 = vpack.c.bf16 %v4995_v0, %v4994_v63  ;;  %v4996_v2 = vld [vmem:[%s8480_s8 + $0x30] sm:$0xff] }
0x117d   :  { %v6611_v8 = vpop.eup %6610  ;;  %5777 = vmatprep.mubr.msk.f32.mxu1 %vm6761_vm5, %v6762_v19 }
0x117e   :  { %v2359_v12 = vmul.f32 %v2354_v7, %v2308_v41  ;;  %v2350_v14 = vadd.f32 1.0, %v6611_v8  ;;  %6237 = vmatpush3.bf16.msra.mxu0 %v6236_v1  ;;  %v4997_v7 = vld [vmem:[%s8480_s8 + $0x38] sm:$0xff]  ;;  %s4870_s8 = sshll.u32 %s6774_s28, 4  ;;  %s4871_s8 = int_to_ptr.vmem [resolvable:$true] %s4870_s8 }
0x117f   :  { %6238 = vmatprep.subr.bf16.mxu0 %v6760_v18  ;;  %v6239_v8 = vpack.c.bf16 %v4997_v7, %v4996_v2  ;;  %p6741_p1 = scmp.lt.s32.totalorder %s4871_s8, %s4871_s8 }
0x1180   :  { %5778 = vmatmul.mubr.msk.f32.gmra.mrb[78].mxu1 %vm91_vm0, %v2359_v12  ;;  %v2355_v20 = vmul.f32 0.5, %v2350_v14 }
0x1181   :  { %5780 = vmatprep.mubr.msk.f32.mxu1 %vm6761_vm5, %v6762_v19 }
0x1182   :  { %v2360_v26 = vmul.f32 %v2355_v20, %v2313_v49  ;;  %6240 = vmatpush3.bf16.msra.mxu0 %v6239_v8 }
0x1183   :  { %6249 = vmatprep.subr.bf16.mxu0 %v6760_v18 }
0x1184   :  { %5781 = vmatmul.mubr.msk.f32.gmra.mrb[80].mxu1 %vm91_vm0, %v2360_v26 }
0x1185   :  { %5816 = vmatprep.mubr.msk.f32.mxu1 %vm6761_vm5, %v6762_v19 }
0x1247   :  { %v2450_v28 = vpop.f32.mrb[72].mxu1 }
0x1248   :  { %v2474_v27 = vadd.f32 %v2450_v28, %v7581_v6  ;;  %v5770_v5 = vpop.f32.mrb[73].mxu1 }
0x124a   :  { %v7704_v34 = vadd.f32 %v4989_v25, %v2474_v27 }
0x124b   :  { %v2455_v30 = vpop.f32.mrb[74].mxu1 }
0x124c   :  { %v2475_v32 = vadd.f32 %v2455_v30, %v7587_v3  ;;  %v5773_v36 = vpop.f32.mrb[75].mxu1  ;;  %v2495_v13 = vsel %vm232_vm2, %v7704_v34, 0.0 }
0x124d   :  { %2496 = vadd.xlane.f32.xlu1 %v2495_v13 }
0x124e   :  { %v7709_v37 = vadd.f32 %v4989_v25, %v2475_v32 }
0x124f   :  { %v2460_v39 = vpop.f32.mrb[76].mxu1 }
0x1250   :  { %v2476_v17 = vadd.f32 %v2460_v39, %v7593_v11  ;;  %v5776_v15 = vpop.f32.mrb[77].mxu1  ;;  %v2498_v6 = vsel %vm232_vm2, %v7709_v37, 0.0  ;;  %v4992_v39 = vld [vmem:[%s8524_s23 + $0x1] ss:$0 sm:$0xff]  ;;  %s8530_s23 = smov 48  }
0x1251   :  { %2499 = vadd.xlane.f32.xlu0 %v2498_v6 }
0x1252   :  { %v7714_v4 = vadd.f32 %v4989_v25, %v2476_v17 }
0x1253   :  { %v2465_v40 = vpop.f32.mrb[78].mxu1 }
0x1254   :  { %v2477_v3 = vadd.f32 %v2465_v40, %v7599_v23  ;;  %v5779_v10 = vpop.f32.mrb[79].mxu1  ;;  %v2501_v21 = vsel %vm232_vm2, %v7714_v4, 0.0  ;;  %v4993_v40 = vld [vmem:[%s8479_s7 + $0x1] ss:$0 sm:$0xff] }
0x1255   :  { %2502 = vadd.xlane.f32.xlu1 %v2501_v21 }
0x1256   :  { %v7719_v41 = vadd.f32 %v4989_v25, %v2477_v3 }
0x1257   :  { %v2470_v24 = vpop.f32.mrb[80].mxu1 }
0x1258   :  { %v2478_v11 = vadd.f32 %v2470_v24, %v7605_v35  ;;  %v5782_v43 = vpop.f32.mrb[81].mxu1  ;;  %v2504_v44 = vsel %vm232_vm2, %v7719_v41, 0.0 }
0x1259   :  { %2505 = vadd.xlane.f32.xlu0 %v2504_v44 }
0x125a   :  { %v7724_v31 = vadd.f32 %v4989_v25, %v2478_v11 }
0x125c   :  { %v2507_v23 = vsel %vm245_vm4, %v7724_v31, 0.0 }
0x125d   :  { %2508 = vadd.xlane.f32.xlu1 %v2507_v23 }
0x12da   :  { %v2497_v46 = vpop.xlane.xlu1 %2496 }
0x12db   :  { %v2510_v45 = vmul.f32 0.03125, %v2497_v46 }
0x12dd   :  { %v2515_v29 = vsub.f32 %v7704_v34, %v2510_v45 }
0x12de   :  { %v2500_v49 = vpop.xlane.xlu0 %2499 }
0x12df   :  { %v2511_v47 = vmul.f32 0.03125, %v2500_v49  ;;  %v2520_v50 = vmul.f32 %v2515_v29, %v2515_v29 }
0x12e1   :  { %v2516_v35 = vsub.f32 %v7709_v37, %v2511_v47  ;;  %v2525_v51 = vsel %vm232_vm2, %v2520_v50, 0.0 }
0x12e2   :  { %v2503_v33 = vpop.xlane.xlu1 %2502  ;;  %2526 = vadd.xlane.f32.xlu0 %v2525_v51 }
0x12e3   :  { %v2512_v52 = vmul.f32 0.03125, %v2503_v33  ;;  %v2521_v16 = vmul.f32 %v2516_v35, %v2516_v35 }
0x12e5   :  { %v2517_v9 = vsub.f32 %v7714_v4, %v2512_v52  ;;  %v2528_v54 = vsel %vm232_vm2, %v2521_v16, 0.0 }
0x12e6   :  { %v2506_v42 = vpop.xlane.xlu0 %2505  ;;  %2529 = vadd.xlane.f32.xlu1 %v2528_v54 }
0x12e7   :  { %v2513_v55 = vmul.f32 0.03125, %v2506_v42  ;;  %v2522_v38 = vmul.f32 %v2517_v9, %v2517_v9 }
0x12e9   :  { %v2518_v56 = vsub.f32 %v7719_v41, %v2513_v55  ;;  %v2531_v57 = vsel %vm232_vm2, %v2522_v38, 0.0  ;;  %v4999_v55 = vld [vmem:[%s8481_s9 + $0x1] ss:$0 sm:$0xff]  ;;  %s8531_s9 = smov 72  }
0x12ea   :  { %2532 = vadd.xlane.f32.xlu0 %v2531_v57  ;;  %v2509_v58 = vpop.xlane.xlu1 %2508 }
0x12eb   :  { %v2514_v59 = vmul.f32 0.03125, %v2509_v58  ;;  %v2523_v48 = vmul.f32 %v2518_v56, %v2518_v56 }
0x12ed   :  { %v2519_v60 = vsub.f32 %v7724_v31, %v2514_v59  ;;  %v2534_v61 = vsel %vm232_vm2, %v2523_v48, 0.0 }
0x12ee   :  { %2535 = vadd.xlane.f32.xlu1 %v2534_v61 }
0x12ef   :  { %v2524_v53 = vmul.f32 %v2519_v60, %v2519_v60 }
0x12f1   :  { %v2537_v62 = vsel %vm245_vm4, %v2524_v53, 0.0 }
0x12f2   :  { %2538 = vadd.xlane.f32.xlu0 %v2537_v62 }
0x136f   :  { %v2527_v12 = vpop.xlane.xlu0 %2526 }
0x1370   :  { %v2540_v14 = vmul.f32 0.03125, %v2527_v12 }
0x1372   :  { %v2545_v20 = vadd.f32 1e-12, %v2540_v14 }
0x1373   :  { %v2530_v26 = vpop.xlane.xlu1 %2529 }
0x1374   :  { %6612 = vrsqrt.f32 %v2545_v20  ;;  %v2541_v28 = vmul.f32 0.03125, %v2530_v26 }
0x1376   :  { %v2546_v25 = vadd.f32 1e-12, %v2541_v28 }
0x1377   :  { %v2533_v27 = vpop.xlane.xlu0 %2532 }
0x1378   :  { %6614 = vrsqrt.f32 %v2546_v25  ;;  %v2542_v5 = vmul.f32 0.03125, %v2533_v27 }
0x137a   :  { %v2547_v30 = vadd.f32 1e-12, %v2542_v5 }
0x137b   :  { %v2536_v32 = vpop.xlane.xlu1 %2535 }
0x137c   :  { %6616 = vrsqrt.f32 %v2547_v30  ;;  %v2543_v36 = vmul.f32 0.03125, %v2536_v32 }
0x137e   :  { %v6613_v13 = vpop.eup %6612  ;;  %v2548_v17 = vadd.f32 1e-12, %v2543_v36 }
0x137f   :  { %v2555_v15 = vmul.f32 %v6613_v13, %v2515_v29  ;;  %v2539_v6 = vpop.xlane.xlu0 %2538 }
0x1380   :  { %6618 = vrsqrt.f32 %v2548_v17  ;;  %v2544_v3 = vmul.f32 0.03125, %v2539_v6 }
0x1381   :  { %v2566_v10 = vmul.f32 %v4992_v39, %v2555_v15 }
0x1382   :  { %v6615_v21 = vpop.eup %6614  ;;  %v2549_v24 = vadd.f32 1e-12, %v2544_v3 }
0x1383   :  { %v2577_v11 = vadd.f32 %v4993_v40, %v2566_v10  ;;  %v2556_v43 = vmul.f32 %v6615_v21, %v2516_v35 }
0x1384   :  { %6620 = vrsqrt.f32 %v2549_v24 }
0x1385   :  { %5792 = vmatmul.mubr.msk.f32.vlgmr.msra.gmra.mrb[72].mxu0 %vm232_vm2, %v2577_v11  ;;  %v2567_v44 = vmul.f32 %v4992_v39, %v2556_v43 }
0x1386   :  { %v6617_v23 = vpop.eup %6616  ;;  %5794 = vmatprep.mubr.msk.f32.mxu0 %vm6761_vm5, %v6762_v19 }
0x1387   :  { %v2578_v46 = vadd.f32 %v4993_v40, %v2567_v44  ;;  %v2557_v45 = vmul.f32 %v6617_v23, %v2517_v9  ;;  %v7870_v44 = vld [vmem:[%s8527_s26] sm:$0xff] }
0x1389   :  { %5795 = vmatmul.mubr.msk.f32.gmra.mrb[74].mxu0 %vm232_vm2, %v2578_v46  ;;  %v2568_v29 = vmul.f32 %v4992_v39, %v2557_v45 }
0x138a   :  { %v6619_v49 = vpop.eup %6618  ;;  %5797 = vmatprep.mubr.msk.f32.mxu0 %vm6761_vm5, %v6762_v19 }
0x138b   :  { %v2579_v47 = vadd.f32 %v4993_v40, %v2568_v29  ;;  %v2558_v50 = vmul.f32 %v6619_v49, %v2518_v56  ;;  %v7877_v49 = vld [vmem:[%s8527_s26 + $0x8] sm:$0xff] }
0x138d   :  { %5798 = vmatmul.mubr.msk.f32.gmra.mrb[76].mxu0 %vm232_vm2, %v2579_v47  ;;  %v2569_v35 = vmul.f32 %v4992_v39, %v2558_v50 }
0x138e   :  { %v6621_v51 = vpop.eup %6620  ;;  %5800 = vmatprep.mubr.msk.f32.mxu0 %vm6761_vm5, %v6762_v19 }
0x138f   :  { %v2580_v33 = vadd.f32 %v4993_v40, %v2569_v35  ;;  %v2559_v52 = vmul.f32 %v6621_v51, %v2519_v60 }
0x1391   :  { %5801 = vmatmul.mubr.msk.f32.gmra.mrb[78].mxu0 %vm232_vm2, %v2580_v33  ;;  %v2570_v16 = vmul.f32 %v4992_v39, %v2559_v52  ;;  %v7884_v33 = vld [vmem:[%s8527_s26 + $0x10] sm:$0xff] }
0x1392   :  { %5803 = vmatprep.mubr.msk.f32.mxu0 %vm6761_vm5, %v6762_v19 }
0x1393   :  { %v2581_v9 = vadd.f32 %v4993_v40, %v2570_v16 }
0x1395   :  { %5804 = vmatmul.mubr.msk.f32.gmra.mrb[80].mxu0 %vm232_vm2, %v2581_v9 }
0x1396   :  { %5841 = vmatprep.mubr.msk.f32.mxu0 %vm6761_vm5, %v6762_v19 }
0x1458   :  { %v2676_v54 = vpop.f32.mrb[72].mxu0 }
0x1459   :  { %v5793_v42 = vpop.f32.mrb[73].mxu0  ;;  %v7776_v56 = vadd.f32 %v4999_v55, %v2676_v54 }
0x145a   :  { %v7891_v42 = vld [vmem:[%s8527_s26 + $0x18] sm:$0xff] }
0x145c   :  { %v2681_v38 = vpop.f32.mrb[74].mxu0 }
0x145d   :  { %v7778_v57 = vadd.f32 %v4999_v55, %v2681_v38  ;;  %v5796_v58 = vpop.f32.mrb[75].mxu0 }
0x145f   :  { %v7782_v59 = vpack.i.bf16 %v7778_v57, %v7776_v56 }
0x1460   :  { %v2686_v48 = vpop.f32.mrb[76].mxu0 }
0x1461   :  { %6423 = vrot.lane.b32.xlu1 %v7782_v59, %s6763_s6  ;;  %v5799_v60 = vpop.f32.mrb[77].mxu0  ;;  %v7786_v53 = vadd.f32 %v4999_v55, %v2686_v48 }
0x1462   :  { %v7898_v60 = vld [vmem:[%s8527_s26 + $0x20] sm:$0x3] }
0x1464   :  { %v2691_v61 = vpop.f32.mrb[78].mxu0 }
0x1465   :  { %v7788_v62 = vadd.f32 %v4999_v55, %v2691_v61  ;;  %v5802_v63 = vpop.f32.mrb[79].mxu0 }
0x1467   :  { %v7792_v0 = vpack.i.bf16 %v7788_v62, %v7786_v53 }
0x1468   :  { %v2696_v1 = vpop.f32.mrb[80].mxu0 }
0x1469   :  { %v7794_v2 = vadd.f32 %v4999_v55, %v2696_v1  ;;  %6428 = vrot.lane.b32.xlu0 %v7792_v0, %s6763_s6  ;;  %v5805_v7 = vpop.f32.mrb[81].mxu0 }
0x146b   :  { %2718 = vrot.lane.b32.xlu1 %v7794_v2, %s6763_s6  ;;  %s8532_s6 = smov 104  }
0x146d   :  { %3024 = vrot.lane.b32.xlu0 %v7794_v2, %s6766_s29 }
0x146f   :  { %6433 = vrot.lane.b32.xlu1 %v7782_v59, %s6766_s29 }
0x1471   :  { %3008 = vrot.lane.b32.xlu0 %v7778_v57, %s6765_s24 }
0x1473   :  { %6438 = vrot.lane.b32.xlu1 %v7792_v0, %s6766_s29 }
0x1475   :  { %3012 = vrot.lane.b32.xlu0 %v7788_v62, %s6765_s24 }
0x1477   :  { %3006 = vrot.lane.b32.xlu1 %v7776_v56, %s6765_s24 }
0x147b   :  { %3010 = vrot.lane.b32.xlu1 %v7786_v53, %s6765_s24 }
0x147f   :  { %3014 = vrot.lane.b32.xlu1 %v7794_v2, %s6765_s24 }
0x14d3   :  { %v6424_v8 = vpop.permute.xlu1 %6423 }
0x14d4   :  { %v6426_v12 = vunpack.i.h.bf16 %v6424_v8  ;;  %v6425_v14 = vunpack.i.l.bf16 %v6424_v8 }
0x14d6   :  { %v6242_v20 = vpack.c.bf16 %v6426_v12, %v6425_v14 }
0x14d8   :  { %6244 = vmatpush3.bf16.xpose.msk.msra.mxu1 %vm7076_vm7, %v6242_v20 }
0x14d9   :  { %6245 = vmatprep.subr.bf16.mxu1 %v6760_v18 }
0x14db   :  { %v6429_v26 = vpop.permute.xlu0 %6428 }
0x14dc   :  { %v6431_v28 = vunpack.i.h.bf16 %v6429_v26  ;;  %v6430_v25 = vunpack.i.l.bf16 %v6429_v26 }
0x14dd   :  { %v2719_v27 = vpop.permute.xlu1 %2718 }
0x14de   :  { %v6246_v5 = vpack.c.bf16 %v6431_v28, %v6430_v25 }
0x14df   :  { %v3025_v40 = vpop.permute.xlu0 %3024 }
0x14e0   :  { %6248 = vmatpush3.bf16.xpose.msk.msra.mxu1 %vm7076_vm7, %v6246_v5 }
0x14e1   :  { %5814 = vmatprep.subr.mxu1 %v6762_v19  ;;  %v6434_v30 = vpop.permute.xlu1 %6433 }
0x14e2   :  { %v6436_v32 = vunpack.i.h.bf16 %v6434_v30  ;;  %v6435_v36 = vunpack.i.l.bf16 %v6434_v30 }
0x14e3   :  { %v3009_v10 = vpop.permute.xlu0 %3008 }
0x14e4   :  { %v6256_v13 = vpack.c.bf16 %v6436_v32, %v6435_v36 }
0x14e5   :  { %v6439_v39 = vpop.permute.xlu1 %6438 }
0x14e6   :  { %v6441_v17 = vunpack.i.h.bf16 %v6439_v39  ;;  %v6440_v15 = vunpack.i.l.bf16 %v6439_v39 }
0x14e7   :  { %v3013_v24 = vpop.permute.xlu0 %3012 }
0x14e8   :  { %5815 = vmatpush3.xpose.msk.msra.mxu1 %vm457_vm6, %v2719_v27  ;;  %v6260_v6 = vpack.c.bf16 %v6441_v17, %v6440_v15 }
0x14e9   :  { %6255 = vmatprep.subr.bf16.mxu1 %v6760_v18  ;;  %v3007_v3 = vpop.permute.xlu1 %3006 }
0x14eb   :  { %5817 = vmatmul.mubr.msk.f32.vlgmr.msra.gmra.mrb[82].mxu1 %vm457_vm6, %v7776_v56 }
0x14ec   :  { %6258 = vmatpush3.bf16.xpose.msk.msra.mxu1 %vm7076_vm7, %v6256_v13  ;;  %5819 = vmatprep.mubr.msk.f32.mxu1 %vm6761_vm5, %v6762_v19 }
0x14ed   :  { %6259 = vmatprep.subr.bf16.mxu1 %v6760_v18  ;;  %v3011_v21 = vpop.permute.xlu1 %3010 }
0x14ef   :  { %5820 = vmatmul.mubr.msk.f32.gmra.mrb[84].mxu1 %vm457_vm6, %v7778_v57 }
0x14f0   :  { %5822 = vmatprep.mubr.msk.f32.mxu1 %vm6761_vm5, %v6762_v19 }
0x14f1   :  { %v3015_v11 = vpop.permute.xlu1 %3014 }
0x14f3   :  { %5823 = vmatmul.mubr.msk.f32.gmra.mrb[86].mxu1 %vm457_vm6, %v7786_v53 }
0x14f4   :  { %6262 = vmatpush3.bf16.xpose.msk.msra.mxu1 %vm7076_vm7, %v6260_v6  ;;  %5825 = vmatprep.mubr.msk.f32.mxu1 %vm6761_vm5, %v6762_v19 }
0x14f5   :  { %5864 = vmatprep.subr.mxu1 %v6762_v19 }
0x14f7   :  { %5826 = vmatmul.mubr.msk.f32.gmra.mrb[88].mxu1 %vm457_vm6, %v7788_v62 }
0x14f8   :  { %5828 = vmatprep.mubr.msk.f32.mxu1 %vm6761_vm5, %v6762_v19 }
0x14fb   :  { %5829 = vmatmul.mubr.msk.f32.gmra.mrb[90].mxu1 %vm457_vm6, %v7794_v2 }
0x14fc   :  { %5865 = vmatpush3.xpose.msk.msra.mxu1 %vm457_vm6, %v3025_v40  ;;  %5866 = vmatprep.mubr.msk.f32.mxu1 %vm6761_vm5, %v6762_v19 }
0x14fd   :  { %5906 = vmatprep.subr.mxu1 %v6762_v19 }
0x14ff   :  { %5867 = vmatmul.mubr.msk.f32.vlgmr.msra.gmra.mrb[92].mxu1 %vm457_vm6, %v3007_v3 }
0x1500   :  { %5869 = vmatprep.mubr.msk.f32.mxu1 %vm6761_vm5, %v6762_v19 }
0x1503   :  { %5870 = vmatmul.mubr.msk.f32.gmra.mrb[94].mxu1 %vm457_vm6, %v3009_v10 }
0x1504   :  { %5872 = vmatprep.mubr.msk.f32.mxu1 %vm6761_vm5, %v6762_v19 }
0x1507   :  { %5873 = vmatmul.mubr.msk.f32.gmra.mrb[96].mxu1 %vm457_vm6, %v3011_v21 }
0x1508   :  { %5875 = vmatprep.mubr.msk.f32.mxu1 %vm6761_vm5, %v6762_v19 }
0x150b   :  { %5876 = vmatmul.mubr.msk.f32.gmra.mrb[98].mxu1 %vm457_vm6, %v3013_v24 }
0x150c   :  { %5878 = vmatprep.mubr.msk.f32.mxu1 %vm6761_vm5, %v6762_v19 }
0x150f   :  { %5879 = vmatmul.mubr.msk.f32.gmra.mrb[100].mxu1 %vm457_vm6, %v3015_v11 }
0x1510   :  { %5908 = vmatprep.mubr.msk.f32.mxu1 %vm6761_vm5, %v6762_v19 }
0x15be   :  { %v2806_v43 = vpop.f32.mrb[82].mxu1 }
0x15bf   :  { %v2807_v23 = vadd.f32 %v7870_v44, %v2806_v43  ;;  %v5818_v46 = vpop.f32.mrb[83].mxu1 }
0x15c1   :  { %v2830_v45 = vsel %vm568_vm8, %v2807_v23, -inf }
0x15c2   :  { %2831 = vmax.xlane.f32.xlu0 %v2830_v45  ;;  %v2811_v29 = vpop.f32.mrb[84].mxu1 }
0x15c3   :  { %v2812_v47 = vadd.f32 %v7877_v49, %v2811_v29  ;;  %v5821_v50 = vpop.f32.mrb[85].mxu1 }
0x15c5   :  { %v2833_v35 = vsel %vm568_vm8, %v2812_v47, -inf }
0x15c6   :  { %2834 = vmax.xlane.f32.xlu1 %v2833_v35  ;;  %v2816_v51 = vpop.f32.mrb[86].mxu1 }
0x15c7   :  { %v2817_v52 = vadd.f32 %v7884_v33, %v2816_v51  ;;  %v5824_v16 = vpop.f32.mrb[87].mxu1 }
0x15c9   :  { %v2836_v9 = vsel %vm568_vm8, %v2817_v52, -inf }
0x15ca   :  { %2837 = vmax.xlane.f32.xlu0 %v2836_v9  ;;  %v2821_v54 = vpop.f32.mrb[88].mxu1 }
0x15cb   :  { %v2822_v55 = vadd.f32 %v7891_v42, %v2821_v54  ;;  %v5827_v38 = vpop.f32.mrb[89].mxu1 }
0x15cd   :  { %v2839_v58 = vsel %vm568_vm8, %v2822_v55, -inf }
0x15ce   :  { %2840 = vmax.xlane.f32.xlu0 %v2839_v58  ;;  %v2826_v48 = vpop.f32.mrb[90].mxu1 }
0x15cf   :  { %v2827_v61 = vadd.f32 %v7898_v60, %v2826_v48  ;;  %v5830_v63 = vpop.f32.mrb[91].mxu1 }
0x15d1   :  { %v2842_v1 = vsel %vm581_vm9, %v2827_v61, -inf }
0x15d2   :  { %2843 = vmax.xlane.f32.xlu0 %v2842_v1  ;;  %v3112_v7 = vpop.f32.mrb[92].mxu1 }
0x15d3   :  { %v3113_v8 = vadd.f32 %v7870_v44, %v3112_v7  ;;  %v5868_v12 = vpop.f32.mrb[93].mxu1 }
0x15d5   :  { %v3136_v14 = vsel %vm568_vm8, %v3113_v8, -inf }
0x15d6   :  { %3137 = vmax.xlane.f32.xlu1 %v3136_v14  ;;  %v3117_v20 = vpop.f32.mrb[94].mxu1 }
0x15d7   :  { %v3118_v26 = vadd.f32 %v7877_v49, %v3117_v20  ;;  %v5871_v28 = vpop.f32.mrb[95].mxu1 }
0x15d9   :  { %v3139_v25 = vsel %vm568_vm8, %v3118_v26, -inf }
0x15da   :  { %3140 = vmax.xlane.f32.xlu0 %v3139_v25  ;;  %v3122_v27 = vpop.f32.mrb[96].mxu1 }
0x15db   :  { %v5874_v5 = vpop.f32.mrb[97].mxu1  ;;  %v7916_v15 = vadd.f32 %v7884_v33, %v3122_v27 }
0x15dd   :  { %v3142_v40 = vsel %vm568_vm8, %v7916_v15, -inf }
0x15de   :  { %v3127_v30 = vpop.f32.mrb[98].mxu1 }
0x15df   :  { %v7907_v32 = vadd.f32 %v7891_v42, %v3127_v30  ;;  %v5877_v36 = vpop.f32.mrb[99].mxu1 }
0x15e1   :  { %v3145_v13 = vsel %vm568_vm8, %v7907_v32, -inf }
0x15e2   :  { %3146 = vmax.xlane.f32.xlu0 %v3145_v13  ;;  %v3132_v39 = vpop.f32.mrb[100].mxu1 }
0x15e3   :  { %v5880_v17 = vpop.f32.mrb[101].mxu1  ;;  %v7919_v6 = vadd.f32 %v7898_v60, %v3132_v39 }
0x15e5   :  { %v3148_v3 = vsel %vm581_vm9, %v7919_v6, -inf }
0x15e7   :  { %6443 = vrot.lane.b32.xlu1 %v7782_v59, %s6764_s5 }
0x15f8   :  { %6448 = vrot.lane.b32.xlu0 %v7792_v0, %s6764_s5 }
0x160b   :  { %3143 = vmax.xlane.f32.xlu1 %v3142_v40 }
0x160f   :  { %3149 = vmax.xlane.f32.xlu1 %v3148_v3 }
0x1620   :  { %2893 = vrot.lane.b32.xlu1 %v7794_v2, %s6764_s5  ;;  %s8528_s5 = smov 80  }
0x164f   :  { %v2832_v10 = vpop.xlane.xlu0 %2831 }
0x1650   :  { %v2845_v21 = vsub.f32 %v2807_v23, %v2832_v10 }
0x1652   :  { %v2850_v24 = vmul.f32 1.442695, %v2845_v21 }
0x1653   :  { %v2835_v11 = vpop.xlane.xlu1 %2834 }
0x1654   :  { %6622 = vpow2.f32 %v2850_v24  ;;  %v2846_v43 = vsub.f32 %v2812_v47, %v2835_v11 }
0x1656   :  { %v2852_v46 = vmul.f32 1.442695, %v2846_v43 }
0x1657   :  { %v2838_v45 = vpop.xlane.xlu0 %2837 }
0x1658   :  { %6624 = vpow2.f32 %v2852_v46  ;;  %v2847_v29 = vsub.f32 %v2817_v52, %v2838_v45 }
0x165a   :  { %v2854_v50 = vmul.f32 1.442695, %v2847_v29 }
0x165b   :  { %v2841_v35 = vpop.xlane.xlu0 %2840 }
0x165c   :  { %6626 = vpow2.f32 %v2854_v50  ;;  %v2848_v51 = vsub.f32 %v2822_v55, %v2841_v35 }
0x165e   :  { %v7927_v16 = vpop.eup %6622  ;;  %v2856_v9 = vmul.f32 1.442695, %v2848_v51 }
0x165f   :  { %v2844_v54 = vpop.xlane.xlu0 %2843  ;;  %v2860_v38 = vsel %vm568_vm8, %v7927_v16, 0.0 }
0x1660   :  { %6628 = vpow2.f32 %v2856_v9  ;;  %v2849_v23 = vsub.f32 %v2827_v61, %v2844_v54  ;;  %2861 = vadd.xlane.f32.xlu0 %v2860_v38 }
0x1662   :  { %v7931_v58 = vpop.eup %6624  ;;  %v2858_v47 = vmul.f32 1.442695, %v2849_v23 }
0x1663   :  { %v3138_v48 = vpop.xlane.xlu1 %3137  ;;  %v2863_v52 = vsel %vm568_vm8, %v7931_v58, 0.0 }
0x1664   :  { %6630 = vpow2.f32 %v2858_v47  ;;  %v3151_v63 = vsub.f32 %v3113_v8, %v3138_v48  ;;  %2864 = vadd.xlane.f32.xlu1 %v2863_v52 }
0x1666   :  { %v7935_v55 = vpop.eup %6626  ;;  %v3156_v1 = vmul.f32 1.442695, %v3151_v63 }
0x1667   :  { %v6444_v7 = vpop.permute.xlu1 %6443  ;;  %v3141_v12 = vpop.xlane.xlu0 %3140  ;;  %v2866_v14 = vsel %vm568_vm8, %v7935_v55, 0.0 }
0x1668   :  { %6632 = vpow2.f32 %v3156_v1  ;;  %v6446_v61 = vunpack.i.h.bf16 %v6444_v7  ;;  %v6445_v20 = vunpack.i.l.bf16 %v6444_v7  ;;  %v3152_v28 = vsub.f32 %v3118_v26, %v3141_v12  ;;  %2867 = vadd.xlane.f32.xlu0 %v2866_v14 }
0x166a   :  { %v7939_v25 = vpop.eup %6628  ;;  %v6250_v27 = vpack.c.bf16 %v6446_v61, %v6445_v20  ;;  %v3158_v5 = vmul.f32 1.442695, %v3152_v28 }
0x166b   :  { %v2869_v8 = vsel %vm568_vm8, %v7939_v25, 0.0 }
0x166c   :  { %6634 = vpow2.f32 %v3158_v5  ;;  %6251 = vmatpush3.bf16.msra.mxu0 %v6250_v27  ;;  %2870 = vadd.xlane.f32.xlu1 %v2869_v8 }
0x166d   :  { %6252 = vmatprep.subr.bf16.mxu0 %v6760_v18 }
0x166e   :  { %v7944_v30 = vpop.eup %6630 }
0x166f   :  { %v3147_v36 = vpop.xlane.xlu0 %3146  ;;  %v2872_v13 = vsel %vm581_vm9, %v7944_v30, 0.0 }
0x1670   :  { %2873 = vadd.xlane.f32.xlu0 %v2872_v13  ;;  %v3154_v11 = vsub.f32 %v7907_v32, %v3147_v36 }
0x1672   :  { %v7948_v26 = vpop.eup %6632  ;;  %v3162_v45 = vmul.f32 1.442695, %v3154_v11 }
0x1673   :  { %v6449_v39 = vpop.permute.xlu0 %6448  ;;  %v3166_v17 = vsel %vm568_vm8, %v7948_v26, 0.0 }
0x1674   :  { %v6451_v40 = vunpack.i.h.bf16 %v6449_v39  ;;  %v6450_v3 = vunpack.i.l.bf16 %v6449_v39  ;;  %3167 = vadd.xlane.f32.xlu1 %v3166_v17 }
0x1676   :  { %v7952_v10 = vpop.eup %6634  ;;  %v6253_v21 = vpack.c.bf16 %v6451_v40, %v6450_v3 }
0x1677   :  { %v3169_v24 = vsel %vm568_vm8, %v7952_v10, 0.0 }
0x1678   :  { %3170 = vadd.xlane.f32.xlu0 %v3169_v24  ;;  %6254 = vmatpush3.bf16.msra.mxu0 %v6253_v21 }
0x1679   :  { %5839 = vmatprep.subr.mxu0 %v6762_v19 }
0x1685   :  { %6458 = vrot.lane.b32.xlu1 %v7792_v0, %s6767_s25 }
0x1689   :  { %3199 = vrot.lane.b32.xlu1 %v7794_v2, %s6767_s25 }
0x168d   :  { %6463 = vrot.lane.b32.xlu1 %v7782_v59, %s8528_s5 }
0x1691   :  { %6468 = vrot.lane.b32.xlu1 %v7792_v0, %s8528_s5 }
0x1695   :  { %3540 = vrot.lane.b32.xlu1 %v7794_v2, %s8528_s5 }
0x1698   :  { %v3144_v43 = vpop.xlane.xlu1 %3143 }
0x1699   :  { %v3153_v46 = vsub.f32 %v7916_v15, %v3144_v43  ;;  %3522 = vrot.lane.b32.xlu1 %v7776_v56, %s8529_s2 }
0x169b   :  { %v3160_v29 = vmul.f32 1.442695, %v3153_v46 }
0x169c   :  { %v3150_v50 = vpop.xlane.xlu1 %3149 }
0x169d   :  { %6636 = vpow2.f32 %v3160_v29  ;;  %v3155_v35 = vsub.f32 %v7919_v6, %v3150_v50  ;;  %3526 = vrot.lane.b32.xlu1 %v7786_v53, %s8529_s2  ;;  %v5005_v29 = vld [vmem:[%s8482_s10 + $0x20] sm:$0xff] }
0x169e   :  { %6638 = vpow2.f32 %v3162_v45 }
0x169f   :  { %v3164_v51 = vmul.f32 1.442695, %v3155_v35 }
0x16a0   :  { %v2894_v9 = vpop.permute.xlu1 %2893 }
0x16a1   :  { %3530 = vrot.lane.b32.xlu1 %v7794_v2, %s8529_s2  ;;  %5840 = vmatpush3.msk.msra.mxu0 %vm215_vm3, %v2894_v9  ;;  %6640 = vpow2.f32 %v3164_v51 }
0x16a2   :  { %6263 = vmatprep.subr.bf16.mxu0 %v6760_v18 }
0x16a7   :  { %v7978_v32 = vpop.eup %6636 }
0x16a8   :  { %v3172_v15 = vsel %vm568_vm8, %v7978_v32, 0.0  ;;  %v7982_v6 = vpop.eup %6638 }
0x16a9   :  { %3173 = vadd.xlane.f32.xlu0 %v3172_v15  ;;  %v3175_v54 = vsel %vm568_vm8, %v7982_v6, 0.0 }
0x16ab   :  { %v7986_v38 = vpop.eup %6640 }
0x16ac   :  { %v3178_v23 = vsel %vm581_vm9, %v7986_v38, 0.0 }
0x16ad   :  { %3176 = vadd.xlane.f32.xlu0 %v3175_v54 }
0x16b1   :  { %3179 = vadd.xlane.f32.xlu0 %v3178_v23 }
0x16c7   :  { %6453 = vrot.lane.b32.xlu0 %v7782_v59, %s6767_s25 }
0x16cb   :  { %3524 = vrot.lane.b32.xlu0 %v7778_v57, %s8529_s2 }
0x16cf   :  { %3528 = vrot.lane.b32.xlu0 %v7788_v62, %s8529_s2 }
0x16ed   :  { %v2862_v47 = vpop.xlane.xlu0 %2861 }
0x16ee   :  { %6642 = vrcp.f32 %v2862_v47 }
0x16f1   :  { %v2865_v48 = vpop.xlane.xlu1 %2864 }
0x16f2   :  { %6644 = vrcp.f32 %v2865_v48 }
0x16f5   :  { %v2868_v52 = vpop.xlane.xlu0 %2867 }
0x16f6   :  { %6646 = vrcp.f32 %v2868_v52 }
0x16f8   :  { %v6643_v63 = vpop.eup %6642 }
0x16f9   :  { %v2880_v1 = vmul.f32 %v6643_v63, %v7927_v16  ;;  %v2871_v7 = vpop.xlane.xlu1 %2870 }
0x16fa   :  { %6648 = vrcp.f32 %v2871_v7 }
0x16fb   :  { %5842 = vmatmul.mubr.msk.f32.vlgmr.msra.gmra.mrb[82].mxu0 %vm568_vm8, %v2880_v1 }
0x16fc   :  { %v6645_v12 = vpop.eup %6644  ;;  %5844 = vmatprep.mubr.msk.f32.mxu0 %vm6761_vm5, %v6762_v19 }
0x16fd   :  { %v2874_v14 = vpop.xlane.xlu0 %2873  ;;  %v2881_v61 = vmul.f32 %v6645_v12, %v7931_v58 }
0x16fe   :  { %6650 = vrcp.f32 %v2874_v14 }
0x16ff   :  { %5845 = vmatmul.mubr.msk.f32.gmra.mrb[84].mxu0 %vm568_vm8, %v2881_v61 }
0x1700   :  { %v6647_v20 = vpop.eup %6646  ;;  %5847 = vmatprep.mubr.msk.f32.mxu0 %vm6761_vm5, %v6762_v19 }
0x1701   :  { %v2882_v16 = vmul.f32 %v6647_v20, %v7935_v55  ;;  %v3168_v13 = vpop.xlane.xlu1 %3167 }
0x1702   :  { %6652 = vrcp.f32 %v3168_v13 }
0x1703   :  { %5848 = vmatmul.mubr.msk.f32.gmra.mrb[86].mxu0 %vm568_vm8, %v2882_v16 }
0x1704   :  { %v6649_v28 = vpop.eup %6648  ;;  %5850 = vmatprep.mubr.msk.f32.mxu0 %vm6761_vm5, %v6762_v19 }
0x1705   :  { %v2883_v27 = vmul.f32 %v6649_v28, %v7939_v25  ;;  %v3171_v55 = vpop.xlane.xlu0 %3170  ;;  %v6459_v25 = vpop.permute.xlu1 %6458 }
0x1706   :  { %6654 = vrcp.f32 %v3171_v55  ;;  %v6461_v21 = vunpack.i.h.bf16 %v6459_v25  ;;  %v6460_v24 = vunpack.i.l.bf16 %v6459_v25 }
0x1707   :  { %5851 = vmatmul.mubr.msk.f32.gmra.mrb[88].mxu0 %vm568_vm8, %v2883_v27 }
0x1708   :  { %v6651_v58 = vpop.eup %6650  ;;  %5853 = vmatprep.mubr.msk.f32.mxu0 %vm6761_vm5, %v6762_v19 }
0x1709   :  { %v2884_v5 = vmul.f32 %v6651_v58, %v7944_v30  ;;  %v6267_v30 = vpack.c.bf16 %v6461_v21, %v6460_v24  ;;  %v3200_v45 = vpop.permute.xlu1 %3199 }
0x170b   :  { %5854 = vmatmul.mubr.msk.f32.gmra.mrb[90].mxu0 %vm568_vm8, %v2884_v5 }
0x170c   :  { %5891 = vmatprep.mubr.msk.f32.mxu0 %vm6761_vm5, %v6762_v19  ;;  %v6653_v43 = vpop.eup %6652 }
0x170d   :  { %v3186_v46 = vmul.f32 %v6653_v43, %v7948_v26  ;;  %v6464_v14 = vpop.permute.xlu1 %6463 }
0x170e   :  { %v6466_v61 = vunpack.i.h.bf16 %v6464_v14  ;;  %v6465_v20 = vunpack.i.l.bf16 %v6464_v14 }
0x1710   :  { %v6655_v50 = vpop.eup %6654  ;;  %v6270_v16 = vpack.c.bf16 %v6466_v61, %v6465_v20 }
0x1711   :  { %v3187_v35 = vmul.f32 %v6655_v50, %v7952_v10  ;;  %v6469_v27 = vpop.permute.xlu1 %6468 }
0x1712   :  { %v6471_v5 = vunpack.i.h.bf16 %v6469_v27  ;;  %v6470_v55 = vunpack.i.l.bf16 %v6469_v27 }
0x1714   :  { %v6274_v13 = vpack.c.bf16 %v6471_v5, %v6470_v55 }
0x1736   :  { %v3174_v8 = vpop.xlane.xlu0 %3173 }
0x1737   :  { %6656 = vrcp.f32 %v3174_v8 }
0x173a   :  { %v3177_v36 = vpop.xlane.xlu0 %3176 }
0x173b   :  { %6658 = vrcp.f32 %v3177_v36 }
0x173e   :  { %v3180_v39 = vpop.xlane.xlu0 %3179 }
0x173f   :  { %6660 = vrcp.f32 %v3180_v39 }
0x1741   :  { %v6657_v26 = vpop.eup %6656 }
0x1742   :  { %v6454_v17 = vpop.permute.xlu0 %6453  ;;  %v3188_v51 = vmul.f32 %v6657_v26, %v7978_v32  ;;  %v5006_v32 = vld [vmem:[%s8482_s10 + $0x28] sm:$0xff] }
0x1743   :  { %v6456_v40 = vunpack.i.h.bf16 %v6454_v17  ;;  %v6455_v3 = vunpack.i.l.bf16 %v6454_v17  ;;  %5907 = vmatpush3.msra.mxu1 %v5006_v32 }
0x1744   :  { %6269 = vmatprep.subr.bf16.mxu1 %v6760_v18 }
0x1745   :  { %v6264_v11 = vpack.c.bf16 %v6456_v40, %v6455_v3  ;;  %v6659_v9 = vpop.eup %6658  ;;  %v3541_v3 = vpop.permute.xlu1 %3540 }
0x1746   :  { %v3189_v15 = vmul.f32 %v6659_v9, %v7982_v6 }
0x1747   :  { %6265 = vmatpush3.bf16.msra.mxu0 %v6264_v11 }
0x1748   :  { %6266 = vmatprep.subr.bf16.mxu0 %v6760_v18 }
0x1749   :  { %v6661_v54 = vpop.eup %6660  ;;  %v3523_v11 = vpop.permute.xlu1 %3522 }
0x174a   :  { %v3190_v10 = vmul.f32 %v6661_v54, %v7986_v38 }
0x174b   :  { %6268 = vmatpush3.bf16.msra.mxu0 %v6267_v30  ;;  %v3525_v30 = vpop.permute.xlu0 %3524 }
0x174c   :  { %5889 = vmatprep.subr.mxu0 %v6762_v19 }
0x174d   :  { %v3527_v43 = vpop.permute.xlu1 %3526 }
0x174f   :  { %5890 = vmatpush3.msk.msra.mxu0 %vm215_vm3, %v3200_v45 }
0x1750   :  { %5892 = vmatmul.mubr.msk.f32.vlgmr.msra.gmra.mrb[92].mxu0 %vm568_vm8, %v3186_v46  ;;  %5923 = vmatprep.subr.mxu0 %v6762_v19  ;;  %v3529_v46 = vpop.permute.xlu0 %3528 }
0x1751   :  { %5894 = vmatprep.mubr.msk.f32.mxu0 %vm6761_vm5, %v6762_v19  ;;  %5924 = vmatpush3.msra.mxu0 %v5005_v29  ;;  %v3531_v45 = vpop.permute.xlu1 %3530 }
0x1752   :  { %6277 = vmatprep.subr.bf16.mxu0 %v6760_v18 }
0x1754   :  { %5895 = vmatmul.mubr.msk.f32.gmra.mrb[94].mxu0 %vm568_vm8, %v3187_v35 }
0x1755   :  { %5897 = vmatprep.mubr.msk.f32.mxu0 %vm6761_vm5, %v6762_v19 }
0x1758   :  { %5898 = vmatmul.mubr.msk.f32.gmra.mrb[96].mxu0 %vm568_vm8, %v3188_v51 }
0x1759   :  { %5900 = vmatprep.mubr.msk.f32.mxu0 %vm6761_vm5, %v6762_v19 }
0x175c   :  { %5901 = vmatmul.mubr.msk.f32.gmra.mrb[98].mxu0 %vm568_vm8, %v3189_v15 }
0x175d   :  { %5903 = vmatprep.mubr.msk.f32.mxu0 %vm6761_vm5, %v6762_v19 }
0x1760   :  { %5904 = vmatmul.mubr.msk.f32.gmra.mrb[100].mxu0 %vm568_vm8, %v3190_v10 }
0x1761   :  { %5925 = vmatprep.mubr.msk.f32.mxu0 %vm6761_vm5, %v6762_v19 }
0x17ce   :  { %v2982_v6 = vpop.f32.mrb[82].mxu0 }
0x17cf   :  { %v5843_v23 = vpop.f32.mrb[83].mxu0  ;;  %5926 = vmatmul.mubr.msk.f32.vlgmr.msra.gmra.mrb[102].mxu0 %vm457_vm6, %v2982_v6 }
0x17d0   :  { %5928 = vmatprep.mubr.msk.f32.mxu0 %vm6761_vm5, %v6762_v19 }
0x17d2   :  { %v2987_v38 = vpop.f32.mrb[84].mxu0 }
0x17d3   :  { %v5846_v47 = vpop.f32.mrb[85].mxu0  ;;  %5929 = vmatmul.mubr.msk.f32.gmra.mrb[104].mxu0 %vm457_vm6, %v2987_v38 }
0x17d4   :  { %5931 = vmatprep.mubr.msk.f32.mxu0 %vm6761_vm5, %v6762_v19 }
0x17d6   :  { %v2992_v48 = vpop.f32.mrb[86].mxu0 }
0x17d7   :  { %v5849_v52 = vpop.f32.mrb[87].mxu0  ;;  %5932 = vmatmul.mubr.msk.f32.gmra.mrb[106].mxu0 %vm457_vm6, %v2992_v48 }
0x17d8   :  { %5934 = vmatprep.mubr.msk.f32.mxu0 %vm6761_vm5, %v6762_v19 }
0x17da   :  { %v2997_v63 = vpop.f32.mrb[88].mxu0 }
0x17db   :  { %v5852_v1 = vpop.f32.mrb[89].mxu0  ;;  %5935 = vmatmul.mubr.msk.f32.gmra.mrb[108].mxu0 %vm457_vm6, %v2997_v63 }
0x17dc   :  { %5937 = vmatprep.mubr.msk.f32.mxu0 %vm6761_vm5, %v6762_v19 }
0x17de   :  { %v3002_v7 = vpop.f32.mrb[90].mxu0 }
0x17df   :  { %v5855_v12 = vpop.f32.mrb[91].mxu0  ;;  %5938 = vmatmul.mubr.msk.f32.gmra.mrb[110].mxu0 %vm457_vm6, %v3002_v7 }
0x17e0   :  { %5975 = vmatprep.mubr.msk.f32.mxu0 %vm6761_vm5, %v6762_v19 }
0x1823   :  { %v3288_v28 = vpop.f32.mrb[92].mxu0 }
0x1824   :  { %v5893_v58 = vpop.f32.mrb[93].mxu0  ;;  %5909 = vmatmul.mubr.msk.f32.vlgmr.msra.gmra.mrb[102].mxu1 %vm457_vm6, %v3288_v28 }
0x1825   :  { %6272 = vmatpush3.bf16.xpose.msk.msra.mxu1 %vm7076_vm7, %v6270_v16  ;;  %5911 = vmatprep.mubr.msk.f32.mxu1 %vm6761_vm5, %v6762_v19 }
0x1826   :  { %6273 = vmatprep.subr.bf16.mxu1 %v6760_v18 }
0x1827   :  { %v3293_v8 = vpop.f32.mrb[94].mxu0 }
0x1828   :  { %v5896_v36 = vpop.f32.mrb[95].mxu0  ;;  %5912 = vmatmul.mubr.msk.f32.gmra.mrb[104].mxu1 %vm457_vm6, %v3293_v8 }
0x1829   :  { %5914 = vmatprep.mubr.msk.f32.mxu1 %vm6761_vm5, %v6762_v19 }
0x182b   :  { %v3298_v39 = vpop.f32.mrb[96].mxu0 }
0x182c   :  { %v5899_v25 = vpop.f32.mrb[97].mxu0  ;;  %5915 = vmatmul.mubr.msk.f32.gmra.mrb[106].mxu1 %vm457_vm6, %v3298_v39 }
0x182d   :  { %6276 = vmatpush3.bf16.xpose.msk.msra.mxu1 %vm7076_vm7, %v6274_v13  ;;  %5917 = vmatprep.mubr.msk.f32.mxu1 %vm6761_vm5, %v6762_v19 }
0x182e   :  { %5948 = vmatprep.subr.mxu1 %v6762_v19 }
0x182f   :  { %v3303_v17 = vpop.f32.mrb[98].mxu0 }
0x1830   :  { %v5902_v40 = vpop.f32.mrb[99].mxu0  ;;  %5918 = vmatmul.mubr.msk.f32.gmra.mrb[108].mxu1 %vm457_vm6, %v3303_v17 }
0x1831   :  { %5920 = vmatprep.mubr.msk.f32.mxu1 %vm6761_vm5, %v6762_v19 }
0x1833   :  { %v3308_v21 = vpop.f32.mrb[100].mxu0 }
0x1834   :  { %v5905_v24 = vpop.f32.mrb[101].mxu0  ;;  %5921 = vmatmul.mubr.msk.f32.gmra.mrb[110].mxu1 %vm457_vm6, %v3308_v21 }
0x1835   :  { %5949 = vmatpush3.xpose.msk.msra.mxu1 %vm457_vm6, %v3541_v3  ;;  %5950 = vmatprep.mubr.msk.f32.mxu1 %vm6761_vm5, %v6762_v19 }
0x1836   :  { %5990 = vmatprep.subr.mxu1 %v6762_v19 }
0x1838   :  { %5951 = vmatmul.mubr.msk.f32.vlgmr.msra.gmra.mrb[112].mxu1 %vm457_vm6, %v3523_v11 }
0x1839   :  { %5953 = vmatprep.mubr.msk.f32.mxu1 %vm6761_vm5, %v6762_v19 }
0x183c   :  { %5954 = vmatmul.mubr.msk.f32.gmra.mrb[114].mxu1 %vm457_vm6, %v3525_v30 }
0x183d   :  { %5956 = vmatprep.mubr.msk.f32.mxu1 %vm6761_vm5, %v6762_v19 }
0x1840   :  { %5957 = vmatmul.mubr.msk.f32.gmra.mrb[116].mxu1 %vm457_vm6, %v3527_v43 }
0x1841   :  { %5959 = vmatprep.mubr.msk.f32.mxu1 %vm6761_vm5, %v6762_v19 }
0x1844   :  { %5960 = vmatmul.mubr.msk.f32.gmra.mrb[118].mxu1 %vm457_vm6, %v3529_v46 }
0x1845   :  { %5962 = vmatprep.mubr.msk.f32.mxu1 %vm6761_vm5, %v6762_v19 }
0x1848   :  { %5963 = vmatmul.mubr.msk.f32.gmra.mrb[120].mxu1 %vm457_vm6, %v3531_v45 }
0x1849   :  { %5992 = vmatprep.mubr.msk.f32.mxu1 %vm6761_vm5, %v6762_v19 }
0x18a2   :  { %v3498_v29 = vpop.f32.mrb[102].mxu0 }
0x18a3   :  { %v5927_v50 = vpop.f32.mrb[103].mxu0 }
0x18a6   :  { %v3503_v35 = vpop.f32.mrb[104].mxu0 }
0x18a7   :  { %v5930_v26 = vpop.f32.mrb[105].mxu0 }
0x18aa   :  { %v3508_v51 = vpop.f32.mrb[106].mxu0 }
0x18ab   :  { %v5933_v9 = vpop.f32.mrb[107].mxu0 }
0x18ae   :  { %v3513_v15 = vpop.f32.mrb[108].mxu0 }
0x18af   :  { %v5936_v54 = vpop.f32.mrb[109].mxu0 }
0x18b2   :  { %v3518_v10 = vpop.f32.mrb[110].mxu0 }
0x18b3   :  { %v5939_v32 = vpop.f32.mrb[111].mxu0 }
0x18f7   :  { %v3393_v6 = vpop.f32.mrb[102].mxu1 }
0x18f8   :  { %v8101_v23 = vadd.f32 %v3498_v29, %v3393_v6  ;;  %v5910_v38 = vpop.f32.mrb[103].mxu1 }
0x18fb   :  { %v3398_v47 = vpop.f32.mrb[104].mxu1 }
0x18fc   :  { %v8103_v48 = vadd.f32 %v3503_v35, %v3398_v47  ;;  %v5913_v52 = vpop.f32.mrb[105].mxu1 }
0x18ff   :  { %v3403_v63 = vpop.f32.mrb[106].mxu1 }
0x1900   :  { %v8105_v1 = vadd.f32 %v3508_v51, %v3403_v63  ;;  %v5916_v7 = vpop.f32.mrb[107].mxu1 }
0x1903   :  { %v3408_v12 = vpop.f32.mrb[108].mxu1 }
0x1904   :  { %v8107_v14 = vadd.f32 %v3513_v15, %v3408_v12  ;;  %v5919_v61 = vpop.f32.mrb[109].mxu1 }
0x1907   :  { %v3413_v20 = vpop.f32.mrb[110].mxu1 }
0x1908   :  { %v8109_v16 = vadd.f32 %v3518_v10, %v3413_v20  ;;  %v5922_v28 = vpop.f32.mrb[111].mxu1 }
0x190b   :  { %v3628_v27 = vpop.f32.mrb[112].mxu1 }
0x190c   :  { %v3629_v58 = vadd.f32 %v7870_v44, %v3628_v27  ;;  %v5952_v5 = vpop.f32.mrb[113].mxu1 }
0x190e   :  { %v3652_v55 = vsel %vm568_vm8, %v3629_v58, -inf }
0x190f   :  { %3653 = vmax.xlane.f32.xlu0 %v3652_v55  ;;  %v3633_v8 = vpop.f32.mrb[114].mxu1 }
0x1910   :  { %v3634_v36 = vadd.f32 %v7877_v49, %v3633_v8  ;;  %v5955_v13 = vpop.f32.mrb[115].mxu1 }
0x1912   :  { %v3655_v39 = vsel %vm568_vm8, %v3634_v36, -inf }
0x1913   :  { %3656 = vmax.xlane.f32.xlu1 %v3655_v39  ;;  %v3638_v25 = vpop.f32.mrb[116].mxu1 }
0x1914   :  { %v3639_v17 = vadd.f32 %v7884_v33, %v3638_v25  ;;  %v5958_v40 = vpop.f32.mrb[117].mxu1 }
0x1916   :  { %v3658_v3 = vsel %vm568_vm8, %v3639_v17, -inf }
0x1917   :  { %3659 = vmax.xlane.f32.xlu0 %v3658_v3  ;;  %v3643_v21 = vpop.f32.mrb[118].mxu1 }
0x1918   :  { %v3644_v24 = vadd.f32 %v7891_v42, %v3643_v21  ;;  %v5961_v11 = vpop.f32.mrb[119].mxu1 }
0x191a   :  { %v3661_v30 = vsel %vm568_vm8, %v3644_v24, -inf }
0x191b   :  { %3662 = vmax.xlane.f32.xlu0 %v3661_v30  ;;  %v3648_v43 = vpop.f32.mrb[120].mxu1 }
0x191c   :  { %v3649_v46 = vadd.f32 %v7898_v60, %v3648_v43  ;;  %v5964_v45 = vpop.f32.mrb[121].mxu1 }
0x191e   :  { %v3664_v29 = vsel %vm581_vm9, %v3649_v46, -inf }
0x191f   :  { %3665 = vmax.xlane.f32.xlu0 %v3664_v29 }
0x1935   :  { %6473 = vrot.lane.b32.xlu0 %v7782_v59, %s8530_s23 }
0x199c   :  { %v3654_v50 = vpop.xlane.xlu0 %3653 }
0x199d   :  { %v3667_v35 = vsub.f32 %v3629_v58, %v3654_v50 }
0x199f   :  { %v3672_v26 = vmul.f32 1.442695, %v3667_v35 }
0x19a0   :  { %v3657_v51 = vpop.xlane.xlu1 %3656 }
0x19a1   :  { %6662 = vpow2.f32 %v3672_v26  ;;  %v3668_v42 = vsub.f32 %v3634_v36, %v3657_v51 }
0x19a3   :  { %v3674_v9 = vmul.f32 1.442695, %v3668_v42 }
0x19a4   :  { %v3660_v15 = vpop.xlane.xlu0 %3659 }
0x19a5   :  { %6664 = vpow2.f32 %v3674_v9  ;;  %v3669_v12 = vsub.f32 %v3639_v17, %v3660_v15 }
0x19a7   :  { %v3676_v61 = vmul.f32 1.442695, %v3669_v12 }
0x19a8   :  { %v3663_v54 = vpop.xlane.xlu0 %3662 }
0x19a9   :  { %v3670_v20 = vsub.f32 %v3644_v24, %v3663_v54  ;;  %6666 = vpow2.f32 %v3676_v61 }
0x19ab   :  { %v6663_v10 = vpop.eup %6662  ;;  %v3678_v28 = vmul.f32 1.442695, %v3670_v20 }
0x19ac   :  { %v3666_v32 = vpop.xlane.xlu0 %3665  ;;  %v3682_v60 = vsel %vm568_vm8, %v6663_v10, 0.0 }
0x19ad   :  { %3683 = vadd.xlane.f32.xlu1 %v3682_v60  ;;  %v3671_v27 = vsub.f32 %v3649_v46, %v3666_v32  ;;  %6668 = vpow2.f32 %v3678_v28 }
0x19af   :  { %v6665_v6 = vpop.eup %6664  ;;  %v3680_v58 = vmul.f32 1.442695, %v3671_v27 }
0x19b0   :  { %v6474_v38 = vpop.permute.xlu0 %6473  ;;  %v3685_v47 = vsel %vm568_vm8, %v6665_v6, 0.0 }
0x19b1   :  { %v6476_v52 = vunpack.i.h.bf16 %v6474_v38  ;;  %v6475_v63 = vunpack.i.l.bf16 %v6474_v38  ;;  %3686 = vadd.xlane.f32.xlu0 %v3685_v47  ;;  %6670 = vpow2.f32 %v3680_v58 }
0x19b3   :  { %v6278_v7 = vpack.c.bf16 %v6476_v52, %v6475_v63  ;;  %v6667_v5 = vpop.eup %6666 }
0x19b4   :  { %v3688_v55 = vsel %vm568_vm8, %v6667_v5, 0.0 }
0x19b5   :  { %6279 = vmatpush3.bf16.msra.mxu0 %v6278_v7  ;;  %v5007_v7 = vld [vmem:[%s8482_s10 + $0x30] sm:$0xff] }
0x19b6   :  { %6280 = vmatprep.subr.bf16.mxu0 %v6760_v18  ;;  %5991 = vmatpush3.msra.mxu1 %v5007_v7 }
0x19b7   :  { %v6669_v8 = vpop.eup %6668  ;;  %6291 = vmatprep.subr.bf16.mxu1 %v6760_v18 }
0x19b8   :  { %v3691_v36 = vsel %vm568_vm8, %v6669_v8, 0.0 }
0x19bb   :  { %v6671_v13 = vpop.eup %6670 }
0x19be   :  { %6478 = vrot.lane.b32.xlu1 %v7792_v0, %s8530_s23 }
0x19c7   :  { %3715 = vrot.lane.b32.xlu0 %v7794_v2, %s8530_s23 }
0x19cb   :  { %6483 = vrot.lane.b32.xlu0 %v7782_v59, %s8531_s9 }
0x19cf   :  { %6488 = vrot.lane.b32.xlu0 %v7792_v0, %s8531_s9 }
0x19d3   :  { %3956 = vrot.lane.b32.xlu0 %v7794_v2, %s8531_s9 }
0x19d7   :  { %3938 = vrot.lane.b32.xlu0 %v7776_v56, %s8532_s6  ;;  %v3694_v56 = vsel %vm581_vm9, %v6671_v13, 0.0 }
0x19db   :  { %3940 = vrot.lane.b32.xlu0 %v7778_v57, %s8532_s6 }
0x19df   :  { %3942 = vrot.lane.b32.xlu0 %v7786_v53, %s8532_s6 }
0x19e2   :  { %3689 = vadd.xlane.f32.xlu1 %v3688_v55 }
0x19e6   :  { %3692 = vadd.xlane.f32.xlu1 %v3691_v36 }
0x19ea   :  { %3695 = vadd.xlane.f32.xlu1 %v3694_v56 }
0x1a3a   :  { %v3684_v39 = vpop.xlane.xlu1 %3683 }
0x1a3b   :  { %6672 = vrcp.f32 %v3684_v39 }
0x1a3e   :  { %v6479_v25 = vpop.permute.xlu1 %6478  ;;  %v3687_v57 = vpop.xlane.xlu0 %3686 }
0x1a3f   :  { %v6481_v17 = vunpack.i.h.bf16 %v6479_v25  ;;  %v6480_v40 = vunpack.i.l.bf16 %v6479_v25  ;;  %6674 = vrcp.f32 %v3687_v57 }
0x1a41   :  { %v6281_v3 = vpack.c.bf16 %v6481_v17, %v6480_v40 }
0x1a42   :  { %v3716_v53 = vpop.permute.xlu0 %3715 }
0x1a43   :  { %6282 = vmatpush3.bf16.msra.mxu0 %v6281_v3 }
0x1a44   :  { %5973 = vmatprep.subr.mxu0 %v6762_v19 }
0x1a45   :  { %v6673_v21 = vpop.eup %6672 }
0x1a46   :  { %v3702_v24 = vmul.f32 %v6673_v21, %v6663_v10  ;;  %v6484_v11 = vpop.permute.xlu0 %6483 }
0x1a47   :  { %5974 = vmatpush3.msk.msra.mxu0 %vm215_vm3, %v3716_v53  ;;  %v6486_v30 = vunpack.i.h.bf16 %v6484_v11  ;;  %v6485_v43 = vunpack.i.l.bf16 %v6484_v11 }
0x1a48   :  { %5976 = vmatmul.mubr.msk.f32.vlgmr.msra.gmra.mrb[112].mxu0 %vm568_vm8, %v3702_v24  ;;  %6283 = vmatprep.subr.bf16.mxu0 %v6760_v18 }
0x1a49   :  { %v6675_v46 = vpop.eup %6674  ;;  %5978 = vmatprep.mubr.msk.f32.mxu0 %vm6761_vm5, %v6762_v19  ;;  %v6284_v29 = vpack.c.bf16 %v6486_v30, %v6485_v43 }
0x1a4a   :  { %v3703_v45 = vmul.f32 %v6675_v46, %v6665_v6  ;;  %v6489_v50 = vpop.permute.xlu0 %6488 }
0x1a4b   :  { %v6491_v35 = vunpack.i.h.bf16 %v6489_v50  ;;  %v6490_v26 = vunpack.i.l.bf16 %v6489_v50 }
0x1a4c   :  { %5979 = vmatmul.mubr.msk.f32.gmra.mrb[114].mxu0 %vm568_vm8, %v3703_v45 }
0x1a4d   :  { %5981 = vmatprep.mubr.msk.f32.mxu0 %vm6761_vm5, %v6762_v19  ;;  %v6288_v51 = vpack.c.bf16 %v6491_v35, %v6490_v26 }
0x1a4e   :  { %6286 = vmatpush3.bf16.xpose.msk.msra.mxu0 %vm7076_vm7, %v6284_v29  ;;  %v3957_v42 = vpop.permute.xlu0 %3956 }
0x1a4f   :  { %6287 = vmatprep.subr.bf16.mxu0 %v6760_v18 }
0x1a52   :  { %v3939_v47 = vpop.permute.xlu0 %3938 }
0x1a56   :  { %6290 = vmatpush3.bf16.xpose.msk.msra.mxu0 %vm7076_vm7, %v6288_v51  ;;  %v3941_v52 = vpop.permute.xlu0 %3940 }
0x1a57   :  { %6015 = vmatprep.subr.mxu0 %v6762_v19 }
0x1a5a   :  { %v3943_v63 = vpop.permute.xlu0 %3942 }
0x1a5e   :  { %6016 = vmatpush3.xpose.msk.msra.mxu0 %vm457_vm6, %v3957_v42 }
0x1a5f   :  { %6057 = vmatprep.subr.mxu0 %v6762_v19 }
0x1a6f   :  { %v3690_v9 = vpop.xlane.xlu1 %3689 }
0x1a70   :  { %6676 = vrcp.f32 %v3690_v9 }
0x1a73   :  { %v3693_v15 = vpop.xlane.xlu1 %3692 }
0x1a74   :  { %6678 = vrcp.f32 %v3693_v15 }
0x1a77   :  { %v3696_v54 = vpop.xlane.xlu1 %3695 }
0x1a78   :  { %6680 = vrcp.f32 %v3696_v54 }
0x1a7a   :  { %v6677_v10 = vpop.eup %6676 }
0x1a7b   :  { %v3704_v32 = vmul.f32 %v6677_v10, %v6667_v5 }
0x1a7d   :  { %5982 = vmatmul.mubr.msk.f32.gmra.mrb[116].mxu0 %vm568_vm8, %v3704_v32 }
0x1a7e   :  { %v6679_v60 = vpop.eup %6678  ;;  %5984 = vmatprep.mubr.msk.f32.mxu0 %vm6761_vm5, %v6762_v19 }
0x1a7f   :  { %v3705_v22 = vmul.f32 %v6679_v60, %v6669_v8 }
0x1a81   :  { %5985 = vmatmul.mubr.msk.f32.gmra.mrb[118].mxu0 %vm568_vm8, %v3705_v22 }
0x1a82   :  { %v6681_v6 = vpop.eup %6680  ;;  %5987 = vmatprep.mubr.msk.f32.mxu0 %vm6761_vm5, %v6762_v19 }
0x1a83   :  { %v3706_v38 = vmul.f32 %v6681_v6, %v6671_v13 }
0x1a85   :  { %5988 = vmatmul.mubr.msk.f32.gmra.mrb[120].mxu0 %vm568_vm8, %v3706_v38 }
0x1a86   :  { %6017 = vmatprep.mubr.msk.f32.mxu0 %vm6761_vm5, %v6762_v19 }
0x1a89   :  { %6018 = vmatmul.mubr.msk.f32.vlgmr.msra.gmra.mrb[122].mxu0 %vm457_vm6, %v3939_v47 }
0x1a8a   :  { %6020 = vmatprep.mubr.msk.f32.mxu0 %vm6761_vm5, %v6762_v19 }
0x1a8d   :  { %6021 = vmatmul.mubr.msk.f32.gmra.mrb[124].mxu0 %vm457_vm6, %v3941_v52 }
0x1a8e   :  { %6023 = vmatprep.mubr.msk.f32.mxu0 %vm6761_vm5, %v6762_v19 }
0x1a91   :  { %6024 = vmatmul.mubr.msk.f32.gmra.mrb[126].mxu0 %vm457_vm6, %v3943_v63 }
0x1a92   :  { %6026 = vmatprep.mubr.msk.f32.mxu0 %vm6761_vm5, %v6762_v19 }
0x1b1b   :  { %v3804_v12 = vpop.f32.mrb[112].mxu0 }
0x1b1c   :  { %v5977_v61 = vpop.f32.mrb[113].mxu0  ;;  %5993 = vmatmul.mubr.msk.f32.vlgmr.msra.gmra.mrb[122].mxu1 %vm457_vm6, %v3804_v12 }
0x1b1d   :  { %5995 = vmatprep.mubr.msk.f32.mxu1 %vm6761_vm5, %v6762_v19 }
0x1b1f   :  { %v3809_v20 = vpop.f32.mrb[114].mxu0 }
0x1b20   :  { %v5980_v28 = vpop.f32.mrb[115].mxu0  ;;  %5996 = vmatmul.mubr.msk.f32.gmra.mrb[124].mxu1 %vm457_vm6, %v3809_v20 }
0x1b21   :  { %5998 = vmatprep.mubr.msk.f32.mxu1 %vm6761_vm5, %v6762_v19 }
0x1b50   :  { %v3814_v27 = vpop.f32.mrb[116].mxu0 }
0x1b51   :  { %v5983_v58 = vpop.f32.mrb[117].mxu0  ;;  %5999 = vmatmul.mubr.msk.f32.gmra.mrb[126].mxu1 %vm457_vm6, %v3814_v27 }
0x1b52   :  { %6001 = vmatprep.mubr.msk.f32.mxu1 %vm6761_vm5, %v6762_v19 }
0x1b54   :  { %v3819_v5 = vpop.f32.mrb[118].mxu0 }
0x1b55   :  { %v5986_v55 = vpop.f32.mrb[119].mxu0  ;;  %6002 = vmatmul.mubr.msk.f32.gmra.mrb[128].mxu1 %vm457_vm6, %v3819_v5 }
0x1b56   :  { %6004 = vmatprep.mubr.msk.f32.mxu1 %vm6761_vm5, %v6762_v19 }
0x1b58   :  { %v3824_v8 = vpop.f32.mrb[120].mxu0 }
0x1b59   :  { %v5989_v36 = vpop.f32.mrb[121].mxu0  ;;  %6005 = vmatmul.mubr.msk.f32.gmra.mrb[130].mxu1 %vm457_vm6, %v3824_v8 }
0x1b5a   :  { %6042 = vmatprep.mubr.msk.f32.mxu1 %vm6761_vm5, %v6762_v19  ;;  %v5008_v36 = vld [vmem:[%s8482_s10 + $0x38] sm:$0xff] }
0x1b5b   :  { %6058 = vmatpush3.msra.mxu0 %v5008_v36 }
0x1b5c   :  { %v4044_v13 = vpop.f32.mrb[122].mxu0  ;;  %6303 = vmatprep.subr.bf16.mxu0 %v6760_v18 }
0x1b5d   :  { %v4045_v56 = vadd.f32 %v7870_v44, %v4044_v13  ;;  %v6019_v39 = vpop.f32.mrb[123].mxu0 }
0x1b5f   :  { %v4068_v25 = vsel %vm568_vm8, %v4045_v56, -inf }
0x1b60   :  { %4069 = vmax.xlane.f32.xlu0 %v4068_v25  ;;  %v4049_v57 = vpop.f32.mrb[124].mxu0 }
0x1b61   :  { %v4050_v17 = vadd.f32 %v7877_v49, %v4049_v57  ;;  %v6022_v40 = vpop.f32.mrb[125].mxu0 }
0x1b63   :  { %v4071_v3 = vsel %vm568_vm8, %v4050_v17, -inf }
0x1b64   :  { %4072 = vmax.xlane.f32.xlu1 %v4071_v3  ;;  %v4054_v53 = vpop.f32.mrb[126].mxu0  ;;  %v6734_v3 = vld [vmem:[%s8527_s26 + $0x18] sm:$0xff] }
0x1b65   :  { %v4055_v21 = vadd.f32 %v7884_v33, %v4054_v53  ;;  %v6025_v24 = vpop.f32.mrb[127].mxu0 }
0x1b67   :  { %v4074_v11 = vsel %vm568_vm8, %v4055_v21, -inf }
0x1b68   :  { %4075 = vmax.xlane.f32.xlu1 %v4074_v11 }
0x1b76   :  { %6498 = vrot.lane.b32.xlu0 %v7792_v0, %s8533_s4 }
0x1b79   :  { %6493 = vrot.lane.b32.xlu1 %v7782_v59, %s8533_s4 }
0x1b7d   :  { %4131 = vrot.lane.b32.xlu1 %v7794_v2, %s8533_s4 }
0x1b81   :  { %3944 = vrot.lane.b32.xlu1 %v7788_v62, %s8532_s6 }
0x1bed   :  { %v4070_v44 = vpop.xlane.xlu0 %4069 }
0x1bee   :  { %v4083_v49 = vsub.f32 %v4045_v56, %v4070_v44 }
0x1bef   :  { %v3909_v30 = vpop.f32.mrb[122].mxu1 }
0x1bf0   :  { %v4088_v33 = vmul.f32 1.442695, %v4083_v49  ;;  %v8214_v43 = vadd.f32 %v3909_v30, %v8101_v23  ;;  %v5994_v46 = vpop.f32.mrb[123].mxu1 }
0x1bf1   :  { %v4073_v45 = vpop.xlane.xlu1 %4072  ;;  %v6499_v9 = vpop.permute.xlu0 %6498 }
0x1bf2   :  { %6682 = vpow2.f32 %v4088_v33  ;;  %v4084_v0 = vsub.f32 %v4050_v17, %v4073_v45  ;;  %v6501_v32 = vunpack.i.h.bf16 %v6499_v9  ;;  %v6500_v60 = vunpack.i.l.bf16 %v6499_v9  ;;  %v6735_v33 = vld [vmem:[%s8527_s26 + $0x20] sm:$0x3] }
0x1bf3   :  { %v3914_v29 = vpop.f32.mrb[124].mxu1 }
0x1bf4   :  { %v4090_v50 = vmul.f32 1.442695, %v4084_v0  ;;  %v8217_v59 = vadd.f32 %v3914_v29, %v8103_v48  ;;  %v5997_v35 = vpop.f32.mrb[125].mxu1  ;;  %v6295_v38 = vpack.c.bf16 %v6501_v32, %v6500_v60 }
0x1bf5   :  { %v4076_v26 = vpop.xlane.xlu1 %4075 }
0x1bf6   :  { %6684 = vpow2.f32 %v4090_v50  ;;  %v4085_v62 = vsub.f32 %v4055_v21, %v4076_v26 }
0x1bf8   :  { %v4092_v51 = vmul.f32 1.442695, %v4085_v62 }
0x1bf9   :  { %v6494_v42 = vpop.permute.xlu1 %6493 }
0x1bfa   :  { %6686 = vpow2.f32 %v4092_v51  ;;  %v6496_v15 = vunpack.i.h.bf16 %v6494_v42  ;;  %v6495_v23 = vunpack.i.l.bf16 %v6494_v42 }
0x1bfc   :  { %v6683_v54 = vpop.eup %6682  ;;  %v6292_v10 = vpack.c.bf16 %v6496_v15, %v6495_v23 }
0x1bfd   :  { %v4132_v22 = vpop.permute.xlu1 %4131  ;;  %v4098_v6 = vsel %vm568_vm8, %v6683_v54, 0.0 }
0x1bfe   :  { %4099 = vadd.xlane.f32.xlu1 %v4098_v6  ;;  %6293 = vmatpush3.bf16.msra.mxu1 %v6292_v10 }
0x1bff   :  { %6294 = vmatprep.subr.bf16.mxu1 %v6760_v18 }
0x1c00   :  { %v6685_v48 = vpop.eup %6684 }
0x1c01   :  { %v3945_v47 = vpop.permute.xlu1 %3944  ;;  %v4101_v52 = vsel %vm568_vm8, %v6685_v48, 0.0 }
0x1c02   :  { %4102 = vadd.xlane.f32.xlu1 %v4101_v52  ;;  %6027 = vmatmul.mubr.msk.f32.gmra.mrb[128].mxu0 %vm457_vm6, %v3945_v47  ;;  %v8282_v52 = vld [vmem:[%s8483_s11 + $0x1] ss:$0 sm:$0xff] }
0x1c03   :  { %6296 = vmatpush3.bf16.msra.mxu1 %v6295_v38  ;;  %6029 = vmatprep.mubr.msk.f32.mxu0 %vm6761_vm5, %v6762_v19 }
0x1c04   :  { %v6687_v63 = vpop.eup %6686  ;;  %6040 = vmatprep.subr.mxu1 %v6762_v19 }
0x1c05   :  { %v4104_v7 = vsel %vm568_vm8, %v6687_v63, 0.0 }
0x1c06   :  { %4105 = vadd.xlane.f32.xlu1 %v4104_v7 }
0x1c07   :  { %6041 = vmatpush3.msk.msra.mxu1 %vm215_vm3, %v4132_v22 }
0x1c08   :  { %6297 = vmatprep.subr.bf16.mxu1 %v6760_v18 }
0x1c17   :  { %3946 = vrot.lane.b32.xlu1 %v7794_v2, %s8532_s6 }
0x1c24   :  { %v3919_v12 = vpop.f32.mrb[126].mxu1 }
0x1c25   :  { %v8232_v61 = vadd.f32 %v3919_v12, %v8105_v1  ;;  %v6000_v20 = vpop.f32.mrb[127].mxu1 }
0x1c28   :  { %v3924_v28 = vpop.f32.mrb[128].mxu1 }
0x1c29   :  { %v8235_v27 = vadd.f32 %v3924_v28, %v8107_v14  ;;  %v6003_v58 = vpop.f32.mrb[129].mxu1 }
0x1c2c   :  { %v3929_v5 = vpop.f32.mrb[130].mxu1 }
0x1c2d   :  { %v8238_v55 = vadd.f32 %v3929_v5, %v8109_v16  ;;  %v6006_v8 = vpop.f32.mrb[131].mxu1 }
0x1c8b   :  { %v4100_v2 = vpop.xlane.xlu1 %4099 }
0x1c8c   :  { %6688 = vrcp.f32 %v4100_v2 }
0x1c8f   :  { %v4103_v1 = vpop.xlane.xlu1 %4102 }
0x1c90   :  { %6690 = vrcp.f32 %v4103_v1 }
0x1c93   :  { %v4106_v13 = vpop.xlane.xlu1 %4105 }
0x1c94   :  { %6692 = vrcp.f32 %v4106_v13 }
0x1c96   :  { %v6689_v14 = vpop.eup %6688 }
0x1c97   :  { %v4118_v56 = vmul.f32 %v6689_v14, %v6683_v54  ;;  %v3947_v39 = vpop.permute.xlu1 %3946 }
0x1c98   :  { %6030 = vmatmul.mubr.msk.f32.gmra.mrb[130].mxu0 %vm457_vm6, %v3947_v39 }
0x1c99   :  { %6043 = vmatmul.mubr.msk.f32.vlgmr.msra.gmra.mrb[132].mxu1 %vm568_vm8, %v4118_v56  ;;  %6059 = vmatprep.mubr.msk.f32.mxu0 %vm6761_vm5, %v6762_v19 }
0x1c9a   :  { %v6691_v16 = vpop.eup %6690  ;;  %6045 = vmatprep.mubr.msk.f32.mxu1 %vm6761_vm5, %v6762_v19 }
0x1c9b   :  { %v4119_v25 = vmul.f32 %v6691_v16, %v6685_v48 }
0x1c9d   :  { %6046 = vmatmul.mubr.msk.f32.gmra.mrb[134].mxu1 %vm568_vm8, %v4119_v25 }
0x1c9e   :  { %v6693_v57 = vpop.eup %6692  ;;  %6048 = vmatprep.mubr.msk.f32.mxu1 %vm6761_vm5, %v6762_v19 }
0x1c9f   :  { %v4120_v17 = vmul.f32 %v6693_v57, %v6687_v63 }
0x1ca1   :  { %6049 = vmatmul.mubr.msk.f32.gmra.mrb[136].mxu1 %vm568_vm8, %v4120_v17 }
0x1ca2   :  { %6051 = vmatprep.mubr.msk.f32.mxu1 %vm6761_vm5, %v6762_v19 }
0x1cd5   :  { %v4059_v40 = vpop.f32.mrb[128].mxu0 }
0x1cd6   :  { %v4060_v53 = vadd.f32 %v6734_v3, %v4059_v40  ;;  %v6028_v21 = vpop.f32.mrb[129].mxu0 }
0x1cd8   :  { %v4077_v24 = vsel %vm568_vm8, %v4060_v53, -inf }
0x1cd9   :  { %4078 = vmax.xlane.f32.xlu0 %v4077_v24 }
0x1d66   :  { %v4079_v11 = vpop.xlane.xlu0 %4078 }
0x1d67   :  { %v4086_v44 = vsub.f32 %v4060_v53, %v4079_v11 }
0x1d69   :  { %v4094_v49 = vmul.f32 1.442695, %v4086_v44 }
0x1d6b   :  { %6694 = vpow2.f32 %v4094_v49  ;;  %v4064_v30 = vpop.f32.mrb[130].mxu0 }
0x1d6c   :  { %v4065_v46 = vadd.f32 %v6735_v33, %v4064_v30  ;;  %v6031_v45 = vpop.f32.mrb[131].mxu0  ;;  %v4220_v0 = vpop.f32.mrb[132].mxu1 }
0x1d6d   :  { %v6044_v29 = vpop.f32.mrb[133].mxu1  ;;  %6060 = vmatmul.mubr.msk.f32.vlgmr.msra.gmra.mrb[132].mxu0 %vm457_vm6, %v4220_v0  ;;  %v5100_v45 = vld [vmem:[%s8486_s14 + $0x28] sm:$0xff] }
0x1d6e   :  { %v4080_v50 = vsel %vm581_vm9, %v4065_v46, -inf  ;;  %6062 = vmatprep.mubr.msk.f32.mxu0 %vm6761_vm5, %v6762_v19  ;;  %v5101_v29 = vld [vmem:[%s8486_s14 + $0x30] sm:$0xff] }
0x1d6f   :  { %4081 = vmax.xlane.f32.xlu1 %v4080_v50  ;;  %v5102_v50 = vld [vmem:[%s8486_s14 + $0x38] sm:$0xff] }
0x1d70   :  { %v4225_v35 = vpop.f32.mrb[134].mxu1 }
0x1d71   :  { %v6047_v26 = vpop.f32.mrb[135].mxu1  ;;  %6063 = vmatmul.mubr.msk.f32.gmra.mrb[134].mxu0 %vm457_vm6, %v4225_v35  ;;  %v6301_v35 = vpack.c.bf16 %v5102_v50, %v5101_v29 }
0x1d72   :  { %6065 = vmatprep.mubr.msk.f32.mxu0 %vm6761_vm5, %v6762_v19 }
0x1d74   :  { %v4230_v62 = vpop.f32.mrb[136].mxu1 }
0x1d75   :  { %v6695_v51 = vpop.eup %6694  ;;  %v6050_v42 = vpop.f32.mrb[137].mxu1  ;;  %6066 = vmatmul.mubr.msk.f32.gmra.mrb[136].mxu0 %vm457_vm6, %v4230_v62 }
0x1d76   :  { %v4107_v9 = vsel %vm568_vm8, %v6695_v51, 0.0  ;;  %6068 = vmatprep.mubr.msk.f32.mxu0 %vm6761_vm5, %v6762_v19 }
0x1d77   :  { %4108 = vadd.xlane.f32.xlu0 %v4107_v9 }
0x1dfc   :  { %v4082_v15 = vpop.xlane.xlu1 %4081 }
0x1dfd   :  { %v4087_v23 = vsub.f32 %v4065_v46, %v4082_v15  ;;  %v5099_v46 = vld [vmem:[%s8486_s14 + $0x20] sm:$0xff] }
0x1dfe   :  { %v6298_v0 = vpack.c.bf16 %v5100_v45, %v5099_v46 }
0x1dff   :  { %v4096_v54 = vmul.f32 1.442695, %v4087_v23 }
0x1e00   :  { %6299 = vmatpush3.bf16.msra.mxu1 %v6298_v0 }
0x1e01   :  { %6696 = vpow2.f32 %v4096_v54  ;;  %6300 = vmatprep.subr.bf16.mxu1 %v6760_v18 }
0x1e04   :  { %v4109_v10 = vpop.xlane.xlu0 %4108  ;;  %6302 = vmatpush3.bf16.msra.mxu1 %v6301_v35 }
0x1e05   :  { %6698 = vrcp.f32 %v4109_v10  ;;  %6315 = vmatprep.subr.bf16.mxu1 %v6760_v18 }
0x1e0b   :  { %v6697_v32 = vpop.eup %6696 }
0x1e0c   :  { %v4110_v60 = vsel %vm581_vm9, %v6697_v32, 0.0 }
0x1e0d   :  { %4111 = vadd.xlane.f32.xlu0 %v4110_v60  ;;  %v8329_v60 = vld [vmem:[%s8484_s12 + $0x1] ss:$0 sm:$0xff] }
0x1e0f   :  { %v6699_v22 = vpop.eup %6698 }
0x1e10   :  { %v4121_v6 = vmul.f32 %v6699_v22, %v6695_v51 }
0x1e12   :  { %6052 = vmatmul.mubr.msk.f32.gmra.mrb[138].mxu1 %vm568_vm8, %v4121_v6  ;;  %v8334_v6 = vld [vmem:[%s8485_s13 + $0x1] ss:$0 sm:$0xff] }
0x1e13   :  { %6054 = vmatprep.mubr.msk.f32.mxu1 %vm6761_vm5, %v6762_v19 }
0x1e40   :  { %v4325_v48 = vpop.f32.mrb[132].mxu0 }
0x1e41   :  { %v4349_v38 = vadd.f32 %v4325_v48, %v8214_v43  ;;  %v6061_v47 = vpop.f32.mrb[133].mxu0 }
0x1e43   :  { %v4354_v63 = vadd.f32 %v4349_v38, %v7704_v34 }
0x1e44   :  { %v4330_v7 = vpop.f32.mrb[134].mxu0 }
0x1e45   :  { %v8286_v12 = vadd.f32 %v8282_v52, %v4354_v63  ;;  %v4350_v20 = vadd.f32 %v4330_v7, %v8217_v59  ;;  %v6064_v28 = vpop.f32.mrb[135].mxu0 }
0x1e47   :  { %v4355_v58 = vadd.f32 %v4350_v20, %v7709_v37  ;;  %v4376_v43 = vsel %vm232_vm2, %v8286_v12, 0.0 }
0x1e48   :  { %4377 = vadd.xlane.f32.xlu0 %v4376_v43  ;;  %v4335_v5 = vpop.f32.mrb[136].mxu0 }
0x1e49   :  { %v4351_v8 = vadd.f32 %v4335_v5, %v8232_v61  ;;  %v6067_v36 = vpop.f32.mrb[137].mxu0  ;;  %v4368_v2 = vadd.f32 %v8282_v52, %v4355_v58 }
0x1e4b   :  { %v4356_v34 = vadd.f32 %v4351_v8, %v7714_v4  ;;  %v4379_v1 = vsel %vm232_vm2, %v4368_v2, 0.0 }
0x1e4c   :  { %4380 = vadd.xlane.f32.xlu1 %v4379_v1 }
0x1e4d   :  { %v8297_v59 = vadd.f32 %v8282_v52, %v4356_v34 }
0x1e4f   :  { %v4382_v37 = vsel %vm232_vm2, %v8297_v59, 0.0 }
0x1e50   :  { %4383 = vadd.xlane.f32.xlu0 %v4382_v37 }
0x1e9a   :  { %v4112_v13 = vpop.xlane.xlu0 %4111 }
0x1e9b   :  { %6700 = vrcp.f32 %v4112_v13 }
0x1ea5   :  { %v6701_v14 = vpop.eup %6700 }
0x1ea6   :  { %v4122_v56 = vmul.f32 %v6701_v14, %v6697_v32 }
0x1ea8   :  { %6055 = vmatmul.mubr.msk.f32.gmra.mrb[140].mxu1 %vm568_vm8, %v4122_v56  ;;  %v5110_v56 = vld [vmem:[%s8488_s16 + $0x40] sm:$0xff] }
0x1ea9   :  { %6082 = vmatprep.mubr.msk.f32.mxu1 %vm6761_vm5, %v6762_v19 }
0x1ed5   :  { %v4378_v4 = vpop.xlane.xlu0 %4377 }
0x1ed6   :  { %v4391_v61 = vmul.f32 0.03125, %v4378_v4  ;;  %v5111_v4 = vld [vmem:[%s8488_s16 + $0x48] sm:$0xff] }
0x1ed8   :  { %v4396_v39 = vsub.f32 %v8286_v12, %v4391_v61  ;;  %v6304_v61 = vpack.c.bf16 %v5111_v4, %v5110_v56 }
0x1ed9   :  { %v4381_v16 = vpop.xlane.xlu1 %4380 }
0x1eda   :  { %v4392_v25 = vmul.f32 0.03125, %v4381_v16  ;;  %v4401_v57 = vmul.f32 %v4396_v39, %v4396_v39  ;;  %6305 = vmatpush3.bf16.msra.mxu0 %v6304_v61  ;;  %v5114_v16 = vld [vmem:[%s8488_s16 + $0x60] sm:$0xff] }
0x1edb   :  { %6306 = vmatprep.subr.bf16.mxu0 %v6760_v18 }
0x1edc   :  { %v4397_v17 = vsub.f32 %v4368_v2, %v4392_v25  ;;  %v4406_v40 = vsel %vm232_vm2, %v4401_v57, 0.0  ;;  %v5115_v25 = vld [vmem:[%s8488_s16 + $0x68] sm:$0xff] }
0x1edd   :  { %4407 = vadd.xlane.f32.xlu1 %v4406_v40  ;;  %v4384_v3 = vpop.xlane.xlu0 %4383  ;;  %v6310_v57 = vpack.c.bf16 %v5115_v25, %v5114_v16  ;;  %v5117_v40 = vld [vmem:[%s8488_s16 + $0x78] sm:$0xff] }
0x1ede   :  { %v4393_v53 = vmul.f32 0.03125, %v4384_v3  ;;  %v4402_v21 = vmul.f32 %v4397_v17, %v4397_v17 }
0x1ee0   :  { %v4398_v24 = vsub.f32 %v8297_v59, %v4393_v53  ;;  %v4409_v11 = vsel %vm232_vm2, %v4402_v21, 0.0 }
0x1ee1   :  { %4410 = vadd.xlane.f32.xlu0 %v4409_v11 }
0x1ee2   :  { %v4403_v44 = vmul.f32 %v4398_v24, %v4398_v24 }
0x1ee4   :  { %v4412_v49 = vsel %vm232_vm2, %v4403_v44, 0.0 }
0x1ee5   :  { %4413 = vadd.xlane.f32.xlu1 %v4412_v49  ;;  %v4235_v30 = vpop.f32.mrb[138].mxu1 }
0x1ee6   :  { %v6053_v33 = vpop.f32.mrb[139].mxu1  ;;  %6069 = vmatmul.mubr.msk.f32.gmra.mrb[138].mxu0 %vm457_vm6, %v4235_v30  ;;  %v8391_v30 = vld [vmem:[%s8487_s15 + $0x1] ss:$0 sm:$0xff] }
0x1ee7   :  { %6071 = vmatprep.mubr.msk.f32.mxu0 %vm6761_vm5, %v6762_v19 }
0x1f6a   :  { %v4408_v26 = vpop.xlane.xlu1 %4407 }
0x1f6b   :  { %v4421_v62 = vmul.f32 0.03125, %v4408_v26 }
0x1f6d   :  { %v4426_v51 = vadd.f32 1e-12, %v4421_v62 }
0x1f6e   :  { %v4411_v42 = vpop.xlane.xlu0 %4410 }
0x1f6f   :  { %6702 = vrsqrt.f32 %v4426_v51  ;;  %v4422_v9 = vmul.f32 0.03125, %v4411_v42 }
0x1f71   :  { %v4427_v15 = vadd.f32 1e-12, %v4422_v9 }
0x1f72   :  { %v4414_v23 = vpop.xlane.xlu1 %4413 }
0x1f73   :  { %6704 = vrsqrt.f32 %v4427_v15  ;;  %v4423_v54 = vmul.f32 0.03125, %v4414_v23 }
0x1f75   :  { %v4428_v10 = vadd.f32 1e-12, %v4423_v54 }
0x1f77   :  { %6706 = vrsqrt.f32 %v4428_v10 }
0x1f79   :  { %v6703_v32 = vpop.eup %6702 }
0x1f7a   :  { %v4436_v22 = vmul.f32 %v6703_v32, %v4396_v39 }
0x1f7b   :  { %v4240_v48 = vpop.f32.mrb[140].mxu1 }
0x1f7c   :  { %v4447_v38 = vmul.f32 %v8329_v60, %v4436_v22  ;;  %v6056_v47 = vpop.f32.mrb[141].mxu1  ;;  %6072 = vmatmul.mubr.msk.f32.gmra.mrb[140].mxu0 %vm457_vm6, %v4240_v48 }
0x1f7d   :  { %v6705_v63 = vpop.eup %6704  ;;  %6113 = vmatprep.mubr.msk.f32.mxu0 %vm6761_vm5, %v6762_v19 }
0x1f7e   :  { %v4458_v7 = vadd.f32 %v8334_v6, %v4447_v38  ;;  %v4437_v20 = vmul.f32 %v6705_v63, %v4397_v17  ;;  %v5116_v17 = vld [vmem:[%s8488_s16 + $0x70] sm:$0xff] }
0x1f7f   :  { %v6313_v3 = vpack.c.bf16 %v5117_v40, %v5116_v17 }
0x1f80   :  { %6083 = vmatmul.mubr.msk.f32.vlgmr.msra.gmra.mrb[142].mxu1 %vm232_vm2, %v4458_v7  ;;  %v4448_v28 = vmul.f32 %v8329_v60, %v4437_v20 }
0x1f81   :  { %v6707_v58 = vpop.eup %6706  ;;  %6085 = vmatprep.mubr.msk.f32.mxu1 %vm6761_vm5, %v6762_v19 }
0x1f82   :  { %v4459_v43 = vadd.f32 %v8334_v6, %v4448_v28  ;;  %v4438_v5 = vmul.f32 %v6707_v58, %v4398_v24 }
0x1f84   :  { %6086 = vmatmul.mubr.msk.f32.gmra.mrb[144].mxu1 %vm232_vm2, %v4459_v43  ;;  %v4449_v8 = vmul.f32 %v8329_v60, %v4438_v5 }
0x1f85   :  { %6088 = vmatprep.mubr.msk.f32.mxu1 %vm6761_vm5, %v6762_v19 }
0x1f86   :  { %v4460_v36 = vadd.f32 %v8334_v6, %v4449_v8 }
0x1f88   :  { %6089 = vmatmul.mubr.msk.f32.gmra.mrb[146].mxu1 %vm232_vm2, %v4460_v36 }
0x1f89   :  { %6091 = vmatprep.mubr.msk.f32.mxu1 %vm6761_vm5, %v6762_v19 }
0x1fb9   :  { %v4340_v2 = vpop.f32.mrb[138].mxu0 }
0x1fba   :  { %v4352_v34 = vadd.f32 %v4340_v2, %v8235_v27  ;;  %v6070_v1 = vpop.f32.mrb[139].mxu0  ;;  %v5113_v27 = vld [vmem:[%s8488_s16 + $0x58] sm:$0xff] }
0x1fbc   :  { %v4357_v37 = vadd.f32 %v4352_v34, %v7719_v41  ;;  %v5112_v41 = vld [vmem:[%s8488_s16 + $0x50] sm:$0xff] }
0x1fbd   :  { %v6307_v39 = vpack.c.bf16 %v5113_v27, %v5112_v41 }
0x1fbe   :  { %v4370_v13 = vadd.f32 %v8282_v52, %v4357_v37 }
0x1fbf   :  { %6308 = vmatpush3.bf16.msra.mxu0 %v6307_v39 }
0x1fc0   :  { %v4385_v14 = vsel %vm232_vm2, %v4370_v13, 0.0  ;;  %6309 = vmatprep.subr.bf16.mxu0 %v6760_v18 }
0x1fc1   :  { %4386 = vadd.xlane.f32.xlu0 %v4385_v14 }
0x1fc3   :  { %6311 = vmatpush3.bf16.msra.mxu0 %v6310_v57 }
0x1fc4   :  { %6312 = vmatprep.subr.bf16.mxu0 %v6760_v18 }
0x1fc7   :  { %6314 = vmatpush3.bf16.msra.mxu0 %v6313_v3 }
0x204e   :  { %v4387_v53 = vpop.xlane.xlu0 %4386 }
0x204f   :  { %v4394_v21 = vmul.f32 0.03125, %v4387_v53  ;;  %v4345_v24 = vpop.f32.mrb[140].mxu0 }
0x2050   :  { %v4353_v11 = vadd.f32 %v4345_v24, %v8238_v55  ;;  %v6073_v44 = vpop.f32.mrb[141].mxu0 }
0x2051   :  { %v8386_v49 = vsub.f32 %v4370_v13, %v4394_v21 }
0x2052   :  { %v4358_v33 = vadd.f32 %v4353_v11, %v7724_v31 }
0x2053   :  { %v4557_v46 = vpop.f32.mrb[142].mxu1  ;;  %v4404_v45 = vmul.f32 %v8386_v49, %v8386_v49 }
0x2054   :  { %v4558_v0 = vadd.f32 %v8391_v30, %v4557_v46  ;;  %v6084_v29 = vpop.f32.mrb[143].mxu1  ;;  %v4371_v50 = vadd.f32 %v8282_v52, %v4358_v33 }
0x2055   :  { %v4415_v55 = vsel %vm232_vm2, %v4404_v45, 0.0  ;;  %v5124_v45 = vld [vmem:[%s8489_s17 + $0x1] ss:$0 sm:$0xff] }
0x2056   :  { %v4581_v35 = vmul.f32 %v4558_v0, %v4558_v0  ;;  %4416 = vadd.xlane.f32.xlu0 %v4415_v55  ;;  %v4388_v26 = vsel %vm245_vm4, %v4371_v50, 0.0 }
0x2057   :  { %4389 = vadd.xlane.f32.xlu1 %v4388_v26  ;;  %v4562_v62 = vpop.f32.mrb[144].mxu1 }
0x2058   :  { %v4586_v51 = vmul.f32 %v4581_v35, %v4558_v0  ;;  %v4563_v31 = vadd.f32 %v8391_v30, %v4562_v62  ;;  %v6087_v42 = vpop.f32.mrb[145].mxu1 }
0x205a   :  { %v4591_v9 = vmul.f32 0.044715, %v4586_v51  ;;  %v4582_v15 = vmul.f32 %v4563_v31, %v4563_v31 }
0x205b   :  { %v4567_v23 = vpop.f32.mrb[146].mxu1 }
0x205c   :  { %v4596_v54 = vadd.f32 %v4591_v9, %v4558_v0  ;;  %v4587_v10 = vmul.f32 %v4582_v15, %v4563_v31  ;;  %v4568_v32 = vadd.f32 %v8391_v30, %v4567_v23  ;;  %v6090_v52 = vpop.f32.mrb[147].mxu1 }
0x205e   :  { %v4601_v22 = vmul.f32 0.7978846, %v4596_v54  ;;  %v4592_v48 = vmul.f32 0.044715, %v4587_v10  ;;  %v4583_v38 = vmul.f32 %v4568_v32, %v4568_v32 }
0x2060   :  { %6708 = vtanh.f32 %v4601_v22  ;;  %v4597_v47 = vadd.f32 %v4592_v48, %v4563_v31  ;;  %v4588_v63 = vmul.f32 %v4583_v38, %v4568_v32 }
0x2062   :  { %v4602_v7 = vmul.f32 0.7978846, %v4597_v47  ;;  %v4593_v20 = vmul.f32 0.044715, %v4588_v63 }
0x2064   :  { %6710 = vtanh.f32 %v4602_v7  ;;  %v4598_v28 = vadd.f32 %v4593_v20, %v4568_v32 }
0x2066   :  { %v4603_v58 = vmul.f32 0.7978846, %v4598_v28 }
0x2068   :  { %6712 = vtanh.f32 %v4603_v58 }
0x206a   :  { %v6709_v43 = vpop.eup %6708 }
0x206b   :  { %v4611_v5 = vadd.f32 1.0, %v6709_v43  ;;  %v4779_v43 = vld [vmem:[%s8492_s20] sm:$0xff] }
0x206d   :  { %v4616_v8 = vmul.f32 0.5, %v4611_v5  ;;  %v4780_v5 = vld [vmem:[%s8492_s20 + $0x8] sm:$0xff] }
0x206e   :  { %v6711_v36 = vpop.eup %6710 }
0x206f   :  { %v4621_v2 = vmul.f32 %v4616_v8, %v4558_v0  ;;  %v4612_v34 = vadd.f32 1.0, %v6711_v36  ;;  %v6316_v8 = vpack.c.bf16 %v4780_v5, %v4779_v43  ;;  %v4781_v36 = vld [vmem:[%s8492_s20 + $0x10] sm:$0xff] }
0x2071   :  { %6114 = vmatmul.mubr.msk.f32.vlgmr.msra.gmra.mrb[142].mxu0 %vm91_vm0, %v4621_v2  ;;  %v4617_v1 = vmul.f32 0.5, %v4612_v34  ;;  %6317 = vmatpush3.bf16.msra.mxu1 %v6316_v8 }
0x2072   :  { %v6713_v37 = vpop.eup %6712  ;;  %6116 = vmatprep.mubr.msk.f32.mxu0 %vm6761_vm5, %v6762_v19  ;;  %6318 = vmatprep.subr.bf16.mxu1 %v6760_v18 }
0x2073   :  { %v4622_v13 = vmul.f32 %v4617_v1, %v4563_v31  ;;  %v4613_v14 = vadd.f32 1.0, %v6713_v37 }
0x2075   :  { %6117 = vmatmul.mubr.msk.f32.gmra.mrb[144].mxu0 %vm91_vm0, %v4622_v13  ;;  %v4618_v56 = vmul.f32 0.5, %v4613_v14 }
0x2076   :  { %6119 = vmatprep.mubr.msk.f32.mxu0 %vm6761_vm5, %v6762_v19 }
0x2077   :  { %v4623_v4 = vmul.f32 %v4618_v56, %v4568_v32 }
0x2079   :  { %6120 = vmatmul.mubr.msk.f32.gmra.mrb[146].mxu0 %vm91_vm0, %v4623_v4 }
0x207a   :  { %6122 = vmatprep.mubr.msk.f32.mxu0 %vm6761_vm5, %v6762_v19 }
0x20e3   :  { %v4417_v61 = vpop.xlane.xlu0 %4416 }
0x20e4   :  { %v4424_v41 = vmul.f32 0.03125, %v4417_v61  ;;  %v4390_v27 = vpop.xlane.xlu1 %4389 }
0x20e5   :  { %v4395_v39 = vmul.f32 0.03125, %v4390_v27 }
0x20e6   :  { %v4429_v16 = vadd.f32 1e-12, %v4424_v41 }
0x20e7   :  { %v4400_v25 = vsub.f32 %v4371_v50, %v4395_v39 }
0x20e8   :  { %6714 = vrsqrt.f32 %v4429_v16 }
0x20e9   :  { %v4405_v57 = vmul.f32 %v4400_v25, %v4400_v25 }
0x20eb   :  { %v4418_v17 = vsel %vm245_vm4, %v4405_v57, 0.0 }
0x20ec   :  { %4419 = vadd.xlane.f32.xlu1 %v4418_v17 }
0x20f2   :  { %v6715_v40 = vpop.eup %6714 }
0x20f3   :  { %v4439_v3 = vmul.f32 %v6715_v40, %v8386_v49 }
0x20f5   :  { %v4450_v53 = vmul.f32 %v8329_v60, %v4439_v3  ;;  %v5126_v3 = vld [vmem:[%s8491_s19] ss:$0 sm:$0xff] }
0x20f7   :  { %v4461_v21 = vadd.f32 %v8334_v6, %v4450_v53 }
0x20f9   :  { %6092 = vmatmul.mubr.msk.f32.gmra.mrb[148].mxu1 %vm232_vm2, %v4461_v21 }
0x20fa   :  { %6094 = vmatprep.mubr.msk.f32.mxu1 %vm6761_vm5, %v6762_v19 }
0x2144   :  { %v4716_v24 = vpop.f32.mrb[142].mxu0 }
0x2145   :  { %v6115_v11 = vpop.f32.mrb[143].mxu0  ;;  %v4737_v46 = vadd.f32 %v4716_v24, %v8286_v12 }
0x2147   :  { %v4747_v50 = vadd.f32 %v5124_v45, %v4737_v46  ;;  %v5127_v46 = vld [vmem:[%s8493_s21] ss:$0 sm:$0xff] }
0x2148   :  { %v4721_v44 = vpop.f32.mrb[144].mxu0 }
0x2149   :  { %v6118_v33 = vpop.f32.mrb[145].mxu0 }
0x214c   :  { %v4725_v49 = vpop.f32.mrb[146].mxu0 }
0x214d   :  { %v4738_v0 = vadd.f32 %v4725_v49, %v8297_v59  ;;  %v6121_v29 = vpop.f32.mrb[147].mxu0 }
0x214f   :  { %v4748_v55 = vadd.f32 %v5124_v45, %v4738_v0 }
0x2151   :  { %v4749_v35 = vsel %vm200_vm1, %v4747_v50, %v4748_v55 }
0x2152   :  { %v4752_v26 = vsel %vm245_vm4, %v4749_v35, 0.0 }
0x2153   :  { %4753 = vadd.xlane.f32.xlu0 %v4752_v26 }
0x2179   :  { %v4420_v62 = vpop.xlane.xlu1 %4419 }
0x217a   :  { %v4425_v51 = vmul.f32 0.03125, %v4420_v62 }
0x217c   :  { %v4430_v31 = vadd.f32 1e-12, %v4425_v51 }
0x217e   :  { %6716 = vrsqrt.f32 %v4430_v31 }
0x2188   :  { %v6717_v12 = vpop.eup %6716 }
0x2189   :  { %v4440_v42 = vmul.f32 %v6717_v12, %v4400_v25 }
0x218b   :  { %v4451_v9 = vmul.f32 %v8329_v60, %v4440_v42 }
0x218d   :  { %v4462_v15 = vadd.f32 %v8334_v6, %v4451_v9 }
0x218f   :  { %6095 = vmatmul.mubr.msk.f32.gmra.mrb[150].mxu1 %vm232_vm2, %v4462_v15 }
0x2190   :  { %6136 = vmatprep.mubr.msk.f32.mxu1 %vm6761_vm5, %v6762_v19 }
0x21cc   :  { %v4572_v59 = vpop.f32.mrb[148].mxu1 }
0x21cd   :  { %v4573_v23 = vadd.f32 %v8391_v30, %v4572_v59  ;;  %v6093_v54 = vpop.f32.mrb[149].mxu1 }
0x21cf   :  { %v4584_v10 = vmul.f32 %v4573_v23, %v4573_v23 }
0x21d1   :  { %v4589_v32 = vmul.f32 %v4584_v10, %v4573_v23 }
0x21d3   :  { %v4594_v52 = vmul.f32 0.044715, %v4589_v32 }
0x21d5   :  { %v4599_v22 = vadd.f32 %v4594_v52, %v4573_v23 }
0x21d7   :  { %v4604_v48 = vmul.f32 0.7978846, %v4599_v22 }
0x21d9   :  { %6718 = vtanh.f32 %v4604_v48 }
0x21e0   :  { %v4754_v38 = vpop.xlane.xlu0 %4753 }
0x21e1   :  { %v4755_v47 = vmul.f32 0.03125, %v4754_v38 }
0x21e3   :  { %v6719_v60 = vpop.eup %6718  ;;  %v4756_v63 = vsub.f32 %v4749_v35, %v4755_v47 }
0x21e4   :  { %v4614_v6 = vadd.f32 1.0, %v6719_v60 }
0x21e5   :  { %v4757_v7 = vmul.f32 %v4756_v63, %v4756_v63 }
0x21e6   :  { %v4619_v20 = vmul.f32 0.5, %v4614_v6 }
0x21e7   :  { %v4758_v28 = vsel %vm245_vm4, %v4757_v7, 0.0 }
0x21e8   :  { %4759 = vadd.xlane.f32.xlu1 %v4758_v28  ;;  %v4624_v58 = vmul.f32 %v4619_v20, %v4573_v23 }
0x21ea   :  { %6123 = vmatmul.mubr.msk.f32.gmra.mrb[148].mxu0 %vm91_vm0, %v4624_v58 }
0x21eb   :  { %6125 = vmatprep.mubr.msk.f32.mxu0 %vm6761_vm5, %v6762_v19  ;;  %v4782_v19 = vld [vmem:[%s8492_s20 + $0x18] sm:$0xff] }
0x21ec   :  { %v6319_v2 = vpack.c.bf16 %v4782_v19, %v4781_v36 }
0x21ee   :  { %6320 = vmatpush3.bf16.msra.mxu1 %v6319_v2 }
0x2262   :  { %v4577_v34 = vpop.f32.mrb[150].mxu1 }
0x2263   :  { %v4578_v1 = vadd.f32 %v8391_v30, %v4577_v34  ;;  %v6096_v37 = vpop.f32.mrb[151].mxu1  ;;  %v5125_v30 = vld [vmem:[%s8490_s18] ss:$0 sm:$0xff]  ;;  %s6736_s18 = scalar_lea.vmem %s4871_s8, 32 }
0x2264   :  { %p6737_p0 = scmp.ne.s32.totalorder %s4871_s8, %s6736_s18  ;;  %p6742_p2 = scmp.lt.s32.totalorder %s6736_s18, %s6736_s18 }
0x2265   :  { %v4585_v13 = vmul.f32 %v4578_v1, %v4578_v1 }
0x2266   :  { %p6743_p3 = por %p6742_p2, %p6741_p1 }
0x2267   :  { %v4590_v14 = vmul.f32 %v4585_v13, %v4578_v1 }
0x2268   :  { %p6744_p4 = pnand %p6743_p3, %p6737_p0 }
0x2269   :  { %v4595_v56 = vmul.f32 0.044715, %v4590_v14 }
0x226b   :  { %v4600_v4 = vadd.f32 %v4595_v56, %v4578_v1 }
0x226d   :  { %v4605_v61 = vmul.f32 0.7978846, %v4600_v4 }
0x226f   :  { %6720 = vtanh.f32 %v4605_v61 }
0x2275   :  { %v4760_v18 = vpop.xlane.xlu1 %4759 }
0x2276   :  { %v4761_v41 = vmul.f32 0.03125, %v4760_v18 }
0x2278   :  { %v4762_v27 = vadd.f32 1e-12, %v4761_v41 }
0x2279   :  { %v6721_v39 = vpop.eup %6720 }
0x227a   :  { %6722 = vrsqrt.f32 %v4762_v27  ;;  %v4615_v16 = vadd.f32 1.0, %v6721_v39 }
0x227c   :  { %v4620_v25 = vmul.f32 0.5, %v4615_v16 }
0x227e   :  { %v4625_v57 = vmul.f32 %v4620_v25, %v4578_v1 }
0x2280   :  { %6126 = vmatmul.mubr.msk.f32.gmra.mrb[150].mxu0 %vm91_vm0, %v4625_v57 }
0x2284   :  { %v6723_v17 = vpop.eup %6722 }
0x2285   :  { %v4764_v40 = vmul.f32 %v6723_v17, %v4756_v63 }
0x2287   :  { %v4771_v53 = vmul.f32 %v5125_v30, %v4764_v40 }
0x2289   :  { %v4778_v21 = vadd.f32 %v5126_v3, %v4771_v53 }
0x228b   :  { %6137 = vmatmul.mubr.msk.f32.vlgmr.msra.gmra.mrb[152].mxu1 %vm232_vm2, %v4778_v21 }
0x22bd   :  { %v4730_v24 = vpop.f32.mrb[148].mxu0 }
0x22be   :  { %v6124_v11 = vpop.f32.mrb[149].mxu0 }
0x2353   :  { %v4734_v44 = vpop.f32.mrb[150].mxu0 }
0x2354   :  { %v6127_v33 = vpop.f32.mrb[151].mxu0 }
0x235e   :  { %v4859_v45 = vpop.f32.mrb[152].mxu1 }
0x235f   :  { %v4860_v49 = vadd.f32 %v5127_v46, %v4859_v45  ;;  %v6138_v0 = vpop.f32.mrb[153].mxu1 }
0x2361   :  { %4863 = vst [vmem:[#allocation2] sm:$0x3] %v4860_v49 }
0x2362   :  { %6747 = shalt.err (!%p6744_p4)
}
0x2363   :  { %s6748_s5 = scalar_lea.hbm %s8494_s22, 32 }
0x2364   :  { %p6749_p5 = scmp.ne.s32.totalorder %s8494_s22, %s6748_s5  ;;  %p6752_p6 = scmp.lt.u32.totalorder %s6748_s5, %s8494_s22 }
0x2366   :  { %p6754_p7 = pnand %p6752_p6, %p6749_p5 }
0x2368   :  { %6757 = shalt.err (!%p6754_p7)
}
0x2369   :  { %4873 = dma.vmem_to_hbm [thread:$0]  %s4871_s8, 32, %s8494_s22, [#allocation3]  }
0x236a   :  { %6758 = dma.done.wait [#allocation3], 32  }
0x236b   :  { %6759 = vsyncadd [#allocation3], 4294967264 }
0x236c   :  { %4877 = vsyncpa [#allocation3], 1 }

</bundles_post_ra>
